<compile_context>
chip_gen: v7x
topology: tpu7x:2x2x1
jax: 0.10.0
libtpu: 0.0.40
codegen_flags: <defaults>
</compile_context>

<pallas_src>
import functools

import jax
import jax.numpy as jnp
from jax.experimental import pallas as pl
from jax.experimental.pallas import tpu as pltpu


# ---------------------------------------------------------------------------
# Stage 1: fused "concat + QKV projection" (Q columns pre-scaled on host).
# ---------------------------------------------------------------------------
def _qkv_proj_kernel(q_ref, k_ref, v_ref, wq_ref, wk_ref, wv_ref, proj_ref):
    """Grid: (batch, seq_tile).

    q_ref/k_ref/v_ref : (1, TS, d_in)  raw query/key/value rows
    w*_ref            : (d_in, 3E)     bf16 weight rows for that input, resident
    proj_ref          : (1, TS, 3E)    bf16 projection tile (Q | K | V columns)
    """
    cdt = wq_ref.dtype
    q = q_ref[0].astype(cdt)
    k = k_ref[0].astype(cdt)
    v = v_ref[0].astype(cdt)

    # cat([q, k, v], -1) @ Wqkv  ==  q @ Wq_rows + k @ Wk_rows + v @ Wv_rows
    acc = jnp.dot(q, wq_ref[...], preferred_element_type=jnp.float32)
    acc += jnp.dot(k, wk_ref[...], preferred_element_type=jnp.float32)
    acc += jnp.dot(v, wv_ref[...], preferred_element_type=jnp.float32)
    proj_ref[0] = acc.astype(proj_ref.dtype)


# ---------------------------------------------------------------------------
# Stage 2: per-(head, q-tile) attention + fused, head-accumulated out-proj.
# K/V for a head are fetched once per (batch, head) because the q-tile axis is
# innermost and their block index does not depend on it.
# ---------------------------------------------------------------------------
def _attention_kernel(q_ref, k_ref, v_ref, wo_ref, out_ref, *rest,
                      num_heads, q_tile, store_attn):
    """Grid: (batch, head, q_tile); head is the (arbitrary) reduction axis.

    q_ref  : (1, TQ, D)   queries of head h for this q tile (pre-scaled, bf16)
    k_ref  : (1, S,  D)   keys of head h (bf16)
    v_ref  : (1, S,  D)   values of head h (bf16)
    wo_ref : (H, D, E)    full output-projection weights, resident (bf16)
    out_ref: (1, S, E)    per-batch output, resident across (head, q_tile)
    attn_ref (optional): (1, 1, TQ, S) softmax weights for (head, q tile)
    acc_ref: VMEM (S, E) f32 accumulator over heads
    """
    if store_attn:
        attn_ref, acc_ref = rest
    else:
        (acc_ref,) = rest

    h = pl.program_id(1)
    qt = pl.program_id(2)
    row0 = pl.multiple_of(qt * q_tile, q_tile)
    rows = pl.ds(row0, q_tile)

    q = q_ref[0]                     # (TQ, D) bf16, already scaled by 1/sqrt(E)
    k = k_ref[0]                     # (S, D)  bf16
    v = v_ref[0]                     # (S, D)  bf16

    # scores = q @ k^T without materializing a transpose: contract last dims.
    s = jax.lax.dot_general(q, k, (((1,), (1,)), ((), ())),
                            preferred_element_type=jnp.float32)       # (TQ, S)

    # Numerically-stable softmax; one EUP reciprocal per row (approx), and let
    # p overwrite the exp temporary to keep vreg pressure down.
    m = jnp.max(s, axis=-1, keepdims=True)
    p = jnp.exp(s - m)
    l = jnp.sum(p, axis=-1, keepdims=True)
    p = p * pl.reciprocal(l, approx=True)                              # (TQ, S)

    if store_attn:
        attn_ref[0, 0] = p.astype(attn_ref.dtype)

    ctx = jnp.dot(p.astype(v.dtype), v,
                  preferred_element_type=jnp.float32)                  # (TQ, D)
    # Fused output projection: sum_h (p_h @ v_h) @ Wout[h*D:(h+1)*D, :]
    contrib = jnp.dot(ctx.astype(wo_ref.dtype), wo_ref[h],
                      preferred_element_type=jnp.float32)              # (TQ, E)

    @pl.when(h == 0)
    def _():
        acc_ref[rows, :] = contrib

    @pl.when(h > 0)
    def _():
        acc_ref[rows, :] += contrib

    @pl.when(h == num_heads - 1)
    def _():
        out_ref[0, rows, :] = acc_ref[rows, :].astype(out_ref.dtype)


def _pick_tile(n, preferred):
    # Largest of (preferred, full extent) that divides evenly; keeps every
    # block's last-two dims (8,128)-conforming or full-extent.
    t = min(preferred, n)
    return t if n % t == 0 else n


def multihead_attention(query, key, value, w_qkv, w_out, *, num_heads,
                        q_tile=256, seq_tile=512,
                        return_attn_weights=True, attn_dtype=None,
                        compute_dtype=jnp.bfloat16):
    """query/key/value: (B, S, embed_dim // 3).
    w_qkv: (embed_dim, 3*embed_dim) input-major (y = x @ W).
    w_out: (embed_dim, embed_dim)   input-major.
    Returns (output (B, S, E), attn_weights (B, H, S, S) or None).
    """
    # TODO(synk): attn_mask path not implemented (module is exercised with None).
    # TODO(synk): for very long S, switch Stage 2 to flash-style KV tiling and
    # cap the (S, E) accumulator / whole-S K/V residency (v7x 64 MiB VMEM).
    B, S, d_in = query.shape
    E = w_qkv.shape[0]
    H = num_heads
    D = E // H
    assert 3 * d_in == E, "cat([query,key,value]) must carry embed_dim features"
    assert E % H == 0

    TS = _pick_tile(S, seq_tile)
    TQ = _pick_tile(S, q_tile)
    n_st = S // TS
    n_qt = S // TQ

    if attn_dtype is None:
        # NOTE: bfloat16 here (or return_attn_weights=False) halves the only
        # O(S^2) HBM stream in production paths.
        attn_dtype = query.dtype

    # ---- weight prep (tiny, one-time, plain JAX) ---------------------------
    # Fold the 1/sqrt(embed_dim) score scale into the Q output columns, split
    # W_qkv by input rows (query/key/value features of the concat), cast bf16.
    scale = 1.0 / (E ** 0.5)
    w_scaled = jnp.concatenate([w_qkv[:, :E] * scale, w_qkv[:, E:]], axis=-1)
    wq_rows = w_scaled[:d_in].astype(compute_dtype)          # (d_in, 3E)
    wk_rows = w_scaled[d_in:2 * d_in].astype(compute_dtype)  # (d_in, 3E)
    wv_rows = w_scaled[2 * d_in:].astype(compute_dtype)      # (d_in, 3E)
    wo_heads = w_out.reshape(H, D, E).astype(compute_dtype)  # rows per head

    # Conservative explicit VMEM budget: far above the ~4 MB per-step
    # footprint, well under v7x's 64 MiB physical per-core VMEM.
    stage1_params = pltpu.CompilerParams(
        dimension_semantics=("parallel", "parallel"),
        vmem_limit_bytes=32 * 1024 * 1024,
    )
    stage2_params = pltpu.CompilerParams(
        dimension_semantics=("parallel", "arbitrary", "arbitrary"),
        vmem_limit_bytes=32 * 1024 * 1024,
    )

    # ---- stage 1: QKV projection -> bf16 (B, S, 3E), Q|K|V along columns ---
    proj = pl.pallas_call(
        _qkv_proj_kernel,
        out_shape=jax.ShapeDtypeStruct((B, S, 3 * E), compute_dtype),
        grid_spec=pltpu.PrefetchScalarGridSpec(
            num_scalar_prefetch=0,
            grid=(B, n_st),
            in_specs=[
                pl.BlockSpec((1, TS, d_in), lambda b, st: (b, st, 0)),
                pl.BlockSpec((1, TS, d_in), lambda b, st: (b, st, 0)),
                pl.BlockSpec((1, TS, d_in), lambda b, st: (b, st, 0)),
                # Weights: constant block index -> VMEM-resident, one DMA each.
                pl.BlockSpec((d_in, 3 * E), lambda b, st: (0, 0)),
                pl.BlockSpec((d_in, 3 * E), lambda b, st: (0, 0)),
                pl.BlockSpec((d_in, 3 * E), lambda b, st: (0, 0)),
            ],
            out_specs=pl.BlockSpec((1, TS, 3 * E), lambda b, st: (b, st, 0)),
        ),
        compiler_params=stage1_params,
    )(query, key, value, wq_rows, wk_rows, wv_rows)

    # ---- stage 2: attention + fused output projection ----------------------
    attn_kernel = functools.partial(_attention_kernel, num_heads=H, q_tile=TQ,
                                    store_attn=return_attn_weights)

    out_shapes = [jax.ShapeDtypeStruct((B, S, E), query.dtype)]
    # Output block index depends only on b -> resident across (head, q_tile).
    out_specs = [pl.BlockSpec((1, S, E), lambda b, h, qt: (b, 0, 0))]
    if return_attn_weights:
        out_shapes.append(jax.ShapeDtypeStruct((B, H, S, S), attn_dtype))
        out_specs.append(
            pl.BlockSpec((1, 1, TQ, S), lambda b, h, qt: (b, h, qt, 0)))

    results = pl.pallas_call(
        attn_kernel,
        out_shape=tuple(out_shapes),
        grid_spec=pltpu.PrefetchScalarGridSpec(
            num_scalar_prefetch=0,
            grid=(B, H, n_qt),
            in_specs=[
                # Q columns of head h: proj[:, :, h*D:(h+1)*D]
                pl.BlockSpec((1, TQ, D), lambda b, h, qt: (b, qt, h)),
                # K columns of head h: proj[:, :, E + h*D : ...]; block index
                # independent of qt -> fetched once per (batch, head).
                pl.BlockSpec((1, S, D), lambda b, h, qt: (b, 0, H + h)),
                # V columns of head h.
                pl.BlockSpec((1, S, D), lambda b, h, qt: (b, 0, 2 * H + h)),
                # Output-projection weights: resident, one DMA.
                pl.BlockSpec((H, D, E), lambda b, h, qt: (0, 0, 0)),
            ],
            out_specs=tuple(out_specs),
            scratch_shapes=[pltpu.VMEM((S, E), jnp.float32)],
        ),
        compiler_params=stage2_params,
    )(proj, proj, proj, wo_heads)

    if return_attn_weights:
        return results[0], results[1]
    return results[0], None


def reference_mha(query, key, value, w_qkv, w_out, *, num_heads):
    """Pure-JAX f32 reference mirroring the PyTorch forward exactly."""
    embed_dim = w_qkv.shape[0]
    head_dim = embed_dim // num_heads
    B, S, _ = query.shape
    x = jnp.concatenate([query, key, value], axis=-1)
    qkv = x @ w_qkv
    q, k, v = jnp.split(qkv, 3, axis=-1)

    def split_heads(t):
        return t.reshape(B, S, num_heads, head_dim).transpose(0, 2, 1, 3)

    q, k, v = map(split_heads, (q, k, v))
    scores = jnp.einsum("bhqd,bhkd->bhqk", q, k) / (embed_dim ** 0.5)
    attn = jax.nn.softmax(scores, axis=-1)
    out = jnp.einsum("bhqk,bhkd->bhqd", attn, v)
    out = out.transpose(0, 2, 1, 3).reshape(B, S, embed_dim)
    return out @ w_out, attn


if __name__ == "__main__":
    EMBED_DIM = 384          # divisible by 3 (cat of q/k/v) and by num_heads
    NUM_HEADS = 3            # head_dim = 128 -> lane-dense blocks everywhere
    IN_DIM = EMBED_DIM // 3  # per-input feature dim so cat(...) has embed_dim features
    BATCH = 2
    SEQ = 256

    key0 = jax.random.PRNGKey(0)
    kq, kk, kv, kw1, kw2 = jax.random.split(key0, 5)

    query = jax.random.normal(kq, (BATCH, SEQ, IN_DIM), dtype=jnp.float32)
    key_in = jax.random.normal(kk, (BATCH, SEQ, IN_DIM), dtype=jnp.float32)
    value = jax.random.normal(kv, (BATCH, SEQ, IN_DIM), dtype=jnp.float32)

    # Deterministic synthetic weights (input-major layout: y = x @ W).
    w_qkv = jax.random.normal(kw1, (EMBED_DIM, 3 * EMBED_DIM), dtype=jnp.float32)
    w_qkv = w_qkv / (EMBED_DIM ** 0.5)
    w_out = jax.random.normal(kw2, (EMBED_DIM, EMBED_DIM), dtype=jnp.float32)
    w_out = w_out / (EMBED_DIM ** 0.5)

    out, attn = multihead_attention(query, key_in, value, w_qkv, w_out,
                                    num_heads=NUM_HEADS)
    out = jax.block_until_ready(out)
    attn = jax.block_until_ready(attn)

    out_ref, attn_ref = reference_mha(query, key_in, value, w_qkv, w_out,
                                      num_heads=NUM_HEADS)

    assert out.shape == (BATCH, SEQ, EMBED_DIM)
    assert attn.shape == (BATCH, NUM_HEADS, SEQ, SEQ)
    # bf16 MXU operands + approx EUP reciprocal -> loosened tolerances vs f32 ref.
    attn_err = float(jnp.max(jnp.abs(attn - attn_ref)))
    out_err = float(jnp.max(jnp.abs(out - out_ref)))
    assert jnp.allclose(attn, attn_ref, atol=1e-2, rtol=1e-2), attn_err
    assert jnp.allclose(out, out_ref, atol=5e-2, rtol=5e-2), out_err

    print("KERNEL_OK")
</pallas_src>

<mosaic_0001>
module attributes {stable_mosaic.version = 11 : i64} {
  func.func @_qkv_proj_kernel(%arg0: i32, %arg1: i32, %arg2: memref<1x256x128xf32, #tpu.memory_space<vmem>>, %arg3: memref<1x256x128xf32, #tpu.memory_space<vmem>>, %arg4: memref<1x256x128xf32, #tpu.memory_space<vmem>>, %arg5: memref<128x1152xbf16, #tpu.memory_space<vmem>>, %arg6: memref<128x1152xbf16, #tpu.memory_space<vmem>>, %arg7: memref<128x1152xbf16, #tpu.memory_space<vmem>>, %arg8: memref<1x256x1152xbf16, #tpu.memory_space<vmem>>) attributes {dimension_semantics = [#tpu.dimension_semantics<parallel>, #tpu.dimension_semantics<parallel>], iteration_bounds = array<i64: 2, 1>, scalar_prefetch = 0 : i64, scratch_operands = 0 : i64, tpu.core_type = #tpu.core_type<tc>, window_params = [{transform_indices = @transform_0, window_bounds = array<i64: 1, 256, 128>}, {transform_indices = @transform_1, window_bounds = array<i64: 1, 256, 128>}, {transform_indices = @transform_2, window_bounds = array<i64: 1, 256, 128>}, {pipeline_mode = #tpu.pipeline_mode<synchronous>, transform_indices = @transform_3, window_bounds = array<i64: 128, 1152>}, {pipeline_mode = #tpu.pipeline_mode<synchronous>, transform_indices = @transform_4, window_bounds = array<i64: 128, 1152>}, {pipeline_mode = #tpu.pipeline_mode<synchronous>, transform_indices = @transform_5, window_bounds = array<i64: 128, 1152>}, {transform_indices = @transform_6, window_bounds = array<i64: 1, 256, 1152>}]} {
    %c0 = arith.constant 0 : index
    %c0_0 = arith.constant 0 : index
    %c0_1 = arith.constant 0 : index
    %0 = vector.load %arg2[%c0, %c0_0, %c0_1] : memref<1x256x128xf32, #tpu.memory_space<vmem>>, vector<1x256x128xf32>
    %1 = vector.shape_cast %0 : vector<1x256x128xf32> to vector<256x128xf32>
    %2 = arith.truncf %1 : vector<256x128xf32> to vector<256x128xbf16>
    %c0_2 = arith.constant 0 : index
    %c0_3 = arith.constant 0 : index
    %c0_4 = arith.constant 0 : index
    %3 = vector.load %arg3[%c0_2, %c0_3, %c0_4] : memref<1x256x128xf32, #tpu.memory_space<vmem>>, vector<1x256x128xf32>
    %4 = vector.shape_cast %3 : vector<1x256x128xf32> to vector<256x128xf32>
    %5 = arith.truncf %4 : vector<256x128xf32> to vector<256x128xbf16>
    %c0_5 = arith.constant 0 : index
    %c0_6 = arith.constant 0 : index
    %c0_7 = arith.constant 0 : index
    %6 = vector.load %arg4[%c0_5, %c0_6, %c0_7] : memref<1x256x128xf32, #tpu.memory_space<vmem>>, vector<1x256x128xf32>
    %7 = vector.shape_cast %6 : vector<1x256x128xf32> to vector<256x128xf32>
    %8 = arith.truncf %7 : vector<256x128xf32> to vector<256x128xbf16>
    %c0_8 = arith.constant 0 : index
    %c0_9 = arith.constant 0 : index
    %9 = vector.load %arg5[%c0_8, %c0_9] : memref<128x1152xbf16, #tpu.memory_space<vmem>>, vector<128x1152xbf16>
    %cst = arith.constant dense<0.000000e+00> : vector<256x1152xf32>
    %10 = tpu.matmul %2, %9, %cst {dimension_numbers = #tpu.dot_dimension_numbers<[1], [0], [0], [1], [0, 0, 1, 1], [], []>} : vector<256x128xbf16>, vector<128x1152xbf16>, vector<256x1152xf32> -> vector<256x1152xf32>
    %c0_10 = arith.constant 0 : index
    %c0_11 = arith.constant 0 : index
    %11 = vector.load %arg6[%c0_10, %c0_11] : memref<128x1152xbf16, #tpu.memory_space<vmem>>, vector<128x1152xbf16>
    %cst_12 = arith.constant dense<0.000000e+00> : vector<256x1152xf32>
    %12 = tpu.matmul %5, %11, %cst_12 {dimension_numbers = #tpu.dot_dimension_numbers<[1], [0], [0], [1], [0, 0, 1, 1], [], []>} : vector<256x128xbf16>, vector<128x1152xbf16>, vector<256x1152xf32> -> vector<256x1152xf32>
    %13 = arith.addf %10, %12 : vector<256x1152xf32>
    %c0_13 = arith.constant 0 : index
    %c0_14 = arith.constant 0 : index
    %14 = vector.load %arg7[%c0_13, %c0_14] : memref<128x1152xbf16, #tpu.memory_space<vmem>>, vector<128x1152xbf16>
    %cst_15 = arith.constant dense<0.000000e+00> : vector<256x1152xf32>
    %15 = tpu.matmul %8, %14, %cst_15 {dimension_numbers = #tpu.dot_dimension_numbers<[1], [0], [0], [1], [0, 0, 1, 1], [], []>} : vector<256x128xbf16>, vector<128x1152xbf16>, vector<256x1152xf32> -> vector<256x1152xf32>
    %16 = arith.addf %13, %15 : vector<256x1152xf32>
    %17 = arith.truncf %16 : vector<256x1152xf32> to vector<256x1152xbf16>
    %c0_16 = arith.constant 0 : index
    %c0_17 = arith.constant 0 : index
    %c0_18 = arith.constant 0 : index
    %18 = vector.load %arg8[%c0_16, %c0_17, %c0_18] : memref<1x256x1152xbf16, #tpu.memory_space<vmem>>, vector<1x256x1152xbf16>
    %19 = vector.shape_cast %18 : vector<1x256x1152xbf16> to vector<256x1152xbf16>
    %20 = vector.shape_cast %17 : vector<256x1152xbf16> to vector<1x256x1152xbf16>
    tpu.vector_store %arg8[%c0_16, %c0_17, %c0_18], %20 {strides = array<i32>} : memref<1x256x1152xbf16, #tpu.memory_space<vmem>>, vector<1x256x1152xbf16>,
    return
  }
  func.func @transform_0(%arg0: i32, %arg1: i32) -> (i32, i32, i32) {
    %c0_i32 = arith.constant 0 : i32
    %c0_i32_0 = arith.constant 0 : i32
    return %arg0, %arg1, %c0_i32 : i32, i32, i32
  }
  func.func @transform_1(%arg0: i32, %arg1: i32) -> (i32, i32, i32) {
    %c0_i32 = arith.constant 0 : i32
    %c0_i32_0 = arith.constant 0 : i32
    return %arg0, %arg1, %c0_i32 : i32, i32, i32
  }
  func.func @transform_2(%arg0: i32, %arg1: i32) -> (i32, i32, i32) {
    %c0_i32 = arith.constant 0 : i32
    %c0_i32_0 = arith.constant 0 : i32
    return %arg0, %arg1, %c0_i32 : i32, i32, i32
  }
  func.func @transform_3(%arg0: i32, %arg1: i32) -> (i32, i32) {
    %c0_i32 = arith.constant 0 : i32
    %c0_i32_0 = arith.constant 0 : i32
    %c0_i32_1 = arith.constant 0 : i32
    return %c0_i32, %c0_i32_0 : i32, i32
  }
  func.func @transform_4(%arg0: i32, %arg1: i32) -> (i32, i32) {
    %c0_i32 = arith.constant 0 : i32
    %c0_i32_0 = arith.constant 0 : i32
    %c0_i32_1 = arith.constant 0 : i32
    return %c0_i32, %c0_i32_0 : i32, i32
  }
  func.func @transform_5(%arg0: i32, %arg1: i32) -> (i32, i32) {
    %c0_i32 = arith.constant 0 : i32
    %c0_i32_0 = arith.constant 0 : i32
    %c0_i32_1 = arith.constant 0 : i32
    return %c0_i32, %c0_i32_0 : i32, i32
  }
  func.func @transform_6(%arg0: i32, %arg1: i32) -> (i32, i32, i32) {
    %c0_i32 = arith.constant 0 : i32
    %c0_i32_0 = arith.constant 0 : i32
    return %arg0, %arg1, %c0_i32 : i32, i32, i32
  }
}

</mosaic_0001>

<bundles_post_ra>
// kernel: tpu_custom_call.1
= control target key start
LH: loop header
LB: loop body
LE: loop exit
PB: predicated region body
PF: predicated region fallthrough
CT: control target
= control target key end

     0   :  { %s9676_s0 = inlined_call_operand.hbm [shape: f32[2,256,128], index: 0, kind: input, shape index: {}]   ;;  %s9677_s1 = inlined_call_operand.hbm [shape: f32[2,256,128], index: 1, kind: input, shape index: {}]   ;;  %s9678_s2 = inlined_call_operand.hbm [shape: f32[2,256,128], index: 2, kind: input, shape index: {}]   ;;  %s9679_s3 = inlined_call_operand.hbm [shape: bf16[128,1152], index: 3, kind: input, shape index: {}]   ;;  %s9680_s4 = inlined_call_operand.hbm [shape: bf16[128,1152], index: 4, kind: input, shape index: {}]   ;;  %s9681_s5 = inlined_call_operand.hbm [shape: bf16[128,1152], index: 5, kind: input, shape index: {}]   ;;  %s9682_s6 = inlined_call_operand.hbm [shape: bf16[2,256,1152], index: 6, kind: output, shape index: {}]  }
   0x1   :  { %9713 = sst [smem:[#allocation38_spill]] %s9677_s1 }
   0x2   :  { %9714 = sst [smem:[#allocation39_spill]] %s9679_s3 }
   0x3   :  { %9715 = sst [smem:[#allocation40_spill]] %s9682_s6 }
   0x4   :  { %11 = vsyncpa [#allocation3], 0 }
   0x5   :  { %13 = vsyncpa [#allocation3 + $0x1], 0 }
   0x6   :  { %14 = vsyncpa [#allocation6], 0 }
   0x7   :  { %16 = vsyncpa [#allocation6 + $0x1], 0 }
   0x8   :  { %17 = vsyncpa [#allocation9], 0 }
   0x9   :  { %18 = vsyncpa [#allocation12], 0 }
   0xa   :  { %19 = vsyncpa [#allocation4], 0 }
   0xb   :  { %21 = vsyncpa [#allocation4 + $0x1], 0  ;;  %s8351_s21 = smov 0   ;;  %s8353_s22 = smov 0  }
   0xc   :  { %s8355_s23 = smov 0   ;;  %s8357_s24 = smov 0  }
   0xd   :  { %s8359_s25 = smov 0   ;;  %s8361_s26 = smov 0  }
   0xe LB: > { %9716 = sst [smem:[#allocation19_spill]] %s8280_s21  ;;  %s8382_s27 = sadd.s32 4294967295, %s8300_s26   ;;  %s8300_s26 = sphi %s8361_s26, %s27_s26   ;;  %s8296_s25 = sphi %s8359_s25, %s9785_s25   ;;  %s8292_s24 = sphi %s8357_s24, %s9789_s24   ;;  %s8288_s23 = sphi %s8355_s23, %s9788_s23   ;;  %s8284_s22 = sphi %s8353_s22, %s9787_s22   ;;  %s8280_s21 = sphi %s8351_s21, %s9786_s21  }
   0xf   : > { %9717 = sst [smem:[#allocation20_spill]] %s8296_s25  ;;  %s6236_s28 = sadd.s32 4294967294, %s8300_s26  }
  0x10   : > { %9718 = sst [smem:[#allocation21_spill]] %s8300_s26  ;;  %p55_p0 = scmp.ne.s32.totalorder %s8288_s23, %s8284_s22 }
  0x11   : > { %p56_p1 = scmp.eq.s32.totalorder %s8300_s26, 0  ;;  %p61_p2 = scmp.ne.s32.totalorder %s8284_s22, %s8280_s21 }
  0x12   : > { %p9683_p3 = scmp.eq.s32.totalorder %s8382_s27, 0  ;;  %p206_p5 = scmp.eq.s32.totalorder %s8382_s27, 1 }
  0x13   : > { %p8391_p4 = por %p56_p1, %p55_p0  ;;  %p212_p7 = scmp.eq.s32.totalorder %s6236_s28, 1 }
  0x14   : > { %p8398_p6 = por %p9683_p3, %p61_p2  ;;  %p8402_p8 = por %p206_p5, %p55_p0 }
  0x15   : > { %p6237_p9 = scmp.ge.s32.totalorder %s8300_s26, 1  ;;  %p8407_p10 = por %p212_p7, %p61_p2 }
  0x16   : > { %s9720_s30 = scalar_select %p8398_p6, 1, 0 }
  0x17   : > { %s9721_s7 = scalar_select %p8402_p8, 1, 0 }
  0x18   : > { %s9723_s8 = scalar_select %p8407_p10, 1, 0 }
  0x19   : > { %9722 = sst [smem:[#allocation22_spill]] %s9721_s7  ;;  %p219_p11 = scmp.lt.s32.totalorder %s8300_s26, 3 }
  0x1a   : > { %9724 = sst [smem:[#allocation23_spill]] %s9723_s8  ;;  %s8302_s10 = smov [#allocation8]  }
  0x1b   : > { %p8412_p12 = pnand %p6237_p9, %p219_p11  ;;  %s231_s11 = sshll.u32 %s8302_s10, 4  ;;  %s8416_s11 = int_to_ptr.vmem [resolvable:$true] %s231_s11 }
  0x1c   : > { %s39_s13 = sadd.s32 1, %s8296_s25  ;;  %s9728_s3 = sld [smem:[#allocation39_spill]] }
  0x1d   : > { %s9725_s9 = scalar_select %p8412_p12, 1, 0 }
  0x1e   : > { %p7630_p13 = pneg %p8412_p12  ;;  %p8429_p2 = scmp.ge.s32.totalorder %s39_s13, 2 }
  0x20   : > { %p8423_p1 = pnand %p7630_p13, %p9683_p3 }
  0x22   : > { %s9726_s12 = scalar_select %p8423_p1, 1, 0 }
  0x23   : > { %s8032_s18 = scalar_lea.hbm %s9728_s3, 9216  ;;  %p8441_p7 = pneg %p8423_p1 }
  0x24   : > { %p8033_p5 = scmp.ne.s32.totalorder %s9728_s3, %s8032_s18  ;;  %p8039_p13 = scmp.lt.u32.totalorder %s8032_s18, %s9728_s3 }
  0x25   : > { %s9729_s28 = scalar_select %p8441_p7, 1, 0 }
  0x26   : > { %p8035_p9 = pnand %p8441_p7, %p8033_p5 }
  0x28   : > { %p8036_p11 = pneg %p8035_p9 }
  0x2a   : > { %p8041_p0 = pnand %p8039_p13, %p8036_p11 }
  0x2c   : > { %8044 = shalt.err (!%p8041_p0)
}
  0x2d   : > { %s8045_s16 = scalar_lea.vmem %s8416_s11, 9216  ;;  %p8053_p6 = scmp.lt.s32.totalorder %s8416_s11, %s8416_s11 }
  0x2e   : > { %p8046_p3 = scmp.ne.s32.totalorder %s8416_s11, %s8045_s16  ;;  %p8054_p12 = scmp.lt.s32.totalorder %s8045_s16, %s8045_s16 }
  0x30   : > { %p8048_p10 = pnand %p8046_p3, %p8441_p7  ;;  %p8055_p5 = por %p8054_p12, %p8053_p6 }
  0x32   : > { %p8049_p8 = pneg %p8048_p10 }
  0x34   : > { %p8056_p9 = pnand %p8055_p5, %p8049_p8 }
  0x36   : > { %8059 = shalt.err (!%p8056_p9)
}
  0x37   : > { %s9689_s17 = smov 576   ;;  %s9692_s14 = smov 36  }
  0x38   : > { %7633 = dma.hbm_to_vmem [thread:$0]  (!%p8423_p1), %s9728_s3, 9216, %s8416_s11, [#allocation9], %s9689_s17, %s9689_s17, %s9692_s14  }
  0x39   : > { %s9791_s13 = smov (%p8429_p2, %s39_s13), 0  ;;  %p7657_p3 = scmp.lt.s32.totalorder %s8300_s26, 2 }
  0x3a   : > { %9730 = sst [smem:[#allocation24_spill]] %s9791_s13  ;;  %s9691_s20 = sand.u32 1, %s8288_s23  }
  0x3b   : > { %s43_s10 = ssub.s32 %s8296_s25, %s9791_s13  ;;  %s8475_s16 = sshll.u32 %s9691_s20, 8 }
  0x3c   : > { %p46_p6 = scmp.eq.s32.totalorder %s43_s10, 0  ;;  %s8478_s8 = sshll.u32 %s8296_s25, 12 }
  0x3d   : > { %p8482_p8 = pnand %p7657_p3, %p8391_p4  ;;  %s9732_s11 = sadd.s32 1, %s8288_s23 }
  0x3e   : > { %s8489_s15 = scalar_select %p46_p6, %s8288_s23, %s9732_s11  }
  0x3f   : > { %s9731_s21 = scalar_select %p8482_p8, 1, 0 }
  0x40   : > { %9733 = sst [smem:[#allocation25_spill]] %s8489_s15  ;;  %s294_s18 = sand.u32 1, %s8300_s26  }
  0x41   : > { %s9734_s1 = sld [smem:[#allocation38_spill]]  ;;  %s298_s29 = scalar_lea.vmem [#allocation5], %s8475_s16 }
  0x42   : > { %s307_s10 = sshll.u32 %s298_s29, 4  ;;  %s8305_s14 = smov [#allocation10]   ;;  %s8499_s10 = int_to_ptr.vmem [resolvable:$true] %s307_s10 }
  0x43   : > { %s8501_s3 = sshll.u32 %s8305_s14, 4  ;;  %s8503_s13 = scalar_lea.sflag [#allocation6], %s294_s18  ;;  %s245_s3 = int_to_ptr.vmem [resolvable:$true] %s8501_s3 }
  0x44   : > { %p8509_p10 = pneg %p8482_p8 }
  0x46   : > { %s9735_s17 = scalar_select %p8509_p10, 1, 0 }
  0x47   : > { %s8496_s20 = scalar_lea.hbm %s9734_s1, %s8478_s8  ;;  %s8065_s25 = scalar_lea.hbm %s9734_s1, 8192 }
  0x48   : > { %s8060_s11 = scalar_lea.hbm %s8496_s20, 4096  ;;  %p8066_p2 = scmp.lt.u32.totalorder %s8496_s20, %s9734_s1 }
  0x49   : > { %p8061_p4 = scmp.ne.s32.totalorder %s8496_s20, %s8060_s11  ;;  %p8067_p11 = scmp.lt.u32.totalorder %s8065_s25, %s8060_s11 }
  0x4a   : > { %p8069_p5 = scmp.lt.u32.totalorder %s8060_s11, %s8496_s20 }
  0x4b   : > { %p8063_p12 = pnand %p8509_p10, %p8061_p4  ;;  %p8068_p13 = por %p8067_p11, %p8066_p2 }
  0x4d   : > { %p8064_p0 = pneg %p8063_p12  ;;  %p8070_p9 = por %p8069_p5, %p8068_p13 }
  0x4f   : > { %p8071_p3 = pnand %p8070_p9, %p8064_p0 }
  0x51   : > { %8074 = shalt.err (!%p8071_p3)
}
  0x52   : > { %s8075_s18 = scalar_lea.vmem %s8499_s10, 4096  ;;  %s8306_s19 = smov [#allocation5]  }
  0x53   : > { %p8076_p6 = scmp.ne.s32.totalorder %s8499_s10, %s8075_s18  ;;  %s8080_s29 = sshll.u32 %s8306_s19, 4  ;;  %s8081_s29 = int_to_ptr.vmem [resolvable:$false] %s8080_s29 }
  0x54   : > { %s8082_s15 = scalar_lea.vmem %s8081_s29, 8192  ;;  %p8083_p1 = scmp.lt.s32.totalorder %s8499_s10, %s8081_s29 }
  0x55   : > { %p8078_p4 = pnand %p8076_p6, %p8509_p10  ;;  %p8084_p7 = scmp.lt.s32.totalorder %s8082_s15, %s8075_s18 }
  0x57   : > { %p8079_p12 = pneg %p8078_p4  ;;  %p8085_p2 = por %p8084_p7, %p8083_p1 }
  0x59   : > { %p8086_p11 = pnand %p8085_p2, %p8079_p12 }
  0x5b   : > { %8089 = shalt.err (!%p8086_p11)
}
  0x5c   : > { %s9705_s25 = smov 128   ;;  %s9707_s11 = smov 8  }
  0x5d   : > { %7646 = dma.hbm_to_vmem [thread:$0]  (!%p8482_p8), %s8496_s20, 4096, %s8499_s10, %s8503_s13, %s9705_s25, %s9705_s25, %s9707_s11  }
  0x5e   : > { %s8090_s18 = scalar_lea.hbm %s9680_s4, 9216  ;;  %p9736_p7 = scmp.ne.s32.totalorder %s9729_s28, 0 }
  0x5f   : > { %p8091_p1 = scmp.ne.s32.totalorder %s9680_s4, %s8090_s18  ;;  %p8097_p5 = scmp.lt.u32.totalorder %s8090_s18, %s9680_s4 }
  0x61   : > { %p8093_p0 = pnand %p8091_p1, %p9736_p7 }
  0x63   : > { %p8094_p13 = pneg %p8093_p0 }
  0x65   : > { %p8099_p9 = pnand %p8097_p5, %p8094_p13 }
  0x67   : > { %8102 = shalt.err (!%p8099_p9)
}
  0x68   : > { %s8103_s6 = scalar_lea.vmem %s245_s3, 9216  ;;  %p8111_p12 = scmp.lt.s32.totalorder %s245_s3, %s245_s3 }
  0x69   : > { %p8104_p3 = scmp.ne.s32.totalorder %s245_s3, %s8103_s6  ;;  %p8112_p2 = scmp.lt.s32.totalorder %s8103_s6, %s8103_s6 }
  0x6b   : > { %p8106_p6 = pnand %p8104_p3, %p9736_p7  ;;  %p8113_p11 = por %p8112_p2, %p8111_p12 }
  0x6d   : > { %p8107_p4 = pneg %p8106_p6 }
  0x6f   : > { %p8114_p8 = pnand %p8113_p11, %p8107_p4 }
  0x71   : > { %8117 = shalt.err (!%p8114_p8)
}
  0x72   : > { %p9737_p1 = scmp.ne.s32.totalorder %s9726_s12, 0  ;;  %s9738_s20 = smov 36  }
  0x73   : > { %s9739_s10 = smov 576   ;;  %s8309_s14 = smov [#allocation11]  }
  0x74   : > { %7636 = dma.hbm_to_vmem [thread:$0]  (!%p9737_p1), %s9680_s4, 9216, %s245_s3, [#allocation9], %s9739_s10, %s9739_s10, %s9738_s20  }
  0x75   : > { %s257_s19 = sshll.u32 %s8309_s14, 4  ;;  %s8118_s6 = scalar_lea.hbm %s9681_s5, 9216  ;;  %s258_s19 = int_to_ptr.vmem [resolvable:$true] %s257_s19 }
  0x76   : > { %p8119_p8 = scmp.ne.s32.totalorder %s9681_s5, %s8118_s6  ;;  %p8125_p5 = scmp.lt.u32.totalorder %s8118_s6, %s9681_s5 }
  0x78   : > { %p8121_p0 = pnand %p8119_p8, %p9736_p7 }
  0x7a   : > { %p8122_p13 = pneg %p8121_p0 }
  0x7c   : > { %p8127_p9 = pnand %p8125_p5, %p8122_p13 }
  0x7e   : > { %8130 = shalt.err (!%p8127_p9)
}
  0x7f   : > { %s8131_s3 = scalar_lea.vmem %s258_s19, 9216  ;;  %p8139_p12 = scmp.lt.s32.totalorder %s258_s19, %s258_s19 }
  0x80   : > { %p8132_p3 = scmp.ne.s32.totalorder %s258_s19, %s8131_s3  ;;  %p8140_p2 = scmp.lt.s32.totalorder %s8131_s3, %s8131_s3 }
  0x82   : > { %p8134_p6 = pnand %p8132_p3, %p9736_p7  ;;  %p8141_p11 = por %p8140_p2, %p8139_p12 }
  0x84   : > { %p8135_p4 = pneg %p8134_p6 }
  0x86   : > { %p8142_p10 = pnand %p8141_p11, %p8135_p4 }
  0x88   : > { %8145 = shalt.err (!%p8142_p10)
}
  0x89   : > { %7639 = dma.hbm_to_vmem [thread:$0]  (!%p9737_p1), %s9681_s5, 9216, %s258_s19, [#allocation12], %s9739_s10, %s9739_s10, %s9738_s20  }
  0x8a   : > { %s8583_s1 = scalar_lea.hbm %s9676_s0, %s8478_s8  ;;  %s275_s12 = scalar_lea.vmem [#allocation2], %s8475_s16 }
  0x8b   : > { %s284_s26 = sshll.u32 %s275_s12, 4  ;;  %s9740_s14 = sand.u32 1, %s8288_s23   ;;  %s8586_s26 = int_to_ptr.vmem [resolvable:$true] %s284_s26 }
  0x8c   : > { %s8590_s18 = scalar_lea.sflag [#allocation3], %s9740_s14  ;;  %s8146_s29 = scalar_lea.hbm %s8583_s1, 4096 }
  0x8d   : > { %p8147_p10 = scmp.ne.s32.totalorder %s8583_s1, %s8146_s29  ;;  %p9741_p7 = scmp.ne.s32.totalorder %s9735_s17, 0 }
  0x8e   : > { %s8151_s19 = scalar_lea.hbm %s9676_s0, 8192  ;;  %p8152_p0 = scmp.lt.u32.totalorder %s8583_s1, %s9676_s0 }
  0x8f   : > { %p8149_p1 = pnand %p8147_p10, %p9741_p7  ;;  %p8153_p13 = scmp.lt.u32.totalorder %s8151_s19, %s8146_s29 }
  0x90   : > { %p8155_p9 = scmp.lt.u32.totalorder %s8146_s29, %s8583_s1 }
  0x91   : > { %p8150_p8 = pneg %p8149_p1  ;;  %p8154_p5 = por %p8153_p13, %p8152_p0 }
  0x93   : > { %p8156_p3 = por %p8155_p9, %p8154_p5 }
  0x95   : > { %p8157_p6 = pnand %p8156_p3, %p8150_p8 }
  0x97   : > { %8160 = shalt.err (!%p8157_p6)
}
  0x98   : > { %s8161_s3 = scalar_lea.vmem %s8586_s26, 4096  ;;  %s8310_s7 = smov [#allocation2]  }
  0x99   : > { %p8162_p4 = scmp.ne.s32.totalorder %s8586_s26, %s8161_s3  ;;  %s8166_s25 = sshll.u32 %s8310_s7, 4  ;;  %s8167_s25 = int_to_ptr.vmem [resolvable:$false] %s8166_s25 }
  0x9a   : > { %s8168_s28 = scalar_lea.vmem %s8167_s25, 8192  ;;  %p8169_p11 = scmp.lt.s32.totalorder %s8586_s26, %s8167_s25 }
  0x9b   : > { %p8164_p12 = pnand %p8162_p4, %p9741_p7  ;;  %p8170_p10 = scmp.lt.s32.totalorder %s8168_s28, %s8161_s3 }
  0x9d   : > { %p8165_p2 = pneg %p8164_p12  ;;  %p8171_p1 = por %p8170_p10, %p8169_p11 }
  0x9f   : > { %p8172_p0 = pnand %p8171_p1, %p8165_p2 }
  0xa1   : > { %8175 = shalt.err (!%p8172_p0)
}
  0xa2   : > { %p9742_p8 = scmp.ne.s32.totalorder %s9731_s21, 0  ;;  %s9743_s11 = smov 8  }
  0xa3   : > { %s9744_s12 = smov 128   ;;  %s8621_s20 = scalar_lea.hbm %s9678_s2, %s8478_s8 }
  0xa4   : > { %7643 = dma.hbm_to_vmem [thread:$0]  (!%p9742_p8), %s8583_s1, 4096, %s8586_s26, %s8590_s18, %s9744_s12, %s9744_s12, %s9743_s11  }
  0xa5   : > { %s321_s10 = scalar_lea.vmem [#allocation7], %s8475_s16  ;;  %s8176_s6 = scalar_lea.hbm %s8621_s20, 4096 }
  0xa6   : > { %s330_s19 = sshll.u32 %s321_s10, 4  ;;  %p8177_p13 = scmp.ne.s32.totalorder %s8621_s20, %s8176_s6  ;;  %s8624_s19 = int_to_ptr.vmem [resolvable:$true] %s330_s19 }
  0xa7   : > { %s8181_s26 = scalar_lea.hbm %s9678_s2, 8192  ;;  %p8182_p3 = scmp.lt.u32.totalorder %s8621_s20, %s9678_s2 }
  0xa8   : > { %p8179_p5 = pnand %p8177_p13, %p9741_p7  ;;  %p8183_p6 = scmp.lt.u32.totalorder %s8181_s26, %s8176_s6 }
  0xa9   : > { %p8185_p12 = scmp.lt.u32.totalorder %s8176_s6, %s8621_s20 }
  0xaa   : > { %p8180_p9 = pneg %p8179_p5  ;;  %p8184_p4 = por %p8183_p6, %p8182_p3 }
  0xac   : > { %p8186_p2 = por %p8185_p12, %p8184_p4 }
  0xae   : > { %p8187_p11 = pnand %p8186_p2, %p8180_p9 }
  0xb0   : > { %8190 = shalt.err (!%p8187_p11)
}
  0xb1   : > { %s8191_s16 = scalar_lea.vmem %s8624_s19, 4096  ;;  %s8311_s3 = smov [#allocation7]  }
  0xb2   : > { %p8192_p10 = scmp.ne.s32.totalorder %s8624_s19, %s8191_s16  ;;  %s8196_s7 = sshll.u32 %s8311_s3, 4  ;;  %s8197_s7 = int_to_ptr.vmem [resolvable:$false] %s8196_s7 }
  0xb3   : > { %s8198_s25 = scalar_lea.vmem %s8197_s7, 8192  ;;  %p8199_p13 = scmp.lt.s32.totalorder %s8624_s19, %s8197_s7 }
  0xb4   : > { %p8194_p1 = pnand %p8192_p10, %p9741_p7  ;;  %p8200_p5 = scmp.lt.s32.totalorder %s8198_s25, %s8191_s16 }
  0xb6   : > { %p8195_p0 = pneg %p8194_p1  ;;  %p8201_p3 = por %p8200_p5, %p8199_p13 }
  0xb8   : > { %p8202_p6 = pnand %p8201_p3, %p8195_p0 }
  0xba   : > { %8205 = shalt.err (!%p8202_p6)
}
  0xbb   : > { %7649 = dma.hbm_to_vmem [thread:$0]  (!%p9742_p8), %s8621_s20, 4096, %s8624_s19, %s8503_s13, %s9744_s12, %s9744_s12, %s9743_s11  }
  0xbc   : > { %p9745_p7 = scmp.ne.s32.totalorder %s9725_s9, 0 }
  0xbe   : > { %342 = sbr.rel (%p9745_p7) target bundleno = 1333 (0x535), region = 44 }
  0xc5   : > { %s8654_s17 = sand.u32 1, %s8284_s22   ;;  %p9746_p9 = scmp.ne.s32.totalorder %s9720_s30, 0 }
  0xc6   : > { %s6252_s28 = sshll.u32 %s8654_s17, 8  ;;  %s345_s14 = scalar_lea.sflag [#allocation3], %s8654_s17 }
  0xc7   : > { %s8658_s29 = scalar_lea.vmem [#allocation2], %s6252_s28 }
  0xc8   : > { %8259 = dma.done.wait (%p9746_p9), %s345_s14, 4096  }
  0xc9   : > { %8261 = vsyncadd (%p9746_p9), %s345_s14, 4294963200  ;;  %s353_s21 = sand.u32 1, %s8382_s27   ;;  %s8665_s13 = scalar_lea.vmem [#allocation5], %s6252_s28 }
  0xca   : > { %s354_s9 = scalar_lea.sflag [#allocation6], %s353_s21 }
  0xcb   : > { %8263 = dma.done.wait (%p9746_p9), %s354_s9, 8192  }
  0xcc   : > { %8265 = vsyncadd (%p9746_p9), %s354_s9, 4294959104  ;;  %s8671_s11 = scalar_lea.vmem [#allocation7], %s6252_s28  ;;  %p9747_p8 = scmp.eq.s32.totalorder %s8382_s27, 0 }
  0xce   : > { %8267 = dma.done.wait (%p9747_p8), [#allocation9], 18432   ;;  %p9748_p4 = pmov %p9747_p8 }
  0xd0   : > { %8269 = vsyncadd (%p9748_p4), [#allocation9], 4294948864  ;;  %p9749_p12 = pmov %p9748_p4 }
  0xd1   : > { %p9750_p2 = pmov %p9748_p4 }
  0xd2   : > { %8271 = dma.done.wait (%p9749_p12), [#allocation12], 9216  }
  0xd3   : > { %8273 = vsyncadd (%p9750_p2), [#allocation12], 4294958080  ;;  %v8312_v0 = vmov 0   ;;  %v7720_v1 = vld [vmem:[#allocation10 + $0x4] ss:$36 sps:$4 sm:$0xff]   ;;  %v472_v29 = vld [vmem:[%s8665_s13 + $0x10] sm:$0xff] }
  0xd4   : > { %1126 = vmatprep.mubr.bf16.mxu0 %v8312_v0  ;;  %1166 = vmatprep.mubr.bf16.mxu1 %v8312_v0  ;;  %v7722_v2 = vld [vmem:[#allocation10] ss:$36 sps:$4 sm:$0xff]   ;;  %v7723_v3 = vld [vmem:[#allocation10 + $0x4c] ss:$36 sps:$4 sm:$0xff]   ;;  %v7726_v5 = vld [vmem:[#allocation10 + $0x94] ss:$36 sps:$4 sm:$0xff]  }
  0xd5   : > { %1094 = vmatprep.subr.bf16.mxu0 %v7720_v1  ;;  %7016 = vmatprep.subr.bf16.mxu1 %v7720_v1  ;;  %v7725_v4 = vld [vmem:[#allocation10 + $0x48] ss:$36 sps:$4 sm:$0xff]   ;;  %v7728_v6 = vld [vmem:[#allocation10 + $0x90] ss:$36 sps:$4 sm:$0xff]   ;;  %v7729_v7 = vld [vmem:[#allocation10 + $0xdc] ss:$36 sps:$4 sm:$0xff]  }
  0xd6   : > { %1095 = vmatpush1.bf16.msra.mxu0 %v7722_v2  ;;  %7024 = vmatpush1.bf16.msra.mxu1 %v7722_v2  ;;  %v7731_v8 = vld [vmem:[#allocation10 + $0xd8] ss:$36 sps:$4 sm:$0xff]   ;;  %v7732_v9 = vld [vmem:[#allocation10 + $0x124] ss:$36 sps:$4 sm:$0xff]   ;;  %v7735_v11 = vld [vmem:[#allocation10 + $0x16c] ss:$36 sps:$4 sm:$0xff]  }
  0xd7   : > { %1096 = vmatprep.subr.bf16.mxu0 %v7723_v3  ;;  %7017 = vmatprep.subr.bf16.mxu1 %v7723_v3  ;;  %v7734_v10 = vld [vmem:[#allocation10 + $0x120] ss:$36 sps:$4 sm:$0xff]   ;;  %v7737_v12 = vld [vmem:[#allocation10 + $0x168] ss:$36 sps:$4 sm:$0xff]   ;;  %v7738_v13 = vld [vmem:[#allocation10 + $0x1b4] ss:$36 sps:$4 sm:$0xff]  }
  0xd8   : > { %v7740_v14 = vld [vmem:[#allocation10 + $0x1b0] ss:$36 sps:$4 sm:$0xff]   ;;  %v7741_v15 = vld [vmem:[#allocation10 + $0x1fc] ss:$36 sps:$4 sm:$0xff]   ;;  %v471_v18 = vld [vmem:[%s8665_s13 + $0x8] sm:$0xff]  ;;  %s7608_s27 = smul.u32 1152, %s8654_s17 }
  0xd9   : > { %v7743_v16 = vld [vmem:[#allocation10 + $0x1f8] ss:$36 sps:$4 sm:$0xff]   ;;  %v470_v17 = vld [vmem:[%s8665_s13] sm:$0xff]  ;;  %v479_v20 = vld [vmem:[%s8665_s13 + $0x48] sm:$0xff]  ;;  %s7609_s12 = smul.u32 18432, %s8292_s24  ;;  %s9775_s10 = sld [smem:[#allocation22_spill]] }
  0xda   : > { %1097 = vmatpush1.bf16.msra.mxu0 %v7725_v4  ;;  %7025 = vmatpush1.bf16.msra.mxu1 %v7725_v4  ;;  %v478_v19 = vld [vmem:[%s8665_s13 + $0x40] sm:$0xff]  ;;  %v7746_v21 = vld [vmem:[#allocation10 + $0xc] ss:$36 sps:$4 sm:$0xff]   ;;  %v7749_v22 = vld [vmem:[#allocation10 + $0x14] ss:$36 sps:$4 sm:$0xff]   ;;  %v8687_v23 = vpack.c.bf16 %v471_v18, %v470_v17  ;;  %s9360_s30 = scalar_lea.vmem [#allocation13], %s7608_s27 }
  0xdb   : > { %1098 = vmatprep.subr.bf16.mxu0 %v7726_v5  ;;  %7018 = vmatprep.subr.bf16.mxu1 %v7726_v5  ;;  %v8689_v24 = vpack.c.bf16 %v479_v20, %v478_v19  ;;  %v7744_v25 = vld [vmem:[#allocation10 + $0x8] ss:$36 sps:$4 sm:$0xff]   ;;  %v7747_v26 = vld [vmem:[#allocation10 + $0x10] ss:$36 sps:$4 sm:$0xff]   ;;  %v7752_v27 = vld [vmem:[#allocation10 + $0x5c] ss:$36 sps:$4 sm:$0xff]  }
  0xdc   : > { %v7750_v28 = vld [vmem:[#allocation10 + $0x58] ss:$36 sps:$4 sm:$0xff]   ;;  %v480_v32 = vld [vmem:[%s8665_s13 + $0x50] sm:$0xff]  ;;  %v7755_v34 = vld [vmem:[#allocation10 + $0xa4] ss:$36 sps:$4 sm:$0xff]   ;;  %s6070_s20 = sshll.u32 %s9360_s30, 4  ;;  %s9622_s20 = int_to_ptr.vmem [resolvable:$true] %s6070_s20 }
  0xdd   : > { %v473_v30 = vld [vmem:[%s8665_s13 + $0x18] sm:$0xff]  ;;  %v7756_v35 = vld [vmem:[#allocation10 + $0x50] ss:$36 sps:$4 sm:$0xff]   ;;  %v7753_v39 = vld [vmem:[#allocation10 + $0xa0] ss:$36 sps:$4 sm:$0xff]   ;;  %s9776_s6 = sld [smem:[#allocation40_spill]] }
  0xde   : > { %1099 = vmatpush1.bf16.msra.mxu0 %v7728_v6  ;;  %7026 = vmatpush1.bf16.msra.mxu1 %v7728_v6  ;;  %v7758_v31 = vld [vmem:[#allocation10 + $0x54] ss:$36 sps:$4 sm:$0xff]   ;;  %v7770_v36 = vld [vmem:[#allocation10 + $0x9c] ss:$36 sps:$4 sm:$0xff]   ;;  %v8699_v37 = vpack.c.bf16 %v473_v30, %v472_v29  ;;  %v7761_v40 = vld [vmem:[#allocation10 + $0xec] ss:$36 sps:$4 sm:$0xff]  }
  0xdf   : > { %1100 = vmatprep.subr.bf16.mxu0 %v7729_v7  ;;  %7019 = vmatprep.subr.bf16.mxu1 %v7729_v7  ;;  %v481_v33 = vld [vmem:[%s8665_s13 + $0x58] sm:$0xff]  ;;  %v7759_v41 = vld [vmem:[#allocation10 + $0xe8] ss:$36 sps:$4 sm:$0xff]   ;;  %v474_v42 = vld [vmem:[%s8665_s13 + $0x20] sm:$0xff]  ;;  %s6054_s1 = scalar_lea.sflag [#allocation4], %s8654_s17  ;;  %s8206_s26 = scalar_lea.vmem %s9622_s20, 18432 }
  0xe0   : > { %v8701_v38 = vpack.c.bf16 %v481_v33, %v480_v32  ;;  %v7768_v43 = vld [vmem:[#allocation10 + $0x98] ss:$36 sps:$4 sm:$0xff]   ;;  %v475_v44 = vld [vmem:[%s8665_s13 + $0x28] sm:$0xff]  ;;  %v482_v46 = vld [vmem:[%s8665_s13 + $0x60] sm:$0xff]  ;;  %p8207_p11 = scmp.ne.s32.totalorder %s9622_s20, %s8206_s26  ;;  %p9777_p10 = scmp.ne.s32.totalorder %s9775_s10, 0 }
  0xe1   : > { %v7780_v45 = vld [vmem:[#allocation10 + $0xe4] ss:$36 sps:$4 sm:$0xff]   ;;  %v7764_v48 = vld [vmem:[#allocation10 + $0x134] ss:$36 sps:$4 sm:$0xff]   ;;  %v8711_v50 = vpack.c.bf16 %v475_v44, %v474_v42  ;;  %v7767_v53 = vld [vmem:[#allocation10 + $0x17c] ss:$36 sps:$4 sm:$0xff]  }
  0xe2   : > { %1101 = vmatpush1.bf16.msra.mxu0 %v7731_v8  ;;  %7027 = vmatpush1.bf16.msra.mxu1 %v7731_v8  ;;  %v483_v47 = vld [vmem:[%s8665_s13 + $0x68] sm:$0xff]  ;;  %v7778_v49 = vld [vmem:[#allocation10 + $0xe0] ss:$36 sps:$4 sm:$0xff]   ;;  %v7762_v52 = vld [vmem:[#allocation10 + $0x130] ss:$36 sps:$4 sm:$0xff]   ;;  %p8208_p1 = pnand %p8207_p11, %p9777_p10  ;;  %s8313_s18 = smov [#allocation13]  }
  0xe3   : > { %1102 = vmatprep.subr.bf16.mxu0 %v7732_v9  ;;  %7020 = vmatprep.subr.bf16.mxu1 %v7732_v9  ;;  %v8713_v51 = vpack.c.bf16 %v483_v47, %v482_v46  ;;  %v7765_v54 = vld [vmem:[#allocation10 + $0x178] ss:$36 sps:$4 sm:$0xff]   ;;  %v476_v55 = vld [vmem:[%s8665_s13 + $0x30] sm:$0xff]  ;;  %v7781_v60 = vld [vmem:[#allocation10 + $0x128] ss:$36 sps:$4 sm:$0xff]   ;;  %s9620_s15 = scalar_lea.hbm %s9776_s6, %s7609_s12  ;;  %s8210_s8 = sshll.u32 %s8313_s18, 4  ;;  %s8211_s8 = int_to_ptr.vmem [resolvable:$false] %s8210_s8 }
  0xe4   : > { %v477_v56 = vld [vmem:[%s8665_s13 + $0x38] sm:$0xff]  ;;  %v484_v57 = vld [vmem:[%s8665_s13 + $0x70] sm:$0xff]  ;;  %v7773_v62 = vld [vmem:[#allocation10 + $0x1c4] ss:$36 sps:$4 sm:$0xff]   ;;  %p8209_p0 = pneg %p8208_p1  ;;  %s8212_s16 = scalar_lea.vmem %s8211_s8, 36864 }
  0xe5   : > { %v485_v58 = vld [vmem:[%s8665_s13 + $0x78] sm:$0xff]  ;;  %v7783_v59 = vld [vmem:[#allocation10 + $0x12c] ss:$36 sps:$4 sm:$0xff]   ;;  %v8723_v63 = vpack.c.bf16 %v477_v56, %v476_v55  ;;  %v7771_v2 = vld [vmem:[#allocation10 + $0x1c0] ss:$36 sps:$4 sm:$0xff]   ;;  %p8213_p13 = scmp.lt.s32.totalorder %s9622_s20, %s8211_s8  ;;  %p8214_p5 = scmp.lt.s32.totalorder %s8212_s16, %s8206_s26 }
  0xe6   : > { %1103 = vmatpush1.bf16.msra.mxu0 %v7734_v10  ;;  %7028 = vmatpush1.bf16.msra.mxu1 %v7734_v10  ;;  %v7787_v61 = vld [vmem:[#allocation10 + $0x174] ss:$36 sps:$4 sm:$0xff]   ;;  %v8725_v1 = vpack.c.bf16 %v485_v58, %v484_v57  ;;  %v7776_v3 = vld [vmem:[#allocation10 + $0x20c] ss:$36 sps:$4 sm:$0xff]   ;;  %v7791_v5 = vld [vmem:[#allocation10 + $0x1bc] ss:$36 sps:$4 sm:$0xff]  }
  0xe7   : > { %1104 = vmatprep.subr.bf16.mxu0 %v7735_v11  ;;  %7021 = vmatprep.subr.bf16.mxu1 %v7735_v11  ;;  %v7785_v4 = vld [vmem:[#allocation10 + $0x170] ss:$36 sps:$4 sm:$0xff]   ;;  %v7774_v6 = vld [vmem:[#allocation10 + $0x208] ss:$36 sps:$4 sm:$0xff]   ;;  %v486_v7 = vld [vmem:[%s8665_s13 + $0x80] sm:$0xff]  ;;  %p8215_p3 = por %p8214_p5, %p8213_p13 }
  0xe8   : > { %v487_v8 = vld [vmem:[%s8665_s13 + $0x88] sm:$0xff]  ;;  %v7777_v9 = vld [vmem:[#allocation10 + $0x20] ss:$36 sps:$4 sm:$0xff]   ;;  %v7789_v10 = vld [vmem:[#allocation10 + $0x1b8] ss:$36 sps:$4 sm:$0xff]  }
  0xe9   : > { %v8733_v11 = vpack.c.bf16 %v487_v8, %v486_v7  ;;  %v7793_v17 = vld [vmem:[#allocation10 + $0x200] ss:$36 sps:$4 sm:$0xff]   ;;  %v7792_v20 = vld [vmem:[#allocation10 + $0xf8] ss:$36 sps:$4 sm:$0xff]   ;;  %v7807_v30 = vld [vmem:[#allocation10 + $0x1d0] ss:$36 sps:$4 sm:$0xff]   ;;  %p8216_p6 = pnand %p8215_p3, %p8209_p0 }
  0xea   : > { %1105 = vmatpush1.bf16.msra.mxu0 %v7737_v12  ;;  %7029 = vmatpush1.bf16.msra.mxu1 %v7737_v12  ;;  %v7784_v12 = vld [vmem:[#allocation10 + $0x68] ss:$36 sps:$4 sm:$0xff]   ;;  %v7798_v18 = vld [vmem:[#allocation10 + $0x1c] ss:$36 sps:$4 sm:$0xff]   ;;  %v7810_v55 = vld [vmem:[#allocation10 + $0xf4] ss:$36 sps:$4 sm:$0xff]  }
  0xeb   : > { %1106 = vmatprep.subr.bf16.mxu0 %v7738_v13  ;;  %7022 = vmatprep.subr.bf16.mxu1 %v7738_v13  ;;  %v7795_v13 = vld [vmem:[#allocation10 + $0x204] ss:$36 sps:$4 sm:$0xff]   ;;  %v493_v29 = vld [vmem:[%s8665_s13 + $0xb8] sm:$0xff]  ;;  %v7808_v56 = vld [vmem:[#allocation10 + $0xf0] ss:$36 sps:$4 sm:$0xff]  }
  0xec   : > { %v7811_v32 = vld [vmem:[#allocation10 + $0x218] ss:$36 sps:$4 sm:$0xff]   ;;  %v494_v33 = vld [vmem:[%s8665_s13 + $0xc0] sm:$0xff]  ;;  %v7818_v7 = vld [vmem:[#allocation8 + $0x48] ss:$36 sps:$4 sm:$0xff]  }
  0xed   : > { %v498_v42 = vld [vmem:[%s8665_s13 + $0xe0] sm:$0xff]  ;;  %v501_v46 = vld [vmem:[%s8665_s13 + $0xf8] sm:$0xff] }
  0xee   : > { %1107 = vmatpush1.bf16.msra.mxu0 %v7740_v14  ;;  %7030 = vmatpush1.bf16.msra.mxu1 %v7740_v14  ;;  %v488_v14 = vld [vmem:[%s8665_s13 + $0x90] sm:$0xff]  ;;  %v7814_v57 = vld [vmem:[#allocation10 + $0x13c] ss:$36 sps:$4 sm:$0xff]  }
  0xef   : > { %1108 = vmatprep.subr.bf16.mxu0 %v7741_v15  ;;  %7023 = vmatprep.subr.bf16.mxu1 %v7741_v15  ;;  %v489_v15 = vld [vmem:[%s8665_s13 + $0x98] sm:$0xff] }
  0xf0   : > { %v8741_v19 = vpack.c.bf16 %v489_v15, %v488_v14  ;;  %v7812_v58 = vld [vmem:[#allocation10 + $0x138] ss:$36 sps:$4 sm:$0xff]   ;;  %v7833_v14 = vld [vmem:[#allocation8 + $0x120] ss:$36 sps:$4 sm:$0xff]   ;;  %v7838_v15 = vld [vmem:[#allocation8 + $0x16c] ss:$36 sps:$4 sm:$0xff]  }
  0xf1   : > { %v7826_v8 = vld [vmem:[#allocation8 + $0x94] ss:$36 sps:$4 sm:$0xff]  }
  0xf2   : > { %1109 = vmatpush1.bf16.msra.mxu0 %v7743_v16  ;;  %7031 = vmatpush1.bf16.msra.mxu1 %v7743_v16  ;;  %v7788_v16 = vld [vmem:[#allocation10 + $0xb0] ss:$36 sps:$4 sm:$0xff]  }
  0xf3   : > { %1287 = vmatprep.subr.bf16.mxu1 %v7746_v21  ;;  %1480 = vmatprep.subr.bf16.mxu0 %v7749_v22  ;;  %v490_v21 = vld [vmem:[%s8665_s13 + $0xa0] sm:$0xff]  ;;  %v491_v22 = vld [vmem:[%s8665_s13 + $0xa8] sm:$0xff] }
  0xf5   : > { %1127 = vmatmul.mubr.bf16.vlgmr.msra.gmra.mrb[0].mxu0 %v8687_v23  ;;  %1167 = vmatmul.mubr.bf16.vlgmr.msra.gmra.mrb[0].mxu1 %v8689_v24 }
  0xf6   : > { %1288 = vmatpush1.bf16.msra.mxu1 %v7744_v25  ;;  %1481 = vmatpush1.bf16.msra.mxu0 %v7747_v26  ;;  %v7799_v25 = vld [vmem:[#allocation10 + $0x140] ss:$36 sps:$4 sm:$0xff]   ;;  %v8749_v26 = vpack.c.bf16 %v491_v22, %v490_v21  ;;  %v7845_v21 = vld [vmem:[#allocation8 + $0x1f8] ss:$36 sps:$4 sm:$0xff]  }
  0xf7   : > { %1482 = vmatprep.subr.bf16.mxu0 %v7752_v27  ;;  %1136 = vmatprep.mubr.bf16.mxu0 %v8312_v0  ;;  %v7803_v27 = vld [vmem:[#allocation10 + $0x188] ss:$36 sps:$4 sm:$0xff]   ;;  %v7853_v22 = vld [vmem:[#allocation8 + $0x14] ss:$36 sps:$4 sm:$0xff]  }
  0xf8   : > { %1176 = vmatprep.mubr.bf16.mxu1 %v8312_v0  ;;  %1289 = vmatprep.subr.bf16.mxu1 %v7758_v31 }
  0xfa   : > { %1483 = vmatpush1.bf16.msra.mxu0 %v7750_v28  ;;  %1290 = vmatpush1.bf16.msra.mxu1 %v7756_v35  ;;  %v492_v28 = vld [vmem:[%s8665_s13 + $0xb0] sm:$0xff]  ;;  %v7817_v35 = vld [vmem:[#allocation8 + $0x4] ss:$36 sps:$4 sm:$0xff]  }
  0xfb   : > { %1484 = vmatprep.subr.bf16.mxu0 %v7755_v34  ;;  %1291 = vmatprep.subr.bf16.mxu1 %v7770_v36  ;;  %v8757_v31 = vpack.c.bf16 %v493_v29, %v492_v28  ;;  %v495_v34 = vld [vmem:[%s8665_s13 + $0xc8] sm:$0xff] }
  0xfc   : > { %v8765_v36 = vpack.c.bf16 %v495_v34, %v494_v33 }
  0xfd   : > { %1137 = vmatmul.mubr.bf16.gmra.mrb[4].mxu0 %v8699_v37  ;;  %1177 = vmatmul.mubr.bf16.gmra.mrb[4].mxu1 %v8701_v38 }
  0xfe   : > { %1485 = vmatpush1.bf16.msra.mxu0 %v7753_v39  ;;  %1146 = vmatprep.mubr.bf16.mxu0 %v8312_v0  ;;  %v496_v39 = vld [vmem:[%s8665_s13 + $0xd0] sm:$0xff] }
  0xff   : > { %1486 = vmatprep.subr.bf16.mxu0 %v7761_v40  ;;  %1186 = vmatprep.mubr.bf16.mxu1 %v8312_v0  ;;  %v497_v40 = vld [vmem:[%s8665_s13 + $0xd8] sm:$0xff] }
 0x100   : > { %1292 = vmatpush1.bf16.msra.mxu1 %v7768_v43  ;;  %v499_v43 = vld [vmem:[%s8665_s13 + $0xe8] sm:$0xff] }
 0x101   : > { %1293 = vmatprep.subr.bf16.mxu1 %v7780_v45  ;;  %v8781_v44 = vpack.c.bf16 %v499_v43, %v498_v42  ;;  %v500_v45 = vld [vmem:[%s8665_s13 + $0xf0] sm:$0xff] }
 0x102   : > { %1487 = vmatpush1.bf16.msra.mxu0 %v7759_v41  ;;  %v8773_v41 = vpack.c.bf16 %v497_v40, %v496_v39  ;;  %v8789_v47 = vpack.c.bf16 %v501_v46, %v500_v45  ;;  %v7848_v40 = vld [vmem:[#allocation8 + $0x8] ss:$36 sps:$4 sm:$0xff]   ;;  %v7851_v42 = vld [vmem:[#allocation8 + $0x10] ss:$36 sps:$4 sm:$0xff]   ;;  %v7859_v46 = vld [vmem:[#allocation8 + $0x5c] ss:$36 sps:$4 sm:$0xff]  }
 0x103   : > { %1488 = vmatprep.subr.bf16.mxu0 %v7764_v48  ;;  %v7796_v48 = vld [vmem:[#allocation10 + $0x18] ss:$36 sps:$4 sm:$0xff]  }
 0x104   : > { %1294 = vmatpush1.bf16.msra.mxu1 %v7778_v49  ;;  %v7802_v49 = vld [vmem:[#allocation10 + $0x64] ss:$36 sps:$4 sm:$0xff]   ;;  %v7856_v45 = vld [vmem:[#allocation8 + $0x54] ss:$36 sps:$4 sm:$0xff]  }
 0x105   : > { %1147 = vmatmul.mubr.bf16.gmra.mrb[8].mxu0 %v8711_v50  ;;  %1187 = vmatmul.mubr.bf16.gmra.mrb[8].mxu1 %v8713_v51 }
 0x106   : > { %1489 = vmatpush1.bf16.msra.mxu0 %v7762_v52  ;;  %1156 = vmatprep.mubr.bf16.mxu0 %v8312_v0  ;;  %v7800_v52 = vld [vmem:[#allocation10 + $0x60] ss:$36 sps:$4 sm:$0xff]  }
 0x107   : > { %1490 = vmatprep.subr.bf16.mxu0 %v7767_v53  ;;  %1196 = vmatprep.mubr.bf16.mxu1 %v8312_v0  ;;  %v7806_v53 = vld [vmem:[#allocation10 + $0xac] ss:$36 sps:$4 sm:$0xff]  }
 0x108   : > { %1295 = vmatprep.subr.bf16.mxu1 %v7783_v59  ;;  %v7823_v59 = vld [vmem:[#allocation10 + $0x184] ss:$36 sps:$4 sm:$0xff]  }
 0x109   : > { %1296 = vmatpush1.bf16.msra.mxu1 %v7781_v60  ;;  %v7821_v60 = vld [vmem:[#allocation10 + $0x180] ss:$36 sps:$4 sm:$0xff]  }
 0x10a   : > { %1491 = vmatpush1.bf16.msra.mxu0 %v7765_v54  ;;  %1297 = vmatprep.subr.bf16.mxu1 %v7787_v61  ;;  %v7804_v54 = vld [vmem:[#allocation10 + $0xa8] ss:$36 sps:$4 sm:$0xff]  }
 0x10b   : > { %1492 = vmatprep.subr.bf16.mxu0 %v7773_v62  ;;  %v7832_v61 = vld [vmem:[#allocation10 + $0x1cc] ss:$36 sps:$4 sm:$0xff]  }
 0x10c   : > { %v7830_v62 = vld [vmem:[#allocation10 + $0x1c8] ss:$36 sps:$4 sm:$0xff]  }
 0x10d   : > { %1157 = vmatmul.mubr.bf16.gmra.mrb[12].mxu0 %v8723_v63  ;;  %1197 = vmatmul.mubr.bf16.gmra.mrb[12].mxu1 %v8725_v1 }
 0x10e   : > { %1493 = vmatpush1.bf16.msra.mxu0 %v7771_v2  ;;  %1206 = vmatprep.mubr.bf16.mxu1 %v8312_v0  ;;  %v7841_v2 = vld [vmem:[#allocation10 + $0x214] ss:$36 sps:$4 sm:$0xff]  }
 0x10f   : > { %1494 = vmatprep.subr.bf16.mxu0 %v7776_v3  ;;  %1512 = vmatprep.mubr.bf16.mxu0 %v8312_v0  ;;  %v7839_v3 = vld [vmem:[#allocation10 + $0x210] ss:$36 sps:$4 sm:$0xff]  }
 0x110   : > { %1298 = vmatpush1.bf16.msra.mxu1 %v7785_v4  ;;  %v7850_v4 = vld [vmem:[#allocation8 + $0xc] ss:$36 sps:$4 sm:$0xff]  }
 0x111   : > { %1299 = vmatprep.subr.bf16.mxu1 %v7791_v5  ;;  %v7815_v5 = vld [vmem:[#allocation8] ss:$36 sps:$4 sm:$0xff]  }
 0x112   : > { %1495 = vmatpush1.bf16.msra.mxu0 %v7774_v6  ;;  %v7820_v6 = vld [vmem:[#allocation8 + $0x4c] ss:$36 sps:$4 sm:$0xff]  }
 0x113   : > { %6872 = vmatprep.subr.bf16.mxu0 %v7777_v9 }
 0x114   : > { %1300 = vmatpush1.bf16.msra.mxu1 %v7789_v10  ;;  %v7829_v10 = vld [vmem:[#allocation8 + $0xdc] ss:$36 sps:$4 sm:$0xff]  }
 0x115   : > { %1207 = vmatmul.mubr.bf16.gmra.mrb[16].mxu1 %v8733_v11  ;;  %1513 = vmatmul.mubr.bf16.vlgmr.msra.gmra.mrb[16].mxu0 %v8687_v23 }
 0x116   : > { %6873 = vmatpush3.bf16.msra.mxu0 %v7777_v9  ;;  %1216 = vmatprep.mubr.bf16.mxu1 %v8312_v0  ;;  %v7824_v9 = vld [vmem:[#allocation8 + $0x90] ss:$36 sps:$4 sm:$0xff]  }
 0x117   : > { %1522 = vmatprep.mubr.bf16.mxu0 %v8312_v0  ;;  %6874 = vmatprep.subr.bf16.mxu0 %v7784_v12 }
 0x118   : > { %1301 = vmatprep.subr.bf16.mxu1 %v7795_v13  ;;  %v7835_v13 = vld [vmem:[#allocation8 + $0x124] ss:$36 sps:$4 sm:$0xff]  }
 0x119   : > { %1302 = vmatpush1.bf16.msra.mxu1 %v7793_v17  ;;  %v7844_v17 = vld [vmem:[#allocation8 + $0x1b4] ss:$36 sps:$4 sm:$0xff]  }
 0x11a   : > { %6875 = vmatpush3.bf16.msra.mxu0 %v7784_v12  ;;  %1673 = vmatprep.subr.bf16.mxu1 %v7798_v18  ;;  %v7827_v12 = vld [vmem:[#allocation8 + $0xd8] ss:$36 sps:$4 sm:$0xff]   ;;  %v7842_v18 = vld [vmem:[#allocation8 + $0x1b0] ss:$36 sps:$4 sm:$0xff]  }
 0x11b   : > { %6876 = vmatprep.subr.bf16.mxu0 %v7788_v16 }
 0x11d   : > { %1217 = vmatmul.mubr.bf16.gmra.mrb[20].mxu1 %v8741_v19  ;;  %1523 = vmatmul.mubr.bf16.gmra.mrb[20].mxu0 %v8699_v37 }
 0x11e   : > { %1226 = vmatprep.mubr.bf16.mxu1 %v8312_v0  ;;  %1532 = vmatprep.mubr.bf16.mxu0 %v8312_v0 }
 0x11f   : > { %6877 = vmatpush3.bf16.msra.mxu0 %v7788_v16  ;;  %v7836_v16 = vld [vmem:[#allocation8 + $0x168] ss:$36 sps:$4 sm:$0xff]  }
 0x120   : > { %6878 = vmatprep.subr.bf16.mxu0 %v7792_v20 }
 0x123   : > { %6879 = vmatpush3.bf16.msra.mxu0 %v7792_v20  ;;  %v7847_v20 = vld [vmem:[#allocation8 + $0x1fc] ss:$36 sps:$4 sm:$0xff]  }
 0x124   : > { %6880 = vmatprep.subr.bf16.mxu0 %v7799_v25 }
 0x125   : > { %1227 = vmatmul.mubr.bf16.gmra.mrb[24].mxu1 %v8749_v26  ;;  %1533 = vmatmul.mubr.bf16.gmra.mrb[24].mxu0 %v8711_v50 }
 0x126   : > { %1236 = vmatprep.mubr.bf16.mxu1 %v8312_v0  ;;  %1542 = vmatprep.mubr.bf16.mxu0 %v8312_v0 }
 0x127   : > { %6881 = vmatpush3.bf16.msra.mxu0 %v7799_v25 }
 0x128   : > { %6882 = vmatprep.subr.bf16.mxu0 %v7803_v27 }
 0x12b   : > { %6883 = vmatpush3.bf16.msra.mxu0 %v7803_v27 }
 0x12c   : > { %6884 = vmatprep.subr.bf16.mxu0 %v7807_v30 }
 0x12d   : > { %1237 = vmatmul.mubr.bf16.gmra.mrb[28].mxu1 %v8757_v31  ;;  %1543 = vmatmul.mubr.bf16.gmra.mrb[28].mxu0 %v8723_v63 }
 0x12e   : > { %1246 = vmatprep.mubr.bf16.mxu1 %v8312_v0  ;;  %1552 = vmatprep.mubr.bf16.mxu0 %v8312_v0 }
 0x12f   : > { %6885 = vmatpush3.bf16.msra.mxu0 %v7807_v30  ;;  %v422_v30 = vld [vmem:[%s8658_s29] sm:$0xff] }
 0x130   : > { %6886 = vmatprep.subr.bf16.mxu0 %v7811_v32 }
 0x133   : > { %6887 = vmatpush3.bf16.msra.mxu0 %v7811_v32  ;;  %v423_v32 = vld [vmem:[%s8658_s29 + $0x8] sm:$0xff] }
 0x134   : > { %2395 = vmatprep.subr.bf16.mxu0 %v7817_v35  ;;  %v8873_v35 = vpack.c.bf16 %v423_v32, %v422_v30  ;;  %v7886_v32 = vld [vmem:[#allocation8 + $0x1bc] ss:$36 sps:$4 sm:$0xff]  }
 0x135   : > { %1247 = vmatmul.mubr.bf16.gmra.mrb[32].mxu1 %v8765_v36  ;;  %1553 = vmatmul.mubr.bf16.gmra.mrb[32].mxu0 %v8689_v24 }
 0x136   : > { %1256 = vmatprep.mubr.bf16.mxu1 %v8312_v0  ;;  %1562 = vmatprep.mubr.bf16.mxu0 %v8312_v0 }
 0x13d   : > { %1257 = vmatmul.mubr.bf16.gmra.mrb[36].mxu1 %v8773_v41  ;;  %1563 = vmatmul.mubr.bf16.gmra.mrb[36].mxu0 %v8701_v38 }
 0x13e   : > { %1266 = vmatprep.mubr.bf16.mxu1 %v8312_v0  ;;  %1572 = vmatprep.mubr.bf16.mxu0 %v8312_v0 }
 0x145   : > { %1267 = vmatmul.mubr.bf16.gmra.mrb[40].mxu1 %v8781_v44  ;;  %1573 = vmatmul.mubr.bf16.gmra.mrb[40].mxu0 %v8713_v51 }
 0x146   : > { %1276 = vmatprep.mubr.bf16.mxu1 %v8312_v0  ;;  %1582 = vmatprep.mubr.bf16.mxu0 %v8312_v0 }
 0x14d   : > { %1277 = vmatmul.mubr.bf16.gmra.mrb[44].mxu1 %v8789_v47  ;;  %1583 = vmatmul.mubr.bf16.gmra.mrb[44].mxu0 %v8725_v1 }
 0x14e   : > { %1319 = vmatprep.mubr.bf16.mxu1 %v8312_v0  ;;  %1592 = vmatprep.mubr.bf16.mxu0 %v8312_v0 }
 0x155   : > { %1320 = vmatmul.mubr.bf16.vlgmr.msra.gmra.mrb[48].mxu1 %v8687_v23  ;;  %1593 = vmatmul.mubr.bf16.gmra.mrb[48].mxu0 %v8733_v11 }
 0x156   : > { %1674 = vmatpush1.bf16.msra.mxu1 %v7796_v48  ;;  %1329 = vmatprep.mubr.bf16.mxu1 %v8312_v0  ;;  %v424_v48 = vld [vmem:[%s8658_s29 + $0x10] sm:$0xff] }
 0x157   : > { %1602 = vmatprep.mubr.bf16.mxu0 %v8312_v0  ;;  %1675 = vmatprep.subr.bf16.mxu1 %v7802_v49  ;;  %v425_v49 = vld [vmem:[%s8658_s29 + $0x18] sm:$0xff] }
 0x15a   : > { %1676 = vmatpush1.bf16.msra.mxu1 %v7800_v52  ;;  %v7854_v52 = vld [vmem:[#allocation8 + $0x50] ss:$36 sps:$4 sm:$0xff]  }
 0x15b   : > { %1677 = vmatprep.subr.bf16.mxu1 %v7806_v53  ;;  %v7857_v53 = vld [vmem:[#allocation8 + $0x58] ss:$36 sps:$4 sm:$0xff]  }
 0x15d   : > { %1330 = vmatmul.mubr.bf16.gmra.mrb[52].mxu1 %v8699_v37  ;;  %1603 = vmatmul.mubr.bf16.gmra.mrb[52].mxu0 %v8741_v19 }
 0x15e   : > { %1339 = vmatprep.mubr.bf16.mxu1 %v8312_v0  ;;  %1612 = vmatprep.mubr.bf16.mxu0 %v8312_v0 }
 0x15f   : > { %1678 = vmatpush1.bf16.msra.mxu1 %v7804_v54  ;;  %v7862_v54 = vld [vmem:[#allocation8 + $0x9c] ss:$36 sps:$4 sm:$0xff]  }
 0x160   : > { %1679 = vmatprep.subr.bf16.mxu1 %v7810_v55  ;;  %v7865_v55 = vld [vmem:[#allocation8 + $0xa4] ss:$36 sps:$4 sm:$0xff]  }
 0x163   : > { %1680 = vmatpush1.bf16.msra.mxu1 %v7808_v56 }
 0x164   : > { %1681 = vmatprep.subr.bf16.mxu1 %v7814_v57 }
 0x165   : > { %1340 = vmatmul.mubr.bf16.gmra.mrb[56].mxu1 %v8711_v50  ;;  %1613 = vmatmul.mubr.bf16.gmra.mrb[56].mxu0 %v8749_v26 }
 0x166   : > { %1349 = vmatprep.mubr.bf16.mxu1 %v8312_v0  ;;  %1622 = vmatprep.mubr.bf16.mxu0 %v8312_v0 }
 0x167   : > { %1682 = vmatpush1.bf16.msra.mxu1 %v7812_v58 }
 0x168   : > { %1683 = vmatprep.subr.bf16.mxu1 %v7823_v59 }
 0x16b   : > { %1684 = vmatpush1.bf16.msra.mxu1 %v7821_v60  ;;  %v7860_v60 = vld [vmem:[#allocation8 + $0x98] ss:$36 sps:$4 sm:$0xff]  }
 0x16c   : > { %1685 = vmatprep.subr.bf16.mxu1 %v7832_v61  ;;  %v7863_v61 = vld [vmem:[#allocation8 + $0xa0] ss:$36 sps:$4 sm:$0xff]  }
 0x16d   : > { %1350 = vmatmul.mubr.bf16.gmra.mrb[60].mxu1 %v8723_v63  ;;  %1623 = vmatmul.mubr.bf16.gmra.mrb[60].mxu0 %v8757_v31 }
 0x16e   : > { %1359 = vmatprep.mubr.bf16.mxu1 %v8312_v0  ;;  %1632 = vmatprep.mubr.bf16.mxu0 %v8312_v0 }
 0x16f   : > { %1686 = vmatpush1.bf16.msra.mxu1 %v7830_v62  ;;  %v7868_v62 = vld [vmem:[#allocation8 + $0xe4] ss:$36 sps:$4 sm:$0xff]  }
 0x170   : > { %1687 = vmatprep.subr.bf16.mxu1 %v7841_v2  ;;  %v7871_v2 = vld [vmem:[#allocation8 + $0xec] ss:$36 sps:$4 sm:$0xff]  }
 0x173   : > { %1688 = vmatpush1.bf16.msra.mxu1 %v7839_v3  ;;  %v426_v3 = vld [vmem:[%s8658_s29 + $0x20] sm:$0xff] }
 0x174   : > { %2588 = vmatprep.subr.bf16.mxu1 %v7850_v4  ;;  %v427_v4 = vld [vmem:[%s8658_s29 + $0x28] sm:$0xff] }
 0x175   : > { %1360 = vmatmul.mubr.bf16.gmra.mrb[64].mxu1 %v8689_v24  ;;  %1633 = vmatmul.mubr.bf16.gmra.mrb[64].mxu0 %v8765_v36 }
 0x176   : > { %1369 = vmatprep.mubr.bf16.mxu1 %v8312_v0  ;;  %1642 = vmatprep.mubr.bf16.mxu0 %v8312_v0 }
 0x17d   : > { %1370 = vmatmul.mubr.bf16.gmra.mrb[68].mxu1 %v8701_v38  ;;  %1643 = vmatmul.mubr.bf16.gmra.mrb[68].mxu0 %v8773_v41 }
 0x17e   : > { %1379 = vmatprep.mubr.bf16.mxu1 %v8312_v0  ;;  %1652 = vmatprep.mubr.bf16.mxu0 %v8312_v0 }
 0x185   : > { %1380 = vmatmul.mubr.bf16.gmra.mrb[72].mxu1 %v8713_v51  ;;  %1653 = vmatmul.mubr.bf16.gmra.mrb[72].mxu0 %v8781_v44 }
 0x186   : > { %1389 = vmatprep.mubr.bf16.mxu1 %v8312_v0  ;;  %1662 = vmatprep.mubr.bf16.mxu0 %v8312_v0 }
 0x18d   : > { %1390 = vmatmul.mubr.bf16.gmra.mrb[76].mxu1 %v8725_v1  ;;  %1663 = vmatmul.mubr.bf16.gmra.mrb[76].mxu0 %v8789_v47 }
 0x18e   : > { %1399 = vmatprep.mubr.bf16.mxu1 %v8312_v0  ;;  %6888 = vmatprep.mubr.bf16.mxu0 %v8687_v23 }
 0x195   : > { %1400 = vmatmul.mubr.bf16.gmra.mrb[80].mxu1 %v8733_v11  ;;  %6889 = vmatmul.mubr.bf16.vlgmr.msra.gmra.mrb[80].mxu0 %v8699_v37 }
 0x196   : > { %2396 = vmatpush1.bf16.msra.mxu0 %v7815_v5  ;;  %1409 = vmatprep.mubr.bf16.mxu1 %v8312_v0  ;;  %v7866_v5 = vld [vmem:[#allocation8 + $0xe0] ss:$36 sps:$4 sm:$0xff]  }
 0x197   : > { %6892 = vmatprep.mubr.bf16.mxu0 %v8711_v50  ;;  %2397 = vmatprep.subr.bf16.mxu0 %v7820_v6  ;;  %v7869_v6 = vld [vmem:[#allocation8 + $0xe8] ss:$36 sps:$4 sm:$0xff]  }
 0x19a   : > { %2398 = vmatpush1.bf16.msra.mxu0 %v7818_v7 }
 0x19b   : > { %2399 = vmatprep.subr.bf16.mxu0 %v7826_v8  ;;  %v7874_v8 = vld [vmem:[#allocation8 + $0x12c] ss:$36 sps:$4 sm:$0xff]  }
 0x19d   : > { %1410 = vmatmul.mubr.bf16.gmra.mrb[84].mxu1 %v8741_v19  ;;  %6893 = vmatmul.mubr.bf16.gmra.mrb[84].mxu0 %v8723_v63 }
 0x19e   : > { %1419 = vmatprep.mubr.bf16.mxu1 %v8312_v0  ;;  %6896 = vmatprep.mubr.bf16.mxu0 %v8689_v24 }
 0x19f   : > { %2400 = vmatpush1.bf16.msra.mxu0 %v7824_v9  ;;  %v7877_v9 = vld [vmem:[#allocation8 + $0x134] ss:$36 sps:$4 sm:$0xff]  }
 0x1a0   : > { %2401 = vmatprep.subr.bf16.mxu0 %v7829_v10 }
 0x1a3   : > { %2402 = vmatpush1.bf16.msra.mxu0 %v7827_v12 }
 0x1a4   : > { %2403 = vmatprep.subr.bf16.mxu0 %v7835_v13 }
 0x1a5   : > { %1420 = vmatmul.mubr.bf16.gmra.mrb[88].mxu1 %v8749_v26  ;;  %6897 = vmatmul.mubr.bf16.gmra.mrb[88].mxu0 %v8701_v38 }
 0x1a6   : > { %1429 = vmatprep.mubr.bf16.mxu1 %v8312_v0  ;;  %6900 = vmatprep.mubr.bf16.mxu0 %v8713_v51 }
 0x1a7   : > { %2404 = vmatpush1.bf16.msra.mxu0 %v7833_v14  ;;  %v7872_v14 = vld [vmem:[#allocation8 + $0x128] ss:$36 sps:$4 sm:$0xff]  }
 0x1a8   : > { %2405 = vmatprep.subr.bf16.mxu0 %v7838_v15  ;;  %v7875_v15 = vld [vmem:[#allocation8 + $0x130] ss:$36 sps:$4 sm:$0xff]  }
 0x1ab   : > { %2406 = vmatpush1.bf16.msra.mxu0 %v7836_v16  ;;  %v7880_v16 = vld [vmem:[#allocation8 + $0x174] ss:$36 sps:$4 sm:$0xff]  }
 0x1ac   : > { %2407 = vmatprep.subr.bf16.mxu0 %v7844_v17  ;;  %v7883_v17 = vld [vmem:[#allocation8 + $0x17c] ss:$36 sps:$4 sm:$0xff]  }
 0x1ad   : > { %1430 = vmatmul.mubr.bf16.gmra.mrb[92].mxu1 %v8757_v31  ;;  %6901 = vmatmul.mubr.bf16.gmra.mrb[92].mxu0 %v8725_v1 }
 0x1ae   : > { %1439 = vmatprep.mubr.bf16.mxu1 %v8312_v0  ;;  %6904 = vmatprep.mubr.bf16.mxu0 %v8733_v11 }
 0x1af   : > { %2408 = vmatpush1.bf16.msra.mxu0 %v7842_v18  ;;  %v428_v18 = vld [vmem:[%s8658_s29 + $0x30] sm:$0xff] }
 0x1b0   : > { %2409 = vmatprep.subr.bf16.mxu0 %v7847_v20  ;;  %v429_v20 = vld [vmem:[%s8658_s29 + $0x38] sm:$0xff] }
 0x1b3   : > { %2410 = vmatpush1.bf16.msra.mxu0 %v7845_v21  ;;  %v7878_v21 = vld [vmem:[#allocation8 + $0x170] ss:$36 sps:$4 sm:$0xff]  }
 0x1b4   : > { %2781 = vmatprep.subr.bf16.mxu0 %v7853_v22  ;;  %v7881_v22 = vld [vmem:[#allocation8 + $0x178] ss:$36 sps:$4 sm:$0xff]  }
 0x1b5   : > { %1440 = vmatmul.mubr.bf16.gmra.mrb[96].mxu1 %v8765_v36  ;;  %6905 = vmatmul.mubr.bf16.gmra.mrb[96].mxu0 %v8741_v19 }
 0x1b6   : > { %1449 = vmatprep.mubr.bf16.mxu1 %v8312_v0  ;;  %6908 = vmatprep.mubr.bf16.mxu0 %v8749_v26 }
 0x1bd   : > { %1450 = vmatmul.mubr.bf16.gmra.mrb[100].mxu1 %v8773_v41  ;;  %6909 = vmatmul.mubr.bf16.gmra.mrb[100].mxu0 %v8757_v31 }
 0x1be   : > { %1459 = vmatprep.mubr.bf16.mxu1 %v8312_v0  ;;  %6912 = vmatprep.mubr.bf16.mxu0 %v8765_v36 }
 0x1c5   : > { %1460 = vmatmul.mubr.bf16.gmra.mrb[104].mxu1 %v8781_v44  ;;  %6913 = vmatmul.mubr.bf16.gmra.mrb[104].mxu0 %v8773_v41 }
 0x1c6   : > { %1469 = vmatprep.mubr.bf16.mxu1 %v8312_v0  ;;  %6916 = vmatprep.mubr.bf16.mxu0 %v8781_v44 }
 0x1c8   : > { %v8855_v25 = vpop.f32.mrb[0].mxu1 }
 0x1c9   : > { %v8857_v27 = vpop.f32.mrb[1].mxu1 }
 0x1ca   : > { %v8859_v28 = vpop.f32.mrb[2].mxu1 }
 0x1cb   : > { %v8861_v29 = vpop.f32.mrb[3].mxu1 }
 0x1cd   : > { %1470 = vmatmul.mubr.bf16.gmra.mrb[108].mxu1 %v8789_v47  ;;  %6917 = vmatmul.mubr.bf16.gmra.mrb[108].mxu0 %v8789_v47 }
 0x1ce   : > { %1705 = vmatprep.mubr.bf16.mxu1 %v8312_v0  ;;  %2427 = vmatprep.mubr.bf16.mxu0 %v8312_v0 }
 0x1d0   : > { %v8869_v33 = vpop.f32.mrb[4].mxu1 }
 0x1d1   : > { %v8871_v34 = vpop.f32.mrb[5].mxu1 }
 0x1d2   : > { %v8875_v39 = vpop.f32.mrb[6].mxu1 }
 0x1d3   : > { %v8877_v43 = vpop.f32.mrb[7].mxu1 }
 0x1d5   : > { %1706 = vmatmul.mubr.bf16.vlgmr.msra.gmra.mrb[112].mxu1 %v8687_v23  ;;  %2428 = vmatmul.mubr.bf16.vlgmr.msra.gmra.mrb[0].mxu0 %v8873_v35  ;;  %v8889_v23 = vpack.c.bf16 %v425_v49, %v424_v48  ;;  %v7884_v48 = vld [vmem:[#allocation8 + $0x1b8] ss:$36 sps:$4 sm:$0xff]   ;;  %v7887_v49 = vld [vmem:[#allocation8 + $0x1c0] ss:$36 sps:$4 sm:$0xff]  }
 0x1d6   : > { %2589 = vmatpush1.bf16.msra.mxu1 %v7848_v40  ;;  %2782 = vmatpush1.bf16.msra.mxu0 %v7851_v42  ;;  %v7889_v40 = vld [vmem:[#allocation8 + $0x1c4] ss:$36 sps:$4 sm:$0xff]  }
 0x1d7   : > { %1715 = vmatprep.mubr.bf16.mxu1 %v8312_v0  ;;  %2437 = vmatprep.mubr.bf16.mxu0 %v8312_v0 }
 0x1d8   : > { %v8885_v56 = vpop.f32.mrb[8].mxu1  ;;  %2590 = vmatprep.subr.bf16.mxu1 %v7856_v45  ;;  %2783 = vmatprep.subr.bf16.mxu0 %v7859_v46 }
 0x1d9   : > { %v8887_v57 = vpop.f32.mrb[9].mxu1 }
 0x1da   : > { %v8891_v58 = vpop.f32.mrb[10].mxu1  ;;  %2591 = vmatpush1.bf16.msra.mxu1 %v7854_v52  ;;  %2784 = vmatpush1.bf16.msra.mxu0 %v7857_v53  ;;  %v7892_v52 = vld [vmem:[#allocation8 + $0x204] ss:$36 sps:$4 sm:$0xff]   ;;  %v7895_v53 = vld [vmem:[#allocation8 + $0x20c] ss:$36 sps:$4 sm:$0xff]  }
 0x1db   : > { %v8893_v59 = vpop.f32.mrb[11].mxu1  ;;  %2592 = vmatprep.subr.bf16.mxu1 %v7862_v54  ;;  %2785 = vmatprep.subr.bf16.mxu0 %v7865_v55  ;;  %v430_v54 = vld [vmem:[%s8658_s29 + $0x40] sm:$0xff]  ;;  %v431_v55 = vld [vmem:[%s8658_s29 + $0x48] sm:$0xff] }
 0x1dd   : > { %1716 = vmatmul.mubr.bf16.gmra.mrb[116].mxu1 %v8699_v37  ;;  %2438 = vmatmul.mubr.bf16.gmra.mrb[4].mxu0 %v8889_v23  ;;  %v8905_v37 = vpack.c.bf16 %v427_v4, %v426_v3  ;;  %v8939_v4 = vpack.c.bf16 %v431_v55, %v430_v54 }
 0x1de   : > { %1725 = vmatprep.mubr.bf16.mxu1 %v8312_v0  ;;  %2447 = vmatprep.mubr.bf16.mxu0 %v8312_v0 }
 0x1df   : > { %2593 = vmatpush1.bf16.msra.mxu1 %v7860_v60  ;;  %2786 = vmatpush1.bf16.msra.mxu0 %v7863_v61  ;;  %v7890_v60 = vld [vmem:[#allocation8 + $0x200] ss:$36 sps:$4 sm:$0xff]   ;;  %v7893_v61 = vld [vmem:[#allocation8 + $0x208] ss:$36 sps:$4 sm:$0xff]  }
 0x1e0   : > { %v8901_v7 = vpop.f32.mrb[12].mxu1  ;;  %2594 = vmatprep.subr.bf16.mxu1 %v7868_v62  ;;  %2787 = vmatprep.subr.bf16.mxu0 %v7871_v2  ;;  %v7898_v2 = vld [vmem:[#allocation8 + $0x1c] ss:$36 sps:$4 sm:$0xff]  }
 0x1e1   : > { %v8903_v10 = vpop.f32.mrb[13].mxu1 }
 0x1e2   : > { %v8907_v12 = vpop.f32.mrb[14].mxu1 }
 0x1e3   : > { %v8909_v13 = vpop.f32.mrb[15].mxu1  ;;  %2595 = vmatpush1.bf16.msra.mxu1 %v7866_v5  ;;  %2788 = vmatpush1.bf16.msra.mxu0 %v7869_v6 }
 0x1e4   : > { %2596 = vmatprep.subr.bf16.mxu1 %v7874_v8  ;;  %2789 = vmatprep.subr.bf16.mxu0 %v7877_v9  ;;  %v432_v8 = vld [vmem:[%s8658_s29 + $0x50] sm:$0xff]  ;;  %v433_v9 = vld [vmem:[%s8658_s29 + $0x58] sm:$0xff] }
 0x1e5   : > { %1726 = vmatmul.mubr.bf16.gmra.mrb[120].mxu1 %v8711_v50  ;;  %2448 = vmatmul.mubr.bf16.gmra.mrb[8].mxu0 %v8905_v37  ;;  %v8921_v50 = vpack.c.bf16 %v429_v20, %v428_v18  ;;  %v435_v20 = vld [vmem:[%s8658_s29 + $0x68] sm:$0xff] }
 0x1e6   : > { %1735 = vmatprep.mubr.bf16.mxu1 %v8312_v0  ;;  %2457 = vmatprep.mubr.bf16.mxu0 %v8312_v0 }
 0x1e7   : > { %2597 = vmatpush1.bf16.msra.mxu1 %v7872_v14  ;;  %2790 = vmatpush1.bf16.msra.mxu0 %v7875_v15 }
 0x1e8   : > { %v8917_v30 = vpop.f32.mrb[16].mxu1  ;;  %2598 = vmatprep.subr.bf16.mxu1 %v7880_v16  ;;  %2791 = vmatprep.subr.bf16.mxu0 %v7883_v17  ;;  %v8956_v16 = vpack.c.bf16 %v433_v9, %v432_v8 }
 0x1e9   : > { %v8919_v42 = vpop.f32.mrb[17].mxu1 }
 0x1ea   : > { %v8923_v45 = vpop.f32.mrb[18].mxu1 }
 0x1eb   : > { %v8925_v46 = vpop.f32.mrb[19].mxu1  ;;  %2599 = vmatpush1.bf16.msra.mxu1 %v7878_v21  ;;  %2792 = vmatpush1.bf16.msra.mxu0 %v7881_v22 }
 0x1ec   : > { %2600 = vmatprep.subr.bf16.mxu1 %v7886_v32  ;;  %2793 = vmatprep.subr.bf16.mxu0 %v7889_v40 }
 0x1ed   : > { %1736 = vmatmul.mubr.bf16.gmra.mrb[124].mxu1 %v8723_v63  ;;  %2458 = vmatmul.mubr.bf16.gmra.mrb[12].mxu0 %v8921_v50  ;;  %v8935_v63 = vld [vmem:[#allocation8 + $0x20] ss:$36 sps:$4 sm:$0xff]  }
 0x1ee   : > { %1745 = vmatprep.mubr.bf16.mxu1 %v8312_v0  ;;  %2467 = vmatprep.mubr.bf16.mxu0 %v8312_v0 }
 0x1ef   : > { %2601 = vmatpush1.bf16.msra.mxu1 %v7884_v48  ;;  %2794 = vmatpush1.bf16.msra.mxu0 %v7887_v49  ;;  %v437_v49 = vld [vmem:[%s8658_s29 + $0x78] sm:$0xff] }
 0x1f0   : > { %v8933_v62 = vpop.f32.mrb[20].mxu1  ;;  %2602 = vmatprep.subr.bf16.mxu1 %v7892_v52  ;;  %2795 = vmatprep.subr.bf16.mxu0 %v7895_v53 }
 0x1f1   : > { %v8937_v3 = vpop.f32.mrb[21].mxu1 }
 0x1f2   : > { %v8941_v5 = vpop.f32.mrb[22].mxu1 }
 0x1f3   : > { %v8943_v6 = vpop.f32.mrb[23].mxu1  ;;  %2603 = vmatpush1.bf16.msra.mxu1 %v7890_v60  ;;  %2796 = vmatpush1.bf16.msra.mxu0 %v7893_v61  ;;  %v439_v61 = vld [vmem:[%s8658_s29 + $0x88] sm:$0xff] }
 0x1f4   : > { %2974 = vmatprep.subr.bf16.mxu1 %v7898_v2  ;;  %6920 = vmatprep.subr.bf16.mxu0 %v8935_v63 }
 0x1f5   : > { %1746 = vmatmul.mubr.bf16.gmra.mrb[128].mxu1 %v8689_v24  ;;  %2468 = vmatmul.mubr.bf16.gmra.mrb[112].mxu0 %v8939_v4  ;;  %v434_v24 = vld [vmem:[%s8658_s29 + $0x60] sm:$0xff] }
 0x1f6   : > { %1755 = vmatprep.mubr.bf16.mxu1 %v8312_v0  ;;  %2477 = vmatprep.mubr.bf16.mxu0 %v8312_v0  ;;  %v8972_v32 = vpack.c.bf16 %v435_v20, %v434_v24 }
 0x1f8   : > { %v8952_v14 = vpop.f32.mrb[24].mxu1 }
 0x1f9   : > { %v8954_v15 = vpop.f32.mrb[25].mxu1 }
 0x1fa   : > { %v8958_v17 = vpop.f32.mrb[26].mxu1 }
 0x1fb   : > { %v8960_v18 = vpop.f32.mrb[27].mxu1 }
 0x1fd   : > { %1756 = vmatmul.mubr.bf16.gmra.mrb[132].mxu1 %v8701_v38  ;;  %2478 = vmatmul.mubr.bf16.gmra.mrb[116].mxu0 %v8956_v16  ;;  %v436_v38 = vld [vmem:[%s8658_s29 + $0x70] sm:$0xff] }
 0x1fe   : > { %1765 = vmatprep.mubr.bf16.mxu1 %v8312_v0  ;;  %2487 = vmatprep.mubr.bf16.mxu0 %v8312_v0  ;;  %v8988_v54 = vpack.c.bf16 %v437_v49, %v436_v38  ;;  %v441_v38 = vld [vmem:[%s8658_s29 + $0x98] sm:$0xff] }
 0x200   : > { %v8968_v21 = vpop.f32.mrb[28].mxu1 }
 0x201   : > { %v8970_v22 = vpop.f32.mrb[29].mxu1 }
 0x202   : > { %v8974_v40 = vpop.f32.mrb[30].mxu1 }
 0x203   : > { %v8976_v48 = vpop.f32.mrb[31].mxu1 }
 0x205   : > { %1766 = vmatmul.mubr.bf16.gmra.mrb[136].mxu1 %v8713_v51  ;;  %2488 = vmatmul.mubr.bf16.gmra.mrb[120].mxu0 %v8972_v32  ;;  %v438_v51 = vld [vmem:[%s8658_s29 + $0x80] sm:$0xff] }
 0x206   : > { %1775 = vmatprep.mubr.bf16.mxu1 %v8312_v0  ;;  %2497 = vmatprep.mubr.bf16.mxu0 %v8312_v0  ;;  %v9004_v9 = vpack.c.bf16 %v439_v61, %v438_v51 }
 0x208   : > { %v8984_v52 = vpop.f32.mrb[32].mxu1 }
 0x209   : > { %v8986_v53 = vpop.f32.mrb[33].mxu1 }
 0x20a   : > { %v8990_v55 = vpop.f32.mrb[34].mxu1 }
 0x20b   : > { %v8992_v60 = vpop.f32.mrb[35].mxu1 }
 0x20d   : > { %1776 = vmatmul.mubr.bf16.gmra.mrb[140].mxu1 %v8725_v1  ;;  %2498 = vmatmul.mubr.bf16.gmra.mrb[124].mxu0 %v8988_v54  ;;  %v440_v1 = vld [vmem:[%s8658_s29 + $0x90] sm:$0xff] }
 0x20e   : > { %1785 = vmatprep.mubr.bf16.mxu1 %v8312_v0  ;;  %2507 = vmatprep.mubr.bf16.mxu0 %v8312_v0  ;;  %v9020_v61 = vpack.c.bf16 %v441_v38, %v440_v1 }
 0x210   : > { %v9000_v2 = vpop.f32.mrb[36].mxu1 }
 0x211   : > { %9751 = vst [vmem:[#allocation26_spill] sm:$0xff] %v9000_v2  ;;  %v9002_v8 = vpop.f32.mrb[37].mxu1  ;;  %v7960_v2 = vld [vmem:[#allocation11 + $0xe4] ss:$36 sps:$4 sm:$0xff]  }
 0x212   : > { %9752 = vst [vmem:[#allocation27_spill] sm:$0xff] %v9002_v8  ;;  %v9006_v24 = vpop.f32.mrb[38].mxu1 }
 0x213   : > { %9753 = vst [vmem:[#allocation28_spill] sm:$0xff] %v9006_v24  ;;  %v9008_v20 = vpop.f32.mrb[39].mxu1 }
 0x214   : > { %9754 = vst [vmem:[#allocation29_spill] sm:$0xff] %v9008_v20 }
 0x215   : > { %1786 = vmatmul.mubr.bf16.gmra.mrb[144].mxu1 %v8733_v11  ;;  %2508 = vmatmul.mubr.bf16.gmra.mrb[128].mxu0 %v9004_v9  ;;  %v442_v11 = vld [vmem:[%s8658_s29 + $0xa0] sm:$0xff] }
 0x216   : > { %1795 = vmatprep.mubr.bf16.mxu1 %v8312_v0  ;;  %2517 = vmatprep.mubr.bf16.mxu0 %v8312_v0 }
 0x218   : > { %v9016_v49 = vpop.f32.mrb[40].mxu1 }
 0x219   : > { %9755 = vst [vmem:[#allocation30_spill] sm:$0xff] %v9016_v49  ;;  %v9018_v51 = vpop.f32.mrb[41].mxu1  ;;  %v443_v49 = vld [vmem:[%s8658_s29 + $0xa8] sm:$0xff] }
 0x21a   : > { %9756 = vst [vmem:[#allocation31_spill] sm:$0xff] %v9018_v51  ;;  %v9022_v24 = vpop.f32.mrb[42].mxu1  ;;  %v9036_v38 = vpack.c.bf16 %v443_v49, %v442_v11  ;;  %v447_v49 = vld [vmem:[%s8658_s29 + $0xc8] sm:$0xff]  ;;  %v7911_v51 = vld [vmem:[#allocation8 + $0xf8] ss:$36 sps:$4 sm:$0xff]  }
 0x21b   : > { %9757 = vst [vmem:[#allocation32_spill] sm:$0xff] %v9022_v24  ;;  %v9024_v20 = vpop.f32.mrb[43].mxu1  ;;  %v445_v24 = vld [vmem:[%s8658_s29 + $0xb8] sm:$0xff] }
 0x21c   : > { %9758 = vst [vmem:[#allocation33_spill] sm:$0xff] %v9024_v20 }
 0x21d   : > { %1796 = vmatmul.mubr.bf16.gmra.mrb[148].mxu1 %v8741_v19  ;;  %2518 = vmatmul.mubr.bf16.gmra.mrb[132].mxu0 %v9020_v61 }
 0x21e   : > { %1805 = vmatprep.mubr.bf16.mxu1 %v8312_v0  ;;  %2527 = vmatprep.mubr.bf16.mxu0 %v8312_v0 }
 0x220   : > { %v9032_v8 = vpop.f32.mrb[44].mxu1 }
 0x221   : > { %9759 = vst [vmem:[#allocation34_spill] sm:$0xff] %v9032_v8  ;;  %v9034_v1 = vpop.f32.mrb[45].mxu1  ;;  %v444_v8 = vld [vmem:[%s8658_s29 + $0xb0] sm:$0xff] }
 0x222   : > { %9760 = vst [vmem:[#allocation35_spill] sm:$0xff] %v9034_v1  ;;  %v9038_v20 = vpop.f32.mrb[46].mxu1  ;;  %v9048_v1 = vpack.c.bf16 %v445_v24, %v444_v8  ;;  %v449_v8 = vld [vmem:[%s8658_s29 + $0xd8] sm:$0xff] }
 0x223   : > { %9761 = vst [vmem:[#allocation36_spill] sm:$0xff] %v9038_v20  ;;  %v9040_v19 = vpop.f32.mrb[47].mxu1  ;;  %v7910_v20 = vld [vmem:[#allocation8 + $0xf4] ss:$36 sps:$4 sm:$0xff]  }
 0x224   : > { %9762 = vst [vmem:[#allocation37_spill] sm:$0xff] %v9040_v19  ;;  %v7904_v19 = vld [vmem:[#allocation8 + $0xa8] ss:$36 sps:$4 sm:$0xff]  }
 0x225   : > { %1806 = vmatmul.mubr.bf16.gmra.mrb[152].mxu1 %v8749_v26  ;;  %2528 = vmatmul.mubr.bf16.gmra.mrb[136].mxu0 %v9036_v38  ;;  %v446_v26 = vld [vmem:[%s8658_s29 + $0xc0] sm:$0xff] }
 0x226   : > { %1815 = vmatprep.mubr.bf16.mxu1 %v8312_v0  ;;  %2537 = vmatprep.mubr.bf16.mxu0 %v8312_v0  ;;  %v9056_v11 = vpack.c.bf16 %v447_v49, %v446_v26  ;;  %v451_v26 = vld [vmem:[%s8658_s29 + $0xe8] sm:$0xff] }
 0x22d   : > { %1816 = vmatmul.mubr.bf16.gmra.mrb[156].mxu1 %v8757_v31  ;;  %2538 = vmatmul.mubr.bf16.gmra.mrb[140].mxu0 %v9048_v1  ;;  %v448_v31 = vld [vmem:[%s8658_s29 + $0xd0] sm:$0xff] }
 0x22e   : > { %1825 = vmatprep.mubr.bf16.mxu1 %v8312_v0  ;;  %2547 = vmatprep.mubr.bf16.mxu0 %v8312_v0  ;;  %v9064_v24 = vpack.c.bf16 %v449_v8, %v448_v31  ;;  %v452_v31 = vld [vmem:[%s8658_s29 + $0xf0] sm:$0xff] }
 0x235   : > { %1826 = vmatmul.mubr.bf16.gmra.mrb[160].mxu1 %v8765_v36  ;;  %2548 = vmatmul.mubr.bf16.gmra.mrb[144].mxu0 %v9056_v11  ;;  %v450_v36 = vld [vmem:[%s8658_s29 + $0xe0] sm:$0xff] }
 0x236   : > { %1835 = vmatprep.mubr.bf16.mxu1 %v8312_v0  ;;  %2557 = vmatprep.mubr.bf16.mxu0 %v8312_v0  ;;  %v9072_v49 = vpack.c.bf16 %v451_v26, %v450_v36  ;;  %v7896_v36 = vld [vmem:[#allocation8 + $0x18] ss:$36 sps:$4 sm:$0xff]   ;;  %v7903_v26 = vld [vmem:[#allocation8 + $0x68] ss:$36 sps:$4 sm:$0xff]  }
 0x23d   : > { %1836 = vmatmul.mubr.bf16.gmra.mrb[164].mxu1 %v8773_v41  ;;  %2558 = vmatmul.mubr.bf16.gmra.mrb[148].mxu0 %v9064_v24  ;;  %v453_v41 = vld [vmem:[%s8658_s29 + $0xf8] sm:$0xff] }
 0x23e   : > { %1845 = vmatprep.mubr.bf16.mxu1 %v8312_v0  ;;  %2567 = vmatprep.mubr.bf16.mxu0 %v8312_v0  ;;  %v9080_v8 = vpack.c.bf16 %v453_v41, %v452_v31  ;;  %v7900_v31 = vld [vmem:[#allocation8 + $0x60] ss:$36 sps:$4 sm:$0xff]   ;;  %v7907_v41 = vld [vmem:[#allocation8 + $0xb0] ss:$36 sps:$4 sm:$0xff]  }
 0x245   : > { %1846 = vmatmul.mubr.bf16.gmra.mrb[168].mxu1 %v8781_v44  ;;  %2568 = vmatmul.mubr.bf16.gmra.mrb[152].mxu0 %v9072_v49  ;;  %v7902_v44 = vld [vmem:[#allocation8 + $0x64] ss:$36 sps:$4 sm:$0xff]  }
 0x246   : > { %1855 = vmatprep.mubr.bf16.mxu1 %v8312_v0  ;;  %2577 = vmatprep.mubr.bf16.mxu0 %v8312_v0 }
 0x24d   : > { %1856 = vmatmul.mubr.bf16.gmra.mrb[172].mxu1 %v8789_v47  ;;  %2578 = vmatmul.mubr.bf16.gmra.mrb[156].mxu0 %v9080_v8  ;;  %v7906_v47 = vld [vmem:[#allocation8 + $0xac] ss:$36 sps:$4 sm:$0xff]  }
 0x24e   : > { %2620 = vmatprep.mubr.bf16.mxu1 %v8312_v0  ;;  %2813 = vmatprep.mubr.bf16.mxu0 %v8312_v0 }
 0x255   : > { %2621 = vmatmul.mubr.bf16.vlgmr.msra.gmra.mrb[48].mxu1 %v8873_v35  ;;  %2814 = vmatmul.mubr.bf16.vlgmr.msra.gmra.mrb[16].mxu0 %v8873_v35 }
 0x256   : > { %2975 = vmatpush1.bf16.msra.mxu1 %v7896_v36  ;;  %6921 = vmatpush3.bf16.msra.mxu0 %v8935_v63  ;;  %v7908_v63 = vld [vmem:[#allocation8 + $0xf0] ss:$36 sps:$4 sm:$0xff]   ;;  %v7914_v36 = vld [vmem:[#allocation8 + $0x13c] ss:$36 sps:$4 sm:$0xff]  }
 0x257   : > { %2630 = vmatprep.mubr.bf16.mxu1 %v8312_v0  ;;  %2823 = vmatprep.mubr.bf16.mxu0 %v8312_v0 }
 0x258   : > { %2976 = vmatprep.subr.bf16.mxu1 %v7902_v44  ;;  %6922 = vmatprep.subr.bf16.mxu0 %v7903_v26  ;;  %v7915_v44 = vld [vmem:[#allocation8 + $0x140] ss:$36 sps:$4 sm:$0xff]  }
 0x25a   : > { %2977 = vmatpush1.bf16.msra.mxu1 %v7900_v31  ;;  %6923 = vmatpush3.bf16.msra.mxu0 %v7903_v26  ;;  %v7912_v26 = vld [vmem:[#allocation8 + $0x138] ss:$36 sps:$4 sm:$0xff]   ;;  %v7918_v31 = vld [vmem:[#allocation8 + $0x184] ss:$36 sps:$4 sm:$0xff]  }
 0x25b   : > { %2978 = vmatprep.subr.bf16.mxu1 %v7906_v47  ;;  %6924 = vmatprep.subr.bf16.mxu0 %v7907_v41  ;;  %v7919_v47 = vld [vmem:[#allocation8 + $0x188] ss:$36 sps:$4 sm:$0xff]  }
 0x25d   : > { %2631 = vmatmul.mubr.bf16.gmra.mrb[52].mxu1 %v8889_v23  ;;  %2824 = vmatmul.mubr.bf16.gmra.mrb[20].mxu0 %v8889_v23 }
 0x25e   : > { %2640 = vmatprep.mubr.bf16.mxu1 %v8312_v0  ;;  %2833 = vmatprep.mubr.bf16.mxu0 %v8312_v0 }
 0x25f   : > { %2979 = vmatpush1.bf16.msra.mxu1 %v7904_v19  ;;  %6925 = vmatpush3.bf16.msra.mxu0 %v7907_v41  ;;  %v7922_v19 = vld [vmem:[#allocation8 + $0x1cc] ss:$36 sps:$4 sm:$0xff]  }
 0x260   : > { %2980 = vmatprep.subr.bf16.mxu1 %v7910_v20  ;;  %6926 = vmatprep.subr.bf16.mxu0 %v7911_v51  ;;  %v7916_v20 = vld [vmem:[#allocation8 + $0x180] ss:$36 sps:$4 sm:$0xff]   ;;  %v7920_v41 = vld [vmem:[#allocation8 + $0x1c8] ss:$36 sps:$4 sm:$0xff]  }
 0x263   : > { %2981 = vmatpush1.bf16.msra.mxu1 %v7908_v63  ;;  %6927 = vmatpush3.bf16.msra.mxu0 %v7911_v51  ;;  %v7923_v51 = vld [vmem:[#allocation8 + $0x1d0] ss:$36 sps:$4 sm:$0xff]  }
 0x264   : > { %2982 = vmatprep.subr.bf16.mxu1 %v7914_v36  ;;  %6928 = vmatprep.subr.bf16.mxu0 %v7915_v44  ;;  %v7926_v63 = vld [vmem:[#allocation8 + $0x214] ss:$36 sps:$4 sm:$0xff]  }
 0x265   : > { %2641 = vmatmul.mubr.bf16.gmra.mrb[56].mxu1 %v8905_v37  ;;  %2834 = vmatmul.mubr.bf16.gmra.mrb[24].mxu0 %v8905_v37  ;;  %v7927_v36 = vld [vmem:[#allocation8 + $0x218] ss:$36 sps:$4 sm:$0xff]  }
 0x266   : > { %2650 = vmatprep.mubr.bf16.mxu1 %v8312_v0  ;;  %2843 = vmatprep.mubr.bf16.mxu0 %v8312_v0 }
 0x267   : > { %2983 = vmatpush1.bf16.msra.mxu1 %v7912_v26  ;;  %6929 = vmatpush3.bf16.msra.mxu0 %v7915_v44  ;;  %v7924_v44 = vld [vmem:[#allocation8 + $0x210] ss:$36 sps:$4 sm:$0xff]   ;;  %v7930_v26 = vld [vmem:[#allocation11 + $0x4] ss:$36 sps:$4 sm:$0xff]  }
 0x268   : > { %2984 = vmatprep.subr.bf16.mxu1 %v7918_v31  ;;  %6930 = vmatprep.subr.bf16.mxu0 %v7919_v47  ;;  %v7933_v31 = vld [vmem:[#allocation11 + $0xc] ss:$36 sps:$4 sm:$0xff]  }
 0x26b   : > { %2985 = vmatpush1.bf16.msra.mxu1 %v7916_v20  ;;  %6931 = vmatpush3.bf16.msra.mxu0 %v7919_v47  ;;  %v7928_v47 = vld [vmem:[#allocation11] ss:$36 sps:$4 sm:$0xff]   ;;  %v7931_v20 = vld [vmem:[#allocation11 + $0x8] ss:$36 sps:$4 sm:$0xff]  }
 0x26c   : > { %2986 = vmatprep.subr.bf16.mxu1 %v7922_v19  ;;  %6932 = vmatprep.subr.bf16.mxu0 %v7923_v51  ;;  %v7936_v19 = vld [vmem:[#allocation11 + $0x4c] ss:$36 sps:$4 sm:$0xff]  }
 0x26d   : > { %2651 = vmatmul.mubr.bf16.gmra.mrb[60].mxu1 %v8921_v50  ;;  %2844 = vmatmul.mubr.bf16.gmra.mrb[28].mxu0 %v8921_v50 }
 0x26e   : > { %2660 = vmatprep.mubr.bf16.mxu1 %v8312_v0  ;;  %2853 = vmatprep.mubr.bf16.mxu0 %v8312_v0 }
 0x26f   : > { %2987 = vmatpush1.bf16.msra.mxu1 %v7920_v41  ;;  %6933 = vmatpush3.bf16.msra.mxu0 %v7923_v51  ;;  %v7942_v51 = vld [vmem:[#allocation11 + $0x54] ss:$36 sps:$4 sm:$0xff]   ;;  %v7934_v41 = vld [vmem:[#allocation11 + $0x48] ss:$36 sps:$4 sm:$0xff]  }
 0x270   : > { %2988 = vmatprep.subr.bf16.mxu1 %v7926_v63  ;;  %6934 = vmatprep.subr.bf16.mxu0 %v7927_v36  ;;  %v7940_v63 = vld [vmem:[#allocation11 + $0x50] ss:$36 sps:$4 sm:$0xff]  }
 0x273   : > { %2989 = vmatpush1.bf16.msra.mxu1 %v7924_v44  ;;  %6935 = vmatpush3.bf16.msra.mxu0 %v7927_v36  ;;  %v7939_v36 = vld [vmem:[#allocation11 + $0x94] ss:$36 sps:$4 sm:$0xff]   ;;  %v7951_v44 = vld [vmem:[#allocation11 + $0x9c] ss:$36 sps:$4 sm:$0xff]  }
 0x274   : > { %3776 = vmatprep.subr.bf16.mxu0 %v7930_v26  ;;  %3969 = vmatprep.subr.bf16.mxu1 %v7933_v31  ;;  %v7937_v26 = vld [vmem:[#allocation11 + $0x90] ss:$36 sps:$4 sm:$0xff]   ;;  %v7949_v31 = vld [vmem:[#allocation11 + $0x98] ss:$36 sps:$4 sm:$0xff]  }
 0x275   : > { %2661 = vmatmul.mubr.bf16.gmra.mrb[64].mxu1 %v8939_v4  ;;  %2854 = vmatmul.mubr.bf16.gmra.mrb[32].mxu0 %v8939_v4 }
 0x276   : > { %2670 = vmatprep.mubr.bf16.mxu1 %v8312_v0  ;;  %2863 = vmatprep.mubr.bf16.mxu0 %v8312_v0 }
 0x27d   : > { %2671 = vmatmul.mubr.bf16.gmra.mrb[68].mxu1 %v8956_v16  ;;  %2864 = vmatmul.mubr.bf16.gmra.mrb[36].mxu0 %v8956_v16 }
 0x27e   : > { %2680 = vmatprep.mubr.bf16.mxu1 %v8312_v0  ;;  %2873 = vmatprep.mubr.bf16.mxu0 %v8312_v0 }
 0x285   : > { %2681 = vmatmul.mubr.bf16.gmra.mrb[72].mxu1 %v8972_v32  ;;  %2874 = vmatmul.mubr.bf16.gmra.mrb[40].mxu0 %v8972_v32 }
 0x286   : > { %2690 = vmatprep.mubr.bf16.mxu1 %v8312_v0  ;;  %2883 = vmatprep.mubr.bf16.mxu0 %v8312_v0 }
 0x28d   : > { %2691 = vmatmul.mubr.bf16.gmra.mrb[76].mxu1 %v8988_v54  ;;  %2884 = vmatmul.mubr.bf16.gmra.mrb[44].mxu0 %v8988_v54 }
 0x28e   : > { %2700 = vmatprep.mubr.bf16.mxu1 %v8312_v0  ;;  %2893 = vmatprep.mubr.bf16.mxu0 %v8312_v0 }
 0x295   : > { %2701 = vmatmul.mubr.bf16.gmra.mrb[80].mxu1 %v9004_v9  ;;  %2894 = vmatmul.mubr.bf16.gmra.mrb[48].mxu0 %v9004_v9 }
 0x296   : > { %2710 = vmatprep.mubr.bf16.mxu1 %v8312_v0  ;;  %2903 = vmatprep.mubr.bf16.mxu0 %v8312_v0 }
 0x29d   : > { %2711 = vmatmul.mubr.bf16.gmra.mrb[84].mxu1 %v9020_v61  ;;  %2904 = vmatmul.mubr.bf16.gmra.mrb[52].mxu0 %v9020_v61 }
 0x29e   : > { %2720 = vmatprep.mubr.bf16.mxu1 %v8312_v0  ;;  %2913 = vmatprep.mubr.bf16.mxu0 %v8312_v0 }
 0x2a5   : > { %2721 = vmatmul.mubr.bf16.gmra.mrb[88].mxu1 %v9036_v38  ;;  %2914 = vmatmul.mubr.bf16.gmra.mrb[56].mxu0 %v9036_v38 }
 0x2a6   : > { %2730 = vmatprep.mubr.bf16.mxu1 %v8312_v0  ;;  %2923 = vmatprep.mubr.bf16.mxu0 %v8312_v0 }
 0x2ad   : > { %2731 = vmatmul.mubr.bf16.gmra.mrb[92].mxu1 %v9048_v1  ;;  %2924 = vmatmul.mubr.bf16.gmra.mrb[60].mxu0 %v9048_v1 }
 0x2ae   : > { %2740 = vmatprep.mubr.bf16.mxu1 %v8312_v0  ;;  %2933 = vmatprep.mubr.bf16.mxu0 %v8312_v0 }
 0x2b5   : > { %2741 = vmatmul.mubr.bf16.gmra.mrb[96].mxu1 %v9056_v11  ;;  %2934 = vmatmul.mubr.bf16.gmra.mrb[64].mxu0 %v9056_v11 }
 0x2b6   : > { %2750 = vmatprep.mubr.bf16.mxu1 %v8312_v0  ;;  %2943 = vmatprep.mubr.bf16.mxu0 %v8312_v0 }
 0x2bd   : > { %2751 = vmatmul.mubr.bf16.gmra.mrb[100].mxu1 %v9064_v24  ;;  %2944 = vmatmul.mubr.bf16.gmra.mrb[68].mxu0 %v9064_v24 }
 0x2be   : > { %2760 = vmatprep.mubr.bf16.mxu1 %v8312_v0  ;;  %2953 = vmatprep.mubr.bf16.mxu0 %v8312_v0 }
 0x2c5   : > { %2761 = vmatmul.mubr.bf16.gmra.mrb[104].mxu1 %v9072_v49  ;;  %2954 = vmatmul.mubr.bf16.gmra.mrb[72].mxu0 %v9072_v49 }
 0x2c6   : > { %2770 = vmatprep.mubr.bf16.mxu1 %v8312_v0  ;;  %2963 = vmatprep.mubr.bf16.mxu0 %v8312_v0 }
 0x2cd   : > { %2771 = vmatmul.mubr.bf16.gmra.mrb[108].mxu1 %v9080_v8  ;;  %2964 = vmatmul.mubr.bf16.gmra.mrb[76].mxu0 %v9080_v8 }
 0x2ce   : > { %3006 = vmatprep.mubr.bf16.mxu1 %v8312_v0  ;;  %6936 = vmatprep.mubr.bf16.mxu0 %v8873_v35 }
 0x2d5   : > { %3007 = vmatmul.mubr.bf16.vlgmr.msra.gmra.mrb[112].mxu1 %v8873_v35  ;;  %6937 = vmatmul.mubr.bf16.vlgmr.msra.gmra.mrb[80].mxu0 %v8889_v23  ;;  %v7945_v35 = vld [vmem:[#allocation11 + $0xdc] ss:$36 sps:$4 sm:$0xff]  }
 0x2d6   : > { %3777 = vmatpush1.bf16.msra.mxu0 %v7928_v47  ;;  %3970 = vmatpush1.bf16.msra.mxu1 %v7931_v20  ;;  %v7943_v47 = vld [vmem:[#allocation11 + $0xd8] ss:$36 sps:$4 sm:$0xff]   ;;  %v7958_v20 = vld [vmem:[#allocation11 + $0xe0] ss:$36 sps:$4 sm:$0xff]  }
 0x2d7   : > { %3016 = vmatprep.mubr.bf16.mxu1 %v8312_v0  ;;  %6940 = vmatprep.mubr.bf16.mxu0 %v8905_v37 }
 0x2d8   : > { %3778 = vmatprep.subr.bf16.mxu0 %v7936_v19  ;;  %3971 = vmatprep.subr.bf16.mxu1 %v7942_v51  ;;  %v7948_v19 = vld [vmem:[#allocation11 + $0x124] ss:$36 sps:$4 sm:$0xff]   ;;  %v7966_v51 = vld [vmem:[#allocation11 + $0x12c] ss:$36 sps:$4 sm:$0xff]  }
 0x2da   : > { %3779 = vmatpush1.bf16.msra.mxu0 %v7934_v41  ;;  %3972 = vmatpush1.bf16.msra.mxu1 %v7940_v63  ;;  %v7946_v41 = vld [vmem:[#allocation11 + $0x120] ss:$36 sps:$4 sm:$0xff]   ;;  %v7964_v63 = vld [vmem:[#allocation11 + $0x128] ss:$36 sps:$4 sm:$0xff]  }
 0x2db   : > { %3780 = vmatprep.subr.bf16.mxu0 %v7939_v36  ;;  %3973 = vmatprep.subr.bf16.mxu1 %v7951_v44  ;;  %v7972_v36 = vld [vmem:[#allocation11 + $0x174] ss:$36 sps:$4 sm:$0xff]   ;;  %v7952_v44 = vld [vmem:[#allocation11 + $0x168] ss:$36 sps:$4 sm:$0xff]  }
 0x2dd   : > { %3017 = vmatmul.mubr.bf16.gmra.mrb[116].mxu1 %v8889_v23  ;;  %6941 = vmatmul.mubr.bf16.gmra.mrb[84].mxu0 %v8921_v50  ;;  %v7954_v23 = vld [vmem:[#allocation11 + $0x16c] ss:$36 sps:$4 sm:$0xff]  }
 0x2de   : > { %3026 = vmatprep.mubr.bf16.mxu1 %v8312_v0  ;;  %6944 = vmatprep.mubr.bf16.mxu0 %v8939_v4 }
 0x2df   : > { %3781 = vmatpush1.bf16.msra.mxu0 %v7937_v26  ;;  %3974 = vmatpush1.bf16.msra.mxu1 %v7949_v31  ;;  %v7957_v26 = vld [vmem:[#allocation11 + $0x1b4] ss:$36 sps:$4 sm:$0xff]   ;;  %v7978_v31 = vld [vmem:[#allocation11 + $0x1bc] ss:$36 sps:$4 sm:$0xff]  }
 0x2e0   : > { %3782 = vmatprep.subr.bf16.mxu0 %v7945_v35  ;;  %3975 = vmatprep.subr.bf16.mxu1 %v7960_v2  ;;  %v7970_v2 = vld [vmem:[#allocation11 + $0x170] ss:$36 sps:$4 sm:$0xff]  }
 0x2e1   : > { %v7955_v35 = vld [vmem:[#allocation11 + $0x1b0] ss:$36 sps:$4 sm:$0xff]  }
 0x2e3   : > { %3783 = vmatpush1.bf16.msra.mxu0 %v7943_v47  ;;  %3976 = vmatpush1.bf16.msra.mxu1 %v7958_v20  ;;  %v7976_v47 = vld [vmem:[#allocation11 + $0x1b8] ss:$36 sps:$4 sm:$0xff]   ;;  %v7984_v20 = vld [vmem:[#allocation11 + $0x204] ss:$36 sps:$4 sm:$0xff]  }
 0x2e4   : > { %3784 = vmatprep.subr.bf16.mxu0 %v7948_v19  ;;  %3977 = vmatprep.subr.bf16.mxu1 %v7966_v51  ;;  %v7961_v19 = vld [vmem:[#allocation11 + $0x1f8] ss:$36 sps:$4 sm:$0xff]   ;;  %v7982_v51 = vld [vmem:[#allocation11 + $0x200] ss:$36 sps:$4 sm:$0xff]  }
 0x2e5   : > { %3027 = vmatmul.mubr.bf16.gmra.mrb[120].mxu1 %v8905_v37  ;;  %6945 = vmatmul.mubr.bf16.gmra.mrb[88].mxu0 %v8956_v16  ;;  %v7963_v37 = vld [vmem:[#allocation11 + $0x1fc] ss:$36 sps:$4 sm:$0xff]  }
 0x2e6   : > { %3036 = vmatprep.mubr.bf16.mxu1 %v8312_v0  ;;  %6948 = vmatprep.mubr.bf16.mxu0 %v8972_v32 }
 0x2e7   : > { %3785 = vmatpush1.bf16.msra.mxu0 %v7946_v41  ;;  %3978 = vmatpush1.bf16.msra.mxu1 %v7964_v63  ;;  %v7969_v41 = vld [vmem:[#allocation11 + $0x14] ss:$36 sps:$4 sm:$0xff]   ;;  %v7993_v63 = vld [vmem:[#allocation11 + $0x1c] ss:$36 sps:$4 sm:$0xff]  }
 0x2e8   : > { %3786 = vmatprep.subr.bf16.mxu0 %v7954_v23  ;;  %3979 = vmatprep.subr.bf16.mxu1 %v7972_v36  ;;  %v7975_v23 = vld [vmem:[#allocation11 + $0x5c] ss:$36 sps:$4 sm:$0xff]  }
 0x2e9   : > { %v521_v36 = vld [vmem:[%s8671_s11 + $0x18] sm:$0xff] }
 0x2eb   : > { %3787 = vmatpush1.bf16.msra.mxu0 %v7952_v44  ;;  %3980 = vmatpush1.bf16.msra.mxu1 %v7970_v2  ;;  %v7973_v44 = vld [vmem:[#allocation11 + $0x58] ss:$36 sps:$4 sm:$0xff]   ;;  %v7981_v2 = vld [vmem:[#allocation11 + $0xa4] ss:$36 sps:$4 sm:$0xff]  }
 0x2ec   : > { %3788 = vmatprep.subr.bf16.mxu0 %v7957_v26  ;;  %3981 = vmatprep.subr.bf16.mxu1 %v7978_v31  ;;  %v7979_v31 = vld [vmem:[#allocation11 + $0xa0] ss:$36 sps:$4 sm:$0xff]  }
 0x2ed   : > { %3037 = vmatmul.mubr.bf16.gmra.mrb[124].mxu1 %v8921_v50  ;;  %6949 = vmatmul.mubr.bf16.gmra.mrb[92].mxu0 %v8988_v54  ;;  %v518_v50 = vld [vmem:[%s8671_s11] sm:$0xff] }
 0x2ee   : > { %3046 = vmatprep.mubr.bf16.mxu1 %v8312_v0  ;;  %6952 = vmatprep.mubr.bf16.mxu0 %v9004_v9 }
 0x2ef   : > { %3789 = vmatpush1.bf16.msra.mxu0 %v7955_v35  ;;  %3982 = vmatpush1.bf16.msra.mxu1 %v7976_v47  ;;  %v522_v35 = vld [vmem:[%s8671_s11 + $0x20] sm:$0xff]  ;;  %v523_v47 = vld [vmem:[%s8671_s11 + $0x28] sm:$0xff] }
 0x2f0   : > { %3790 = vmatprep.subr.bf16.mxu0 %v7963_v37  ;;  %3983 = vmatprep.subr.bf16.mxu1 %v7984_v20  ;;  %v7985_v37 = vld [vmem:[#allocation11 + $0xe8] ss:$36 sps:$4 sm:$0xff]   ;;  %v7990_v20 = vld [vmem:[#allocation11 + $0x134] ss:$36 sps:$4 sm:$0xff]  }
 0x2f3   : > { %3791 = vmatpush1.bf16.msra.mxu0 %v7961_v19  ;;  %3984 = vmatpush1.bf16.msra.mxu1 %v7982_v51  ;;  %v9201_v19 = vpack.c.bf16 %v523_v47, %v522_v35  ;;  %v7988_v51 = vld [vmem:[#allocation11 + $0x130] ss:$36 sps:$4 sm:$0xff]   ;;  %v531_v47 = vld [vmem:[%s8671_s11 + $0x68] sm:$0xff] }
 0x2f4   : > { %4162 = vmatprep.subr.bf16.mxu0 %v7969_v41  ;;  %4355 = vmatprep.subr.bf16.mxu1 %v7993_v63  ;;  %v524_v41 = vld [vmem:[%s8671_s11 + $0x30] sm:$0xff]  ;;  %v525_v63 = vld [vmem:[%s8671_s11 + $0x38] sm:$0xff] }
 0x2f5   : > { %3047 = vmatmul.mubr.bf16.gmra.mrb[128].mxu1 %v8939_v4  ;;  %6953 = vmatmul.mubr.bf16.gmra.mrb[96].mxu0 %v9020_v61  ;;  %v519_v4 = vld [vmem:[%s8671_s11 + $0x8] sm:$0xff] }
 0x2f6   : > { %3056 = vmatprep.mubr.bf16.mxu1 %v8312_v0  ;;  %6956 = vmatprep.mubr.bf16.mxu0 %v9036_v38 }
 0x2fd   : > { %3057 = vmatmul.mubr.bf16.gmra.mrb[132].mxu1 %v8956_v16  ;;  %6957 = vmatmul.mubr.bf16.gmra.mrb[100].mxu0 %v9048_v1  ;;  %v9185_v16 = vpack.c.bf16 %v519_v4, %v518_v50  ;;  %v7994_v50 = vld [vmem:[#allocation11 + $0x178] ss:$36 sps:$4 sm:$0xff]   ;;  %v8002_v4 = vld [vmem:[#allocation11 + $0x1c4] ss:$36 sps:$4 sm:$0xff]  }
 0x2fe   : > { %3066 = vmatprep.mubr.bf16.mxu1 %v8312_v0  ;;  %6960 = vmatprep.mubr.bf16.mxu0 %v9056_v11 }
 0x305   : > { %3067 = vmatmul.mubr.bf16.gmra.mrb[136].mxu1 %v8972_v32  ;;  %6961 = vmatmul.mubr.bf16.gmra.mrb[104].mxu0 %v9064_v24  ;;  %v7967_v32 = vld [vmem:[#allocation11 + $0x10] ss:$36 sps:$4 sm:$0xff]  }
 0x306   : > { %3076 = vmatprep.mubr.bf16.mxu1 %v8312_v0  ;;  %6964 = vmatprep.mubr.bf16.mxu0 %v9072_v49 }
 0x30d   : > { %3077 = vmatmul.mubr.bf16.gmra.mrb[140].mxu1 %v8988_v54  ;;  %6965 = vmatmul.mubr.bf16.gmra.mrb[108].mxu0 %v9080_v8  ;;  %v520_v54 = vld [vmem:[%s8671_s11 + $0x10] sm:$0xff] }
 0x30e   : > { %3086 = vmatprep.mubr.bf16.mxu1 %v8312_v0  ;;  %3808 = vmatprep.mubr.bf16.mxu0 %v8312_v0  ;;  %v9193_v26 = vpack.c.bf16 %v521_v36, %v520_v54  ;;  %v526_v54 = vld [vmem:[%s8671_s11 + $0x40] sm:$0xff]  ;;  %v527_v36 = vld [vmem:[%s8671_s11 + $0x48] sm:$0xff] }
 0x315   : > { %3087 = vmatmul.mubr.bf16.gmra.mrb[144].mxu1 %v9004_v9  ;;  %3809 = vmatmul.mubr.bf16.vlgmr.msra.gmra.mrb[0].mxu0 %v9185_v16  ;;  %v7987_v9 = vld [vmem:[#allocation11 + $0xec] ss:$36 sps:$4 sm:$0xff]  }
 0x316   : > { %4163 = vmatpush1.bf16.msra.mxu0 %v7967_v32  ;;  %3096 = vmatprep.mubr.bf16.mxu1 %v8312_v0  ;;  %v9209_v32 = vpack.c.bf16 %v525_v63, %v524_v41  ;;  %v7991_v63 = vld [vmem:[#allocation11 + $0x18] ss:$36 sps:$4 sm:$0xff]  }
 0x317   : > { %3818 = vmatprep.mubr.bf16.mxu0 %v8312_v0  ;;  %4164 = vmatprep.subr.bf16.mxu0 %v7975_v23  ;;  %v8000_v23 = vld [vmem:[#allocation11 + $0x1c0] ss:$36 sps:$4 sm:$0xff]  }
 0x31a   : > { %4165 = vmatpush1.bf16.msra.mxu0 %v7973_v44  ;;  %v8006_v44 = vld [vmem:[#allocation11 + $0x208] ss:$36 sps:$4 sm:$0xff]  }
 0x31b   : > { %4166 = vmatprep.subr.bf16.mxu0 %v7981_v2  ;;  %v9217_v2 = vld [vmem:[#allocation11 + $0x20] ss:$36 sps:$4 sm:$0xff]  }
 0x31d   : > { %3097 = vmatmul.mubr.bf16.gmra.mrb[148].mxu1 %v9020_v61  ;;  %3819 = vmatmul.mubr.bf16.gmra.mrb[4].mxu0 %v9193_v26  ;;  %v7996_v61 = vld [vmem:[#allocation11 + $0x17c] ss:$36 sps:$4 sm:$0xff]  }
 0x31e   : > { %3106 = vmatprep.mubr.bf16.mxu1 %v8312_v0  ;;  %3828 = vmatprep.mubr.bf16.mxu0 %v8312_v0 }
 0x31f   : > { %4167 = vmatpush1.bf16.msra.mxu0 %v7979_v31  ;;  %v9219_v31 = vpack.c.bf16 %v527_v36, %v526_v54  ;;  %v8003_v36 = vld [vmem:[#allocation11 + $0xa8] ss:$36 sps:$4 sm:$0xff]  }
 0x320   : > { %4168 = vmatprep.subr.bf16.mxu0 %v7987_v9  ;;  %v529_v9 = vld [vmem:[%s8671_s11 + $0x58] sm:$0xff] }
 0x323   : > { %4169 = vmatpush1.bf16.msra.mxu0 %v7985_v37 }
 0x324   : > { %4170 = vmatprep.subr.bf16.mxu0 %v7990_v20  ;;  %v533_v20 = vld [vmem:[%s8671_s11 + $0x78] sm:$0xff] }
 0x325   : > { %3107 = vmatmul.mubr.bf16.gmra.mrb[152].mxu1 %v9036_v38  ;;  %3829 = vmatmul.mubr.bf16.gmra.mrb[8].mxu0 %v9201_v19  ;;  %v8008_v38 = vld [vmem:[#allocation11 + $0x20c] ss:$36 sps:$4 sm:$0xff]  }
 0x326   : > { %3116 = vmatprep.mubr.bf16.mxu1 %v8312_v0  ;;  %3838 = vmatprep.mubr.bf16.mxu0 %v8312_v0 }
 0x327   : > { %4171 = vmatpush1.bf16.msra.mxu0 %v7988_v51 }
 0x328   : > { %4172 = vmatprep.subr.bf16.mxu0 %v7996_v61  ;;  %v535_v61 = vld [vmem:[%s8671_s11 + $0x88] sm:$0xff] }
 0x32b   : > { %4173 = vmatpush1.bf16.msra.mxu0 %v7994_v50  ;;  %v7999_v50 = vld [vmem:[#allocation11 + $0x64] ss:$36 sps:$4 sm:$0xff]  }
 0x32c   : > { %4174 = vmatprep.subr.bf16.mxu0 %v8002_v4  ;;  %v537_v4 = vld [vmem:[%s8671_s11 + $0x98] sm:$0xff] }
 0x32d   : > { %3117 = vmatmul.mubr.bf16.gmra.mrb[156].mxu1 %v9048_v1  ;;  %3839 = vmatmul.mubr.bf16.gmra.mrb[12].mxu0 %v9209_v32  ;;  %v528_v1 = vld [vmem:[%s8671_s11 + $0x50] sm:$0xff] }
 0x32e   : > { %3126 = vmatprep.mubr.bf16.mxu1 %v8312_v0  ;;  %3848 = vmatprep.mubr.bf16.mxu0 %v8312_v0  ;;  %v9228_v35 = vpack.c.bf16 %v529_v9, %v528_v1  ;;  %v538_v1 = vld [vmem:[%s8671_s11 + $0xa0] sm:$0xff]  ;;  %v539_v9 = vld [vmem:[%s8671_s11 + $0xa8] sm:$0xff] }
 0x32f   : > { %4175 = vmatpush1.bf16.msra.mxu0 %v8000_v23  ;;  %v7997_v23 = vld [vmem:[#allocation11 + $0x60] ss:$36 sps:$4 sm:$0xff]  }
 0x330   : > { %4176 = vmatprep.subr.bf16.mxu0 %v8008_v38  ;;  %v8005_v38 = vld [vmem:[#allocation11 + $0xac] ss:$36 sps:$4 sm:$0xff]  }
 0x333   : > { %4177 = vmatpush1.bf16.msra.mxu0 %v8006_v44  ;;  %v8011_v44 = vld [vmem:[#allocation11 + $0xf4] ss:$36 sps:$4 sm:$0xff]  }
 0x334   : > { %6968 = vmatprep.subr.bf16.mxu0 %v9217_v2 }
 0x335   : > { %3127 = vmatmul.mubr.bf16.gmra.mrb[160].mxu1 %v9056_v11  ;;  %3849 = vmatmul.mubr.bf16.gmra.mrb[112].mxu0 %v9219_v31  ;;  %v530_v11 = vld [vmem:[%s8671_s11 + $0x60] sm:$0xff] }
 0x336   : > { %3136 = vmatprep.mubr.bf16.mxu1 %v8312_v0  ;;  %3858 = vmatprep.mubr.bf16.mxu0 %v8312_v0  ;;  %v9236_v37 = vpack.c.bf16 %v531_v47, %v530_v11  ;;  %v8009_v11 = vld [vmem:[#allocation11 + $0xf0] ss:$36 sps:$4 sm:$0xff]   ;;  %v8014_v47 = vld [vmem:[#allocation11 + $0x13c] ss:$36 sps:$4 sm:$0xff]  }
 0x33d   : > { %3137 = vmatmul.mubr.bf16.gmra.mrb[164].mxu1 %v9064_v24  ;;  %3859 = vmatmul.mubr.bf16.gmra.mrb[116].mxu0 %v9228_v35  ;;  %v532_v24 = vld [vmem:[%s8671_s11 + $0x70] sm:$0xff] }
 0x33e   : > { %3146 = vmatprep.mubr.bf16.mxu1 %v8312_v0  ;;  %3868 = vmatprep.mubr.bf16.mxu0 %v8312_v0  ;;  %v9244_v51 = vpack.c.bf16 %v533_v20, %v532_v24  ;;  %v9268_v24 = vpack.c.bf16 %v539_v9, %v538_v1  ;;  %v8012_v20 = vld [vmem:[#allocation11 + $0x138] ss:$36 sps:$4 sm:$0xff]   ;;  %v8024_v1 = vld [vmem:[#allocation11 + $0x210] ss:$36 sps:$4 sm:$0xff]  }
 0x345   : > { %3147 = vmatmul.mubr.bf16.gmra.mrb[168].mxu1 %v9072_v49  ;;  %3869 = vmatmul.mubr.bf16.gmra.mrb[120].mxu0 %v9236_v37  ;;  %v534_v49 = vld [vmem:[%s8671_s11 + $0x80] sm:$0xff] }
 0x346   : > { %3156 = vmatprep.mubr.bf16.mxu1 %v8312_v0  ;;  %3878 = vmatprep.mubr.bf16.mxu0 %v8312_v0  ;;  %v9252_v41 = vpack.c.bf16 %v535_v61, %v534_v49  ;;  %v8018_v49 = vld [vmem:[#allocation11 + $0x184] ss:$36 sps:$4 sm:$0xff]   ;;  %v540_v61 = vld [vmem:[%s8671_s11 + $0xb0] sm:$0xff] }
 0x34d   : > { %3157 = vmatmul.mubr.bf16.gmra.mrb[172].mxu1 %v9080_v8  ;;  %3879 = vmatmul.mubr.bf16.gmra.mrb[124].mxu0 %v9244_v51  ;;  %v536_v8 = vld [vmem:[%s8671_s11 + $0x90] sm:$0xff] }
 0x34e   : > { %3888 = vmatprep.mubr.bf16.mxu0 %v8312_v0  ;;  %4001 = vmatprep.mubr.bf16.mxu1 %v8312_v0  ;;  %v9260_v54 = vpack.c.bf16 %v537_v4, %v536_v8  ;;  %v8022_v8 = vld [vmem:[#allocation11 + $0x1cc] ss:$36 sps:$4 sm:$0xff]  }
 0x355   : > { %3889 = vmatmul.mubr.bf16.gmra.mrb[128].mxu0 %v9252_v41  ;;  %4002 = vmatmul.mubr.bf16.vlgmr.msra.gmra.mrb[48].mxu1 %v9185_v16 }
 0x356   : > { %4356 = vmatpush1.bf16.msra.mxu1 %v7991_v63  ;;  %3898 = vmatprep.mubr.bf16.mxu0 %v8312_v0  ;;  %v541_v63 = vld [vmem:[%s8671_s11 + $0xb8] sm:$0xff] }
 0x357   : > { %4011 = vmatprep.mubr.bf16.mxu1 %v8312_v0  ;;  %4357 = vmatprep.subr.bf16.mxu1 %v7999_v50  ;;  %v8016_v50 = vld [vmem:[#allocation11 + $0x180] ss:$36 sps:$4 sm:$0xff]   ;;  %v9276_v4 = vpack.c.bf16 %v541_v63, %v540_v61  ;;  %v547_v61 = vld [vmem:[%s8671_s11 + $0xe8] sm:$0xff] }
 0x35a   : > { %4358 = vmatpush1.bf16.msra.mxu1 %v7997_v23  ;;  %v8020_v23 = vld [vmem:[#allocation11 + $0x1c8] ss:$36 sps:$4 sm:$0xff]  }
 0x35b   : > { %4359 = vmatprep.subr.bf16.mxu1 %v8005_v38  ;;  %v8026_v38 = vld [vmem:[#allocation11 + $0x214] ss:$36 sps:$4 sm:$0xff]  }
 0x35d   : > { %3899 = vmatmul.mubr.bf16.gmra.mrb[132].mxu0 %v9260_v54  ;;  %4012 = vmatmul.mubr.bf16.gmra.mrb[52].mxu1 %v9193_v26 }
 0x35e   : > { %3908 = vmatprep.mubr.bf16.mxu0 %v8312_v0  ;;  %4021 = vmatprep.mubr.bf16.mxu1 %v8312_v0 }
 0x35f   : > { %4360 = vmatpush1.bf16.msra.mxu1 %v8003_v36  ;;  %v542_v36 = vld [vmem:[%s8671_s11 + $0xc0] sm:$0xff] }
 0x360   : > { %4361 = vmatprep.subr.bf16.mxu1 %v8011_v44  ;;  %v543_v44 = vld [vmem:[%s8671_s11 + $0xc8] sm:$0xff] }
 0x361   : > { %v9284_v9 = vpack.c.bf16 %v543_v44, %v542_v36  ;;  %v8023_v36 = vld [vmem:[#allocation11 + $0xb0] ss:$36 sps:$4 sm:$0xff]   ;;  %v8027_v44 = vld [vmem:[#allocation11 + $0xf8] ss:$36 sps:$4 sm:$0xff]  }
 0x363   : > { %4362 = vmatpush1.bf16.msra.mxu1 %v8009_v11  ;;  %v544_v11 = vld [vmem:[%s8671_s11 + $0xd0] sm:$0xff] }
 0x364   : > { %4363 = vmatprep.subr.bf16.mxu1 %v8014_v47  ;;  %v545_v47 = vld [vmem:[%s8671_s11 + $0xd8] sm:$0xff] }
 0x365   : > { %3909 = vmatmul.mubr.bf16.gmra.mrb[136].mxu0 %v9268_v24  ;;  %4022 = vmatmul.mubr.bf16.gmra.mrb[56].mxu1 %v9201_v19 }
 0x366   : > { %3918 = vmatprep.mubr.bf16.mxu0 %v8312_v0  ;;  %4031 = vmatprep.mubr.bf16.mxu1 %v8312_v0 }
 0x367   : > { %4364 = vmatpush1.bf16.msra.mxu1 %v8012_v20  ;;  %v9292_v20 = vpack.c.bf16 %v545_v47, %v544_v11  ;;  %v8030_v11 = vld [vmem:[#allocation11 + $0x1d0] ss:$36 sps:$4 sm:$0xff]   ;;  %v8031_v47 = vld [vmem:[#allocation11 + $0x218] ss:$36 sps:$4 sm:$0xff]  }
 0x368   : > { %4365 = vmatprep.subr.bf16.mxu1 %v8018_v49  ;;  %v546_v49 = vld [vmem:[%s8671_s11 + $0xe0] sm:$0xff] }
 0x369   : > { %v9300_v63 = vpack.c.bf16 %v547_v61, %v546_v49 }
 0x36b   : > { %4366 = vmatpush1.bf16.msra.mxu1 %v8016_v50  ;;  %v548_v50 = vld [vmem:[%s8671_s11 + $0xf0] sm:$0xff] }
 0x36c   : > { %4367 = vmatprep.subr.bf16.mxu1 %v8022_v8  ;;  %v549_v8 = vld [vmem:[%s8671_s11 + $0xf8] sm:$0xff] }
 0x36d   : > { %3919 = vmatmul.mubr.bf16.gmra.mrb[140].mxu0 %v9276_v4  ;;  %4032 = vmatmul.mubr.bf16.gmra.mrb[60].mxu1 %v9209_v32 }
 0x36e   : > { %3928 = vmatprep.mubr.bf16.mxu0 %v8312_v0  ;;  %4041 = vmatprep.mubr.bf16.mxu1 %v8312_v0 }
 0x36f   : > { %4368 = vmatpush1.bf16.msra.mxu1 %v8020_v23  ;;  %v9308_v23 = vpack.c.bf16 %v549_v8, %v548_v50 }
 0x370   : > { %4369 = vmatprep.subr.bf16.mxu1 %v8026_v38  ;;  %v8019_v38 = vld [vmem:[#allocation11 + $0x68] ss:$36 sps:$4 sm:$0xff]  }
 0x373   : > { %4370 = vmatpush1.bf16.msra.mxu1 %v8024_v1  ;;  %v8029_v1 = vld [vmem:[#allocation11 + $0x188] ss:$36 sps:$4 sm:$0xff]  }
 0x375   : > { %3929 = vmatmul.mubr.bf16.gmra.mrb[144].mxu0 %v9284_v9  ;;  %4042 = vmatmul.mubr.bf16.gmra.mrb[64].mxu1 %v9219_v31 }
 0x376   : > { %3938 = vmatprep.mubr.bf16.mxu0 %v8312_v0  ;;  %4051 = vmatprep.mubr.bf16.mxu1 %v8312_v0 }
 0x37d   : > { %3939 = vmatmul.mubr.bf16.gmra.mrb[148].mxu0 %v9292_v20  ;;  %4052 = vmatmul.mubr.bf16.gmra.mrb[68].mxu1 %v9228_v35 }
 0x37e   : > { %3948 = vmatprep.mubr.bf16.mxu0 %v8312_v0  ;;  %4061 = vmatprep.mubr.bf16.mxu1 %v8312_v0 }
 0x385   : > { %3949 = vmatmul.mubr.bf16.gmra.mrb[152].mxu0 %v9300_v63  ;;  %4062 = vmatmul.mubr.bf16.gmra.mrb[72].mxu1 %v9236_v37 }
 0x386   : > { %3958 = vmatprep.mubr.bf16.mxu0 %v8312_v0  ;;  %4071 = vmatprep.mubr.bf16.mxu1 %v8312_v0 }
 0x38d   : > { %3959 = vmatmul.mubr.bf16.gmra.mrb[156].mxu0 %v9308_v23  ;;  %4072 = vmatmul.mubr.bf16.gmra.mrb[76].mxu1 %v9244_v51 }
 0x38e   : > { %4081 = vmatprep.mubr.bf16.mxu1 %v8312_v0  ;;  %4194 = vmatprep.mubr.bf16.mxu0 %v8312_v0 }
 0x395   : > { %4082 = vmatmul.mubr.bf16.gmra.mrb[80].mxu1 %v9252_v41  ;;  %4195 = vmatmul.mubr.bf16.vlgmr.msra.gmra.mrb[16].mxu0 %v9185_v16 }
 0x396   : > { %6969 = vmatpush3.bf16.msra.mxu0 %v9217_v2  ;;  %4091 = vmatprep.mubr.bf16.mxu1 %v8312_v0  ;;  %v8028_v2 = vld [vmem:[#allocation11 + $0x140] ss:$36 sps:$4 sm:$0xff]  }
 0x397   : > { %4204 = vmatprep.mubr.bf16.mxu0 %v8312_v0  ;;  %6970 = vmatprep.subr.bf16.mxu0 %v8019_v38 }
 0x39a   : > { %6971 = vmatpush3.bf16.msra.mxu0 %v8019_v38 }
 0x39b   : > { %6972 = vmatprep.subr.bf16.mxu0 %v8023_v36 }
 0x39d   : > { %4092 = vmatmul.mubr.bf16.gmra.mrb[84].mxu1 %v9260_v54  ;;  %4205 = vmatmul.mubr.bf16.gmra.mrb[20].mxu0 %v9193_v26 }
 0x39e   : > { %4101 = vmatprep.mubr.bf16.mxu1 %v8312_v0  ;;  %4214 = vmatprep.mubr.bf16.mxu0 %v8312_v0 }
 0x39f   : > { %6973 = vmatpush3.bf16.msra.mxu0 %v8023_v36 }
 0x3a0   : > { %6974 = vmatprep.subr.bf16.mxu0 %v8027_v44 }
 0x3a3   : > { %6975 = vmatpush3.bf16.msra.mxu0 %v8027_v44 }
 0x3a4   : > { %6976 = vmatprep.subr.bf16.mxu0 %v8028_v2 }
 0x3a5   : > { %4102 = vmatmul.mubr.bf16.gmra.mrb[88].mxu1 %v9268_v24  ;;  %4215 = vmatmul.mubr.bf16.gmra.mrb[24].mxu0 %v9201_v19 }
 0x3a6   : > { %4111 = vmatprep.mubr.bf16.mxu1 %v8312_v0  ;;  %4224 = vmatprep.mubr.bf16.mxu0 %v8312_v0 }
 0x3a7   : > { %6977 = vmatpush3.bf16.msra.mxu0 %v8028_v2 }
 0x3a8   : > { %6978 = vmatprep.subr.bf16.mxu0 %v8029_v1 }
 0x3ab   : > { %6979 = vmatpush3.bf16.msra.mxu0 %v8029_v1 }
 0x3ac   : > { %6980 = vmatprep.subr.bf16.mxu0 %v8030_v11 }
 0x3ad   : > { %4112 = vmatmul.mubr.bf16.gmra.mrb[92].mxu1 %v9276_v4  ;;  %4225 = vmatmul.mubr.bf16.gmra.mrb[28].mxu0 %v9209_v32 }
 0x3ae   : > { %4121 = vmatprep.mubr.bf16.mxu1 %v8312_v0  ;;  %4234 = vmatprep.mubr.bf16.mxu0 %v8312_v0 }
 0x3af   : > { %6981 = vmatpush3.bf16.msra.mxu0 %v8030_v11 }
 0x3b0   : > { %6982 = vmatprep.subr.bf16.mxu0 %v8031_v47 }
 0x3b3   : > { %6983 = vmatpush3.bf16.msra.mxu0 %v8031_v47 }
 0x3b5   : > { %4122 = vmatmul.mubr.bf16.gmra.mrb[96].mxu1 %v9284_v9  ;;  %4235 = vmatmul.mubr.bf16.gmra.mrb[32].mxu0 %v9219_v31 }
 0x3b6   : > { %4131 = vmatprep.mubr.bf16.mxu1 %v8312_v0  ;;  %4244 = vmatprep.mubr.bf16.mxu0 %v8312_v0 }
 0x3bd   : > { %4132 = vmatmul.mubr.bf16.gmra.mrb[100].mxu1 %v9292_v20  ;;  %4245 = vmatmul.mubr.bf16.gmra.mrb[36].mxu0 %v9228_v35 }
 0x3be   : > { %4141 = vmatprep.mubr.bf16.mxu1 %v8312_v0  ;;  %4254 = vmatprep.mubr.bf16.mxu0 %v8312_v0 }
 0x3c5   : > { %4142 = vmatmul.mubr.bf16.gmra.mrb[104].mxu1 %v9300_v63  ;;  %4255 = vmatmul.mubr.bf16.gmra.mrb[40].mxu0 %v9236_v37 }
 0x3c6   : > { %4151 = vmatprep.mubr.bf16.mxu1 %v8312_v0  ;;  %4264 = vmatprep.mubr.bf16.mxu0 %v8312_v0 }
 0x3cd   : > { %4152 = vmatmul.mubr.bf16.gmra.mrb[108].mxu1 %v9308_v23  ;;  %4265 = vmatmul.mubr.bf16.gmra.mrb[44].mxu0 %v9244_v51 }
 0x3ce   : > { %4274 = vmatprep.mubr.bf16.mxu0 %v8312_v0  ;;  %4387 = vmatprep.mubr.bf16.mxu1 %v8312_v0 }
 0x3d5   : > { %4275 = vmatmul.mubr.bf16.gmra.mrb[48].mxu0 %v9252_v41  ;;  %4388 = vmatmul.mubr.bf16.vlgmr.msra.gmra.mrb[112].mxu1 %v9185_v16 }
 0x3d6   : > { %4284 = vmatprep.mubr.bf16.mxu0 %v8312_v0  ;;  %4397 = vmatprep.mubr.bf16.mxu1 %v8312_v0 }
 0x3dd   : > { %4285 = vmatmul.mubr.bf16.gmra.mrb[52].mxu0 %v9260_v54  ;;  %4398 = vmatmul.mubr.bf16.gmra.mrb[116].mxu1 %v9193_v26 }
 0x3de   : > { %4294 = vmatprep.mubr.bf16.mxu0 %v8312_v0  ;;  %4407 = vmatprep.mubr.bf16.mxu1 %v8312_v0 }
 0x3e5   : > { %4295 = vmatmul.mubr.bf16.gmra.mrb[56].mxu0 %v9268_v24  ;;  %4408 = vmatmul.mubr.bf16.gmra.mrb[120].mxu1 %v9201_v19 }
 0x3e6   : > { %4304 = vmatprep.mubr.bf16.mxu0 %v8312_v0  ;;  %4417 = vmatprep.mubr.bf16.mxu1 %v8312_v0 }
 0x3e8   : > { %v3810_v49 = vpop.f32.mrb[0].mxu0 }
 0x3e9   : > { %v3812_v61 = vpop.f32.mrb[1].mxu0 }
 0x3ea   : > { %v6640_v50 = vpack.c.bf16 %v3812_v61, %v3810_v49  ;;  %v3814_v8 = vpop.f32.mrb[2].mxu0 }
 0x3eb   : > { %v3816_v38 = vpop.f32.mrb[3].mxu0 }
 0x3ec   : > { %5893 = vst [vmem:[%s9360_s30] sm:$0xff] %v6640_v50  ;;  %v6645_v36 = vpack.c.bf16 %v3816_v38, %v3814_v8 }
 0x3ed   : > { %4305 = vmatmul.mubr.bf16.gmra.mrb[60].mxu0 %v9276_v4  ;;  %4418 = vmatmul.mubr.bf16.gmra.mrb[124].mxu1 %v9209_v32 }
 0x3ee   : > { %5898 = vst [vmem:[%s9360_s30 + $0x24] sm:$0xff] %v6645_v36  ;;  %4314 = vmatprep.mubr.bf16.mxu0 %v8312_v0  ;;  %4427 = vmatprep.mubr.bf16.mxu1 %v8312_v0 }
 0x3f0   : > { %v3820_v44 = vpop.f32.mrb[4].mxu0 }
 0x3f1   : > { %v3822_v2 = vpop.f32.mrb[5].mxu0 }
 0x3f2   : > { %v6650_v1 = vpack.c.bf16 %v3822_v2, %v3820_v44  ;;  %v3824_v11 = vpop.f32.mrb[6].mxu0 }
 0x3f3   : > { %v3826_v47 = vpop.f32.mrb[7].mxu0 }
 0x3f4   : > { %5903 = vst [vmem:[%s9360_s30 + $0x48] sm:$0xff] %v6650_v1  ;;  %v6655_v49 = vpack.c.bf16 %v3826_v47, %v3824_v11 }
 0x3f5   : > { %4315 = vmatmul.mubr.bf16.gmra.mrb[64].mxu0 %v9284_v9  ;;  %4428 = vmatmul.mubr.bf16.gmra.mrb[128].mxu1 %v9219_v31 }
 0x3f6   : > { %5908 = vst [vmem:[%s9360_s30 + $0x6c] sm:$0xff] %v6655_v49  ;;  %4324 = vmatprep.mubr.bf16.mxu0 %v8312_v0  ;;  %4437 = vmatprep.mubr.bf16.mxu1 %v8312_v0 }
 0x3f8   : > { %v3830_v61 = vpop.f32.mrb[8].mxu0 }
 0x3f9   : > { %v3832_v50 = vpop.f32.mrb[9].mxu0 }
 0x3fa   : > { %v6660_v8 = vpack.c.bf16 %v3832_v50, %v3830_v61  ;;  %v3834_v38 = vpop.f32.mrb[10].mxu0 }
 0x3fb   : > { %v3836_v36 = vpop.f32.mrb[11].mxu0 }
 0x3fc   : > { %5913 = vst [vmem:[%s9360_s30 + $0x90] sm:$0xff] %v6660_v8  ;;  %v6665_v44 = vpack.c.bf16 %v3836_v36, %v3834_v38 }
 0x3fd   : > { %4325 = vmatmul.mubr.bf16.gmra.mrb[68].mxu0 %v9292_v20  ;;  %4438 = vmatmul.mubr.bf16.gmra.mrb[132].mxu1 %v9228_v35 }
 0x3fe   : > { %5918 = vst [vmem:[%s9360_s30 + $0xb4] sm:$0xff] %v6665_v44  ;;  %4334 = vmatprep.mubr.bf16.mxu0 %v8312_v0  ;;  %4447 = vmatprep.mubr.bf16.mxu1 %v8312_v0 }
 0x400   : > { %v3840_v2 = vpop.f32.mrb[12].mxu0 }
 0x401   : > { %v3842_v1 = vpop.f32.mrb[13].mxu0 }
 0x402   : > { %v6670_v11 = vpack.c.bf16 %v3842_v1, %v3840_v2  ;;  %v3844_v47 = vpop.f32.mrb[14].mxu0 }
 0x403   : > { %v3846_v49 = vpop.f32.mrb[15].mxu0 }
 0x404   : > { %5923 = vst [vmem:[%s9360_s30 + $0xd8] sm:$0xff] %v6670_v11  ;;  %v6675_v61 = vpack.c.bf16 %v3846_v49, %v3844_v47 }
 0x405   : > { %4335 = vmatmul.mubr.bf16.gmra.mrb[72].mxu0 %v9300_v63  ;;  %4448 = vmatmul.mubr.bf16.gmra.mrb[136].mxu1 %v9236_v37 }
 0x406   : > { %5928 = vst [vmem:[%s9360_s30 + $0xfc] sm:$0xff] %v6675_v61  ;;  %4344 = vmatprep.mubr.bf16.mxu0 %v8312_v0  ;;  %4457 = vmatprep.mubr.bf16.mxu1 %v8312_v0 }
 0x408   : > { %v3850_v50 = vpop.f32.mrb[112].mxu0 }
 0x409   : > { %v7032_v8 = vadd.f32 %v3850_v50, %v8855_v25  ;;  %v3852_v38 = vpop.f32.mrb[113].mxu0 }
 0x40a   : > { %v7033_v36 = vadd.f32 %v3852_v38, %v8857_v27  ;;  %v3854_v44 = vpop.f32.mrb[114].mxu0 }
 0x40b   : > { %v7034_v2 = vadd.f32 %v3854_v44, %v8859_v28  ;;  %v3856_v1 = vpop.f32.mrb[115].mxu0 }
 0x40c   : > { %v6680_v11 = vpack.c.bf16 %v7033_v36, %v7032_v8  ;;  %v7035_v47 = vadd.f32 %v3856_v1, %v8861_v29 }
 0x40d   : > { %4345 = vmatmul.mubr.bf16.gmra.mrb[76].mxu0 %v9308_v23  ;;  %4458 = vmatmul.mubr.bf16.gmra.mrb[140].mxu1 %v9244_v51 }
 0x40e   : > { %5933 = vst [vmem:[%s9360_s30 + $0x120] sm:$0xff] %v6680_v11  ;;  %v6685_v49 = vpack.c.bf16 %v7035_v47, %v7034_v2  ;;  %4467 = vmatprep.mubr.bf16.mxu1 %v8312_v0  ;;  %6984 = vmatprep.mubr.bf16.mxu0 %v9185_v16 }
 0x410   : > { %5938 = vst [vmem:[%s9360_s30 + $0x144] sm:$0xff] %v6685_v49  ;;  %v3860_v25 = vpop.f32.mrb[116].mxu0 }
 0x411   : > { %v7036_v27 = vadd.f32 %v3860_v25, %v8869_v33  ;;  %v3862_v28 = vpop.f32.mrb[117].mxu0 }
 0x412   : > { %v7037_v61 = vadd.f32 %v3862_v28, %v8871_v34  ;;  %v3864_v29 = vpop.f32.mrb[118].mxu0 }
 0x413   : > { %v7038_v50 = vadd.f32 %v3864_v29, %v8875_v39  ;;  %v3866_v8 = vpop.f32.mrb[119].mxu0 }
 0x414   : > { %v6690_v38 = vpack.c.bf16 %v7037_v61, %v7036_v27  ;;  %v7039_v36 = vadd.f32 %v3866_v8, %v8877_v43 }
 0x415   : > { %4468 = vmatmul.mubr.bf16.gmra.mrb[144].mxu1 %v9252_v41  ;;  %6985 = vmatmul.mubr.bf16.vlgmr.msra.gmra.mrb[80].mxu0 %v9193_v26 }
 0x416   : > { %5943 = vst [vmem:[%s9360_s30 + $0x168] sm:$0xff] %v6690_v38  ;;  %v6695_v16 = vpack.c.bf16 %v7039_v36, %v7038_v50  ;;  %4477 = vmatprep.mubr.bf16.mxu1 %v8312_v0  ;;  %6988 = vmatprep.mubr.bf16.mxu0 %v9201_v19 }
 0x418   : > { %5948 = vst [vmem:[%s9360_s30 + $0x18c] sm:$0xff] %v6695_v16  ;;  %v3870_v33 = vpop.f32.mrb[120].mxu0 }
 0x419   : > { %v7040_v34 = vadd.f32 %v3870_v33, %v8885_v56  ;;  %v3872_v39 = vpop.f32.mrb[121].mxu0 }
 0x41a   : > { %v7041_v44 = vadd.f32 %v3872_v39, %v8887_v57  ;;  %v3874_v43 = vpop.f32.mrb[122].mxu0 }
 0x41b   : > { %v7042_v2 = vadd.f32 %v3874_v43, %v8891_v58  ;;  %v3876_v1 = vpop.f32.mrb[123].mxu0 }
 0x41c   : > { %v6700_v26 = vpack.c.bf16 %v7041_v44, %v7040_v34  ;;  %v7043_v11 = vadd.f32 %v3876_v1, %v8893_v59 }
 0x41d   : > { %4478 = vmatmul.mubr.bf16.gmra.mrb[148].mxu1 %v9260_v54  ;;  %6989 = vmatmul.mubr.bf16.gmra.mrb[84].mxu0 %v9209_v32 }
 0x41e   : > { %5953 = vst [vmem:[%s9360_s30 + $0x1b0] sm:$0xff] %v6700_v26  ;;  %v6705_v19 = vpack.c.bf16 %v7043_v11, %v7042_v2  ;;  %4487 = vmatprep.mubr.bf16.mxu1 %v8312_v0  ;;  %6992 = vmatprep.mubr.bf16.mxu0 %v9219_v31 }
 0x420   : > { %5958 = vst [vmem:[%s9360_s30 + $0x1d4] sm:$0xff] %v6705_v19  ;;  %v3880_v56 = vpop.f32.mrb[124].mxu0 }
 0x421   : > { %v7044_v57 = vadd.f32 %v3880_v56, %v8901_v7  ;;  %v3882_v58 = vpop.f32.mrb[125].mxu0 }
 0x422   : > { %v7045_v47 = vadd.f32 %v3882_v58, %v8903_v10  ;;  %v3884_v59 = vpop.f32.mrb[126].mxu0 }
 0x423   : > { %v7046_v49 = vadd.f32 %v3884_v59, %v8907_v12  ;;  %v3886_v25 = vpop.f32.mrb[127].mxu0 }
 0x424   : > { %v6710_v32 = vpack.c.bf16 %v7045_v47, %v7044_v57  ;;  %v7047_v27 = vadd.f32 %v3886_v25, %v8909_v13 }
 0x425   : > { %4488 = vmatmul.mubr.bf16.gmra.mrb[152].mxu1 %v9268_v24  ;;  %6993 = vmatmul.mubr.bf16.gmra.mrb[88].mxu0 %v9228_v35 }
 0x426   : > { %5963 = vst [vmem:[%s9360_s30 + $0x1f8] sm:$0xff] %v6710_v32  ;;  %v6715_v31 = vpack.c.bf16 %v7047_v27, %v7046_v49  ;;  %4497 = vmatprep.mubr.bf16.mxu1 %v8312_v0  ;;  %6996 = vmatprep.mubr.bf16.mxu0 %v9236_v37 }
 0x428   : > { %5968 = vst [vmem:[%s9360_s30 + $0x21c] sm:$0xff] %v6715_v31  ;;  %v3890_v7 = vpop.f32.mrb[128].mxu0  ;;  %v4003_v10 = vpop.f32.mrb[48].mxu1 }
 0x429   : > { %v7048_v12 = vadd.f32 %v3890_v7, %v8917_v30  ;;  %v3892_v28 = vpop.f32.mrb[129].mxu0  ;;  %v4005_v61 = vpop.f32.mrb[49].mxu1 }
 0x42a   : > { %v7049_v13 = vadd.f32 %v3892_v28, %v8919_v42  ;;  %v6641_v29 = vpack.c.bf16 %v4005_v61, %v4003_v10  ;;  %v3894_v35 = vpop.f32.mrb[130].mxu0  ;;  %v4007_v50 = vpop.f32.mrb[50].mxu1 }
 0x42b   : > { %v7050_v8 = vadd.f32 %v3894_v35, %v8923_v45  ;;  %v3896_v38 = vpop.f32.mrb[131].mxu0  ;;  %v4009_v36 = vpop.f32.mrb[51].mxu1 }
 0x42c   : > { %v6720_v37 = vpack.c.bf16 %v7049_v13, %v7048_v12  ;;  %5894 = vst [vmem:[%s9360_s30 + $0x8] sm:$0xff] %v6641_v29  ;;  %v7051_v16 = vadd.f32 %v3896_v38, %v8925_v46  ;;  %v6646_v33 = vpack.c.bf16 %v4009_v36, %v4007_v50 }
 0x42d   : > { %4498 = vmatmul.mubr.bf16.gmra.mrb[156].mxu1 %v9276_v4  ;;  %6997 = vmatmul.mubr.bf16.gmra.mrb[92].mxu0 %v9244_v51 }
 0x42e   : > { %5973 = vst [vmem:[%s9360_s30 + $0x240] sm:$0xff] %v6720_v37  ;;  %v6725_v30 = vpack.c.bf16 %v7051_v16, %v7050_v8  ;;  %5899 = vst [vmem:[%s9360_s30 + $0x2c] sm:$0xff] %v6646_v33  ;;  %4507 = vmatprep.mubr.bf16.mxu1 %v8312_v0  ;;  %7000 = vmatprep.mubr.bf16.mxu0 %v9252_v41 }
 0x430   : > { %5978 = vst [vmem:[%s9360_s30 + $0x264] sm:$0xff] %v6725_v30  ;;  %v3900_v42 = vpop.f32.mrb[132].mxu0  ;;  %v4013_v45 = vpop.f32.mrb[52].mxu1 }
 0x431   : > { %v7052_v34 = vadd.f32 %v3900_v42, %v8933_v62  ;;  %v3902_v46 = vpop.f32.mrb[133].mxu0  ;;  %v4015_v39 = vpop.f32.mrb[53].mxu1 }
 0x432   : > { %v7053_v44 = vadd.f32 %v3902_v46, %v8937_v3  ;;  %v6651_v51 = vpack.c.bf16 %v4015_v39, %v4013_v45  ;;  %v3904_v43 = vpop.f32.mrb[134].mxu0  ;;  %v4017_v2 = vpop.f32.mrb[54].mxu1 }
 0x433   : > { %v7054_v1 = vadd.f32 %v3904_v43, %v8941_v5  ;;  %v3906_v26 = vpop.f32.mrb[135].mxu0  ;;  %v4019_v11 = vpop.f32.mrb[55].mxu1 }
 0x434   : > { %v6730_v41 = vpack.c.bf16 %v7053_v44, %v7052_v34  ;;  %5904 = vst [vmem:[%s9360_s30 + $0x50] sm:$0xff] %v6651_v51  ;;  %v7055_v19 = vadd.f32 %v3906_v26, %v8943_v6  ;;  %v6656_v56 = vpack.c.bf16 %v4019_v11, %v4017_v2 }
 0x435   : > { %4508 = vmatmul.mubr.bf16.gmra.mrb[160].mxu1 %v9284_v9  ;;  %7001 = vmatmul.mubr.bf16.gmra.mrb[96].mxu0 %v9260_v54 }
 0x436   : > { %5983 = vst [vmem:[%s9360_s30 + $0x288] sm:$0xff] %v6730_v41  ;;  %v6735_v62 = vpack.c.bf16 %v7055_v19, %v7054_v1  ;;  %5909 = vst [vmem:[%s9360_s30 + $0x74] sm:$0xff] %v6656_v56  ;;  %4517 = vmatprep.mubr.bf16.mxu1 %v8312_v0  ;;  %7004 = vmatprep.mubr.bf16.mxu0 %v9268_v24 }
 0x438   : > { %5988 = vst [vmem:[%s9360_s30 + $0x2ac] sm:$0xff] %v6735_v62  ;;  %v3910_v3 = vpop.f32.mrb[136].mxu0  ;;  %v4023_v5 = vpop.f32.mrb[56].mxu1 }
 0x439   : > { %v7056_v57 = vadd.f32 %v3910_v3, %v8952_v14  ;;  %v3912_v6 = vpop.f32.mrb[137].mxu0  ;;  %v4025_v58 = vpop.f32.mrb[57].mxu1  ;;  %v9766_v3 = vld [vmem:[#allocation29_spill] sm:$0xff] }
 0x43a   : > { %v7057_v47 = vadd.f32 %v3912_v6, %v8954_v15  ;;  %v6661_v54 = vpack.c.bf16 %v4025_v58, %v4023_v5  ;;  %v3914_v59 = vpop.f32.mrb[138].mxu0  ;;  %v4027_v49 = vpop.f32.mrb[58].mxu1 }
 0x43b   : > { %v7058_v25 = vadd.f32 %v3914_v59, %v8958_v17  ;;  %v3916_v32 = vpop.f32.mrb[139].mxu0  ;;  %v4029_v27 = vpop.f32.mrb[59].mxu1 }
 0x43c   : > { %v6740_v24 = vpack.c.bf16 %v7057_v47, %v7056_v57  ;;  %5914 = vst [vmem:[%s9360_s30 + $0x98] sm:$0xff] %v6661_v54  ;;  %v7059_v31 = vadd.f32 %v3916_v32, %v8960_v18  ;;  %v6666_v7 = vpack.c.bf16 %v4029_v27, %v4027_v49  ;;  %v9767_v54 = vld [vmem:[#allocation30_spill] sm:$0xff]  ;;  %v9768_v32 = vld [vmem:[#allocation31_spill] sm:$0xff] }
 0x43d   : > { %4518 = vmatmul.mubr.bf16.gmra.mrb[164].mxu1 %v9292_v20  ;;  %7005 = vmatmul.mubr.bf16.gmra.mrb[100].mxu0 %v9276_v4 }
 0x43e   : > { %5993 = vst [vmem:[%s9360_s30 + $0x2d0] sm:$0xff] %v6740_v24  ;;  %v6745_v14 = vpack.c.bf16 %v7059_v31, %v7058_v25  ;;  %5919 = vst [vmem:[%s9360_s30 + $0xbc] sm:$0xff] %v6666_v7  ;;  %4527 = vmatprep.mubr.bf16.mxu1 %v8312_v0  ;;  %7008 = vmatprep.mubr.bf16.mxu0 %v9284_v9 }
 0x440   : > { %5998 = vst [vmem:[%s9360_s30 + $0x2f4] sm:$0xff] %v6745_v14  ;;  %v3920_v15 = vpop.f32.mrb[140].mxu0  ;;  %v4033_v17 = vpop.f32.mrb[60].mxu1  ;;  %v9769_v14 = vld [vmem:[#allocation32_spill] sm:$0xff] }
 0x441   : > { %v7060_v10 = vadd.f32 %v3920_v15, %v8968_v21  ;;  %v3922_v18 = vpop.f32.mrb[141].mxu0  ;;  %v4035_v12 = vpop.f32.mrb[61].mxu1 }
 0x442   : > { %v7061_v28 = vadd.f32 %v3922_v18, %v8970_v22  ;;  %v6671_v4 = vpack.c.bf16 %v4035_v12, %v4033_v17  ;;  %v3924_v61 = vpop.f32.mrb[142].mxu0  ;;  %v4037_v13 = vpop.f32.mrb[62].mxu1  ;;  %v9770_v12 = vld [vmem:[#allocation33_spill] sm:$0xff] }
 0x443   : > { %v7062_v29 = vadd.f32 %v3924_v61, %v8974_v40  ;;  %v3926_v35 = vpop.f32.mrb[143].mxu0  ;;  %v4039_v50 = vpop.f32.mrb[63].mxu1 }
 0x444   : > { %v6750_v9 = vpack.c.bf16 %v7061_v28, %v7060_v10  ;;  %5924 = vst [vmem:[%s9360_s30 + $0xe0] sm:$0xff] %v6671_v4  ;;  %v7063_v8 = vadd.f32 %v3926_v35, %v8976_v48  ;;  %v6676_v38 = vpack.c.bf16 %v4039_v50, %v4037_v13  ;;  %v9771_v35 = vld [vmem:[#allocation34_spill] sm:$0xff] }
 0x445   : > { %4528 = vmatmul.mubr.bf16.gmra.mrb[168].mxu1 %v9300_v63  ;;  %7009 = vmatmul.mubr.bf16.gmra.mrb[104].mxu0 %v9292_v20 }
 0x446   : > { %6003 = vst [vmem:[%s9360_s30 + $0x318] sm:$0xff] %v6750_v9  ;;  %v6755_v21 = vpack.c.bf16 %v7063_v8, %v7062_v29  ;;  %5929 = vst [vmem:[%s9360_s30 + $0x104] sm:$0xff] %v6676_v38  ;;  %4537 = vmatprep.mubr.bf16.mxu1 %v8312_v0  ;;  %7012 = vmatprep.mubr.bf16.mxu0 %v9300_v63  ;;  %v9772_v38 = vld [vmem:[#allocation35_spill] sm:$0xff] }
 0x448   : > { %6008 = vst [vmem:[%s9360_s30 + $0x33c] sm:$0xff] %v6755_v21  ;;  %v3930_v22 = vpop.f32.mrb[144].mxu0  ;;  %v4043_v40 = vpop.f32.mrb[64].mxu1 }
 0x449   : > { %v7064_v36 = vadd.f32 %v3930_v22, %v8984_v52  ;;  %v3932_v48 = vpop.f32.mrb[145].mxu0  ;;  %v4045_v37 = vpop.f32.mrb[65].mxu1 }
 0x44a   : > { %v7065_v16 = vadd.f32 %v3932_v48, %v8986_v53  ;;  %v6681_v20 = vpack.c.bf16 %v4045_v37, %v4043_v40  ;;  %v3934_v33 = vpop.f32.mrb[146].mxu0  ;;  %v4047_v30 = vpop.f32.mrb[66].mxu1  ;;  %v9773_v48 = vld [vmem:[#allocation36_spill] sm:$0xff] }
 0x44b   : > { %v7066_v0 = vadd.f32 %v3934_v33, %v8990_v55  ;;  %v3936_v42 = vpop.f32.mrb[147].mxu0  ;;  %v4049_v45 = vpop.f32.mrb[67].mxu1  ;;  %v9763_v55 = vld [vmem:[#allocation26_spill] sm:$0xff] }
 0x44c   : > { %v6760_v63 = vpack.c.bf16 %v7065_v16, %v7064_v36  ;;  %5934 = vst [vmem:[%s9360_s30 + $0x128] sm:$0xff] %v6681_v20  ;;  %v7067_v34 = vadd.f32 %v3936_v42, %v8992_v60  ;;  %v6686_v46 = vpack.c.bf16 %v4049_v45, %v4047_v30  ;;  %v9764_v60 = vld [vmem:[#allocation27_spill] sm:$0xff]  ;;  %v9774_v30 = vld [vmem:[#allocation37_spill] sm:$0xff] }
 0x44d   : > { %4538 = vmatmul.mubr.bf16.gmra.mrb[172].mxu1 %v9308_v23  ;;  %7013 = vmatmul.mubr.bf16.gmra.mrb[108].mxu0 %v9308_v23  ;;  %v9765_v23 = vld [vmem:[#allocation28_spill] sm:$0xff] }
 0x44e   : > { %6013 = vst [vmem:[%s9360_s30 + $0x360] sm:$0xff] %v6760_v63  ;;  %v6765_v52 = vpack.c.bf16 %v7067_v34, %v7066_v0  ;;  %5939 = vst [vmem:[%s9360_s30 + $0x14c] sm:$0xff] %v6686_v46 }
 0x450   : > { %6018 = vst [vmem:[%s9360_s30 + $0x384] sm:$0xff] %v6765_v52  ;;  %v3940_v53 = vpop.f32.mrb[148].mxu0  ;;  %v4053_v39 = vpop.f32.mrb[68].mxu1 }
 0x451   : > { %v7068_v44 = vadd.f32 %v3940_v53, %v9763_v55  ;;  %v3942_v51 = vpop.f32.mrb[149].mxu0  ;;  %v4055_v43 = vpop.f32.mrb[69].mxu1 }
 0x452   : > { %v7069_v2 = vadd.f32 %v3942_v51, %v9764_v60  ;;  %v6691_v1 = vpack.c.bf16 %v4055_v43, %v4053_v39  ;;  %v3944_v26 = vpop.f32.mrb[150].mxu0  ;;  %v4057_v11 = vpop.f32.mrb[70].mxu1 }
 0x453   : > { %v7070_v41 = vadd.f32 %v3944_v26, %v9765_v23  ;;  %v3946_v19 = vpop.f32.mrb[151].mxu0  ;;  %v4059_v56 = vpop.f32.mrb[71].mxu1 }
 0x454   : > { %v6770_v62 = vpack.c.bf16 %v7069_v2, %v7068_v44  ;;  %5944 = vst [vmem:[%s9360_s30 + $0x170] sm:$0xff] %v6691_v1  ;;  %v7071_v5 = vadd.f32 %v3946_v19, %v9766_v3  ;;  %v6696_v57 = vpack.c.bf16 %v4059_v56, %v4057_v11 }
 0x456   : > { %6023 = vst [vmem:[%s9360_s30 + $0x3a8] sm:$0xff] %v6770_v62  ;;  %v6775_v6 = vpack.c.bf16 %v7071_v5, %v7070_v41  ;;  %5949 = vst [vmem:[%s9360_s30 + $0x194] sm:$0xff] %v6696_v57 }
 0x458   : > { %6028 = vst [vmem:[%s9360_s30 + $0x3cc] sm:$0xff] %v6775_v6  ;;  %v3950_v58 = vpop.f32.mrb[152].mxu0  ;;  %v4063_v47 = vpop.f32.mrb[72].mxu1 }
 0x459   : > { %v7072_v59 = vadd.f32 %v3950_v58, %v9767_v54  ;;  %v3952_v49 = vpop.f32.mrb[153].mxu0  ;;  %v4065_v25 = vpop.f32.mrb[73].mxu1 }
 0x45a   : > { %v7073_v27 = vadd.f32 %v3952_v49, %v9768_v32  ;;  %v6701_v24 = vpack.c.bf16 %v4065_v25, %v4063_v47  ;;  %v3954_v31 = vpop.f32.mrb[154].mxu0  ;;  %v4067_v7 = vpop.f32.mrb[74].mxu1 }
 0x45b   : > { %v7074_v15 = vadd.f32 %v3954_v31, %v9769_v14  ;;  %v3956_v17 = vpop.f32.mrb[155].mxu0  ;;  %v4069_v10 = vpop.f32.mrb[75].mxu1 }
 0x45c   : > { %v6780_v18 = vpack.c.bf16 %v7073_v27, %v7072_v59  ;;  %5954 = vst [vmem:[%s9360_s30 + $0x1b8] sm:$0xff] %v6701_v24  ;;  %v7075_v28 = vadd.f32 %v3956_v17, %v9770_v12  ;;  %v6706_v4 = vpack.c.bf16 %v4069_v10, %v4067_v7 }
 0x45e   : > { %6033 = vst [vmem:[%s9360_s30 + $0x3f0] sm:$0xff] %v6780_v18  ;;  %v6785_v61 = vpack.c.bf16 %v7075_v28, %v7074_v15  ;;  %5959 = vst [vmem:[%s9360_s30 + $0x1dc] sm:$0xff] %v6706_v4 }
 0x460   : > { %6038 = vst [vmem:[%s9360_s30 + $0x414] sm:$0xff] %v6785_v61  ;;  %v3960_v13 = vpop.f32.mrb[156].mxu0  ;;  %v4073_v29 = vpop.f32.mrb[76].mxu1 }
 0x461   : > { %v7076_v50 = vadd.f32 %v3960_v13, %v9771_v35  ;;  %v3962_v9 = vpop.f32.mrb[157].mxu0  ;;  %v4075_v8 = vpop.f32.mrb[77].mxu1 }
 0x462   : > { %v7077_v21 = vadd.f32 %v3962_v9, %v9772_v38  ;;  %v6711_v22 = vpack.c.bf16 %v4075_v8, %v4073_v29  ;;  %v3964_v40 = vpop.f32.mrb[158].mxu0  ;;  %v4077_v36 = vpop.f32.mrb[78].mxu1 }
 0x463   : > { %v7078_v37 = vadd.f32 %v3964_v40, %v9773_v48  ;;  %v3966_v16 = vpop.f32.mrb[159].mxu0  ;;  %v4079_v20 = vpop.f32.mrb[79].mxu1 }
 0x464   : > { %v6790_v33 = vpack.c.bf16 %v7077_v21, %v7076_v50  ;;  %5964 = vst [vmem:[%s9360_s30 + $0x200] sm:$0xff] %v6711_v22  ;;  %v7079_v0 = vadd.f32 %v3966_v16, %v9774_v30  ;;  %v6716_v42 = vpack.c.bf16 %v4079_v20, %v4077_v36 }
 0x466   : > { %6043 = vst [vmem:[%s9360_s30 + $0x438] sm:$0xff] %v6790_v33  ;;  %v6795_v45 = vpack.c.bf16 %v7079_v0, %v7078_v37  ;;  %5969 = vst [vmem:[%s9360_s30 + $0x224] sm:$0xff] %v6716_v42 }
 0x468   : > { %6048 = vst [vmem:[%s9360_s30 + $0x45c] sm:$0xff] %v6795_v45  ;;  %v4083_v63 = vpop.f32.mrb[80].mxu1  ;;  %v4196_v34 = vpop.f32.mrb[16].mxu0 }
 0x469   : > { %v4085_v46 = vpop.f32.mrb[81].mxu1  ;;  %v4198_v52 = vpop.f32.mrb[17].mxu0 }
 0x46a   : > { %v6721_v53 = vpack.c.bf16 %v4085_v46, %v4083_v63  ;;  %v6642_v39 = vpack.c.bf16 %v4198_v52, %v4196_v34  ;;  %v4087_v55 = vpop.f32.mrb[82].mxu1  ;;  %v4200_v44 = vpop.f32.mrb[18].mxu0 }
 0x46b   : > { %v4089_v51 = vpop.f32.mrb[83].mxu1  ;;  %v4202_v43 = vpop.f32.mrb[19].mxu0 }
 0x46c   : > { %5974 = vst [vmem:[%s9360_s30 + $0x248] sm:$0xff] %v6721_v53  ;;  %5895 = vst [vmem:[%s9360_s30 + $0x10] sm:$0xff] %v6642_v39  ;;  %v6726_v60 = vpack.c.bf16 %v4089_v51, %v4087_v55  ;;  %v6647_v2 = vpack.c.bf16 %v4202_v43, %v4200_v44 }
 0x46e   : > { %5979 = vst [vmem:[%s9360_s30 + $0x26c] sm:$0xff] %v6726_v60  ;;  %5900 = vst [vmem:[%s9360_s30 + $0x34] sm:$0xff] %v6647_v2 }
 0x470   : > { %v4093_v1 = vpop.f32.mrb[84].mxu1  ;;  %v4206_v26 = vpop.f32.mrb[20].mxu0 }
 0x471   : > { %v4095_v11 = vpop.f32.mrb[85].mxu1  ;;  %v4208_v23 = vpop.f32.mrb[21].mxu0 }
 0x472   : > { %v6731_v41 = vpack.c.bf16 %v4095_v11, %v4093_v1  ;;  %v6652_v19 = vpack.c.bf16 %v4208_v23, %v4206_v26  ;;  %v4097_v56 = vpop.f32.mrb[86].mxu1  ;;  %v4210_v62 = vpop.f32.mrb[22].mxu0 }
 0x473   : > { %v4099_v3 = vpop.f32.mrb[87].mxu1  ;;  %v4212_v5 = vpop.f32.mrb[23].mxu0 }
 0x474   : > { %5984 = vst [vmem:[%s9360_s30 + $0x290] sm:$0xff] %v6731_v41  ;;  %5905 = vst [vmem:[%s9360_s30 + $0x58] sm:$0xff] %v6652_v19  ;;  %v6736_v57 = vpack.c.bf16 %v4099_v3, %v4097_v56  ;;  %v6657_v6 = vpack.c.bf16 %v4212_v5, %v4210_v62 }
 0x476   : > { %5989 = vst [vmem:[%s9360_s30 + $0x2b4] sm:$0xff] %v6736_v57  ;;  %5910 = vst [vmem:[%s9360_s30 + $0x7c] sm:$0xff] %v6657_v6 }
 0x478   : > { %v4103_v58 = vpop.f32.mrb[88].mxu1  ;;  %v4216_v47 = vpop.f32.mrb[24].mxu0 }
 0x479   : > { %v4105_v54 = vpop.f32.mrb[89].mxu1  ;;  %v4218_v59 = vpop.f32.mrb[25].mxu0 }
 0x47a   : > { %v6741_v49 = vpack.c.bf16 %v4105_v54, %v4103_v58  ;;  %v6662_v25 = vpack.c.bf16 %v4218_v59, %v4216_v47  ;;  %v4107_v32 = vpop.f32.mrb[90].mxu1  ;;  %v4220_v27 = vpop.f32.mrb[26].mxu0 }
 0x47b   : > { %v4109_v24 = vpop.f32.mrb[91].mxu1  ;;  %v4222_v31 = vpop.f32.mrb[27].mxu0 }
 0x47c   : > { %5994 = vst [vmem:[%s9360_s30 + $0x2d8] sm:$0xff] %v6741_v49  ;;  %5915 = vst [vmem:[%s9360_s30 + $0xa0] sm:$0xff] %v6662_v25  ;;  %v6746_v7 = vpack.c.bf16 %v4109_v24, %v4107_v32  ;;  %v6667_v14 = vpack.c.bf16 %v4222_v31, %v4220_v27 }
 0x47e   : > { %5999 = vst [vmem:[%s9360_s30 + $0x2fc] sm:$0xff] %v6746_v7  ;;  %5920 = vst [vmem:[%s9360_s30 + $0xc4] sm:$0xff] %v6667_v14 }
 0x480   : > { %v4113_v15 = vpop.f32.mrb[92].mxu1  ;;  %v4226_v17 = vpop.f32.mrb[28].mxu0 }
 0x481   : > { %v4115_v10 = vpop.f32.mrb[93].mxu1  ;;  %v4228_v18 = vpop.f32.mrb[29].mxu0 }
 0x482   : > { %v6751_v12 = vpack.c.bf16 %v4115_v10, %v4113_v15  ;;  %v6672_v28 = vpack.c.bf16 %v4228_v18, %v4226_v17  ;;  %v4117_v4 = vpop.f32.mrb[94].mxu1  ;;  %v4230_v61 = vpop.f32.mrb[30].mxu0 }
 0x483   : > { %v4119_v13 = vpop.f32.mrb[95].mxu1  ;;  %v4232_v29 = vpop.f32.mrb[31].mxu0 }
 0x484   : > { %6004 = vst [vmem:[%s9360_s30 + $0x320] sm:$0xff] %v6751_v12  ;;  %5925 = vst [vmem:[%s9360_s30 + $0xe8] sm:$0xff] %v6672_v28  ;;  %v6756_v35 = vpack.c.bf16 %v4119_v13, %v4117_v4  ;;  %v6677_v50 = vpack.c.bf16 %v4232_v29, %v4230_v61 }
 0x486   : > { %6009 = vst [vmem:[%s9360_s30 + $0x344] sm:$0xff] %v6756_v35  ;;  %5930 = vst [vmem:[%s9360_s30 + $0x10c] sm:$0xff] %v6677_v50 }
 0x488   : > { %v4123_v9 = vpop.f32.mrb[96].mxu1  ;;  %v4236_v8 = vpop.f32.mrb[32].mxu0 }
 0x489   : > { %v4125_v38 = vpop.f32.mrb[97].mxu1  ;;  %v4238_v21 = vpop.f32.mrb[33].mxu0 }
 0x48a   : > { %v6761_v22 = vpack.c.bf16 %v4125_v38, %v4123_v9  ;;  %v6682_v40 = vpack.c.bf16 %v4238_v21, %v4236_v8  ;;  %v4127_v36 = vpop.f32.mrb[98].mxu1  ;;  %v4240_v48 = vpop.f32.mrb[34].mxu0 }
 0x48b   : > { %v4129_v37 = vpop.f32.mrb[99].mxu1  ;;  %v4242_v16 = vpop.f32.mrb[35].mxu0 }
 0x48c   : > { %6014 = vst [vmem:[%s9360_s30 + $0x368] sm:$0xff] %v6761_v22  ;;  %5935 = vst [vmem:[%s9360_s30 + $0x130] sm:$0xff] %v6682_v40  ;;  %v6766_v20 = vpack.c.bf16 %v4129_v37, %v4127_v36  ;;  %v6687_v33 = vpack.c.bf16 %v4242_v16, %v4240_v48 }
 0x48e   : > { %6019 = vst [vmem:[%s9360_s30 + $0x38c] sm:$0xff] %v6766_v20  ;;  %5940 = vst [vmem:[%s9360_s30 + $0x154] sm:$0xff] %v6687_v33 }
 0x490   : > { %v4133_v30 = vpop.f32.mrb[100].mxu1  ;;  %v4246_v0 = vpop.f32.mrb[36].mxu0 }
 0x491   : > { %v4135_v42 = vpop.f32.mrb[101].mxu1  ;;  %v4248_v45 = vpop.f32.mrb[37].mxu0 }
 0x492   : > { %v6771_v63 = vpack.c.bf16 %v4135_v42, %v4133_v30  ;;  %v6692_v34 = vpack.c.bf16 %v4248_v45, %v4246_v0  ;;  %v4137_v46 = vpop.f32.mrb[102].mxu1  ;;  %v4250_v52 = vpop.f32.mrb[38].mxu0 }
 0x493   : > { %v4139_v53 = vpop.f32.mrb[103].mxu1  ;;  %v4252_v39 = vpop.f32.mrb[39].mxu0 }
 0x494   : > { %6024 = vst [vmem:[%s9360_s30 + $0x3b0] sm:$0xff] %v6771_v63  ;;  %5945 = vst [vmem:[%s9360_s30 + $0x178] sm:$0xff] %v6692_v34  ;;  %v6776_v55 = vpack.c.bf16 %v4139_v53, %v4137_v46  ;;  %v6697_v44 = vpack.c.bf16 %v4252_v39, %v4250_v52 }
 0x496   : > { %6029 = vst [vmem:[%s9360_s30 + $0x3d4] sm:$0xff] %v6776_v55  ;;  %5950 = vst [vmem:[%s9360_s30 + $0x19c] sm:$0xff] %v6697_v44 }
 0x498   : > { %v4143_v51 = vpop.f32.mrb[104].mxu1  ;;  %v4256_v43 = vpop.f32.mrb[40].mxu0 }
 0x499   : > { %v4145_v60 = vpop.f32.mrb[105].mxu1  ;;  %v4258_v2 = vpop.f32.mrb[41].mxu0 }
 0x49a   : > { %v6781_v1 = vpack.c.bf16 %v4145_v60, %v4143_v51  ;;  %v6702_v26 = vpack.c.bf16 %v4258_v2, %v4256_v43  ;;  %v4147_v11 = vpop.f32.mrb[106].mxu1  ;;  %v4260_v23 = vpop.f32.mrb[42].mxu0 }
 0x49b   : > { %v4149_v41 = vpop.f32.mrb[107].mxu1  ;;  %v4262_v19 = vpop.f32.mrb[43].mxu0 }
 0x49c   : > { %6034 = vst [vmem:[%s9360_s30 + $0x3f8] sm:$0xff] %v6781_v1  ;;  %5955 = vst [vmem:[%s9360_s30 + $0x1c0] sm:$0xff] %v6702_v26  ;;  %v6786_v56 = vpack.c.bf16 %v4149_v41, %v4147_v11  ;;  %v6707_v62 = vpack.c.bf16 %v4262_v19, %v4260_v23 }
 0x49e   : > { %6039 = vst [vmem:[%s9360_s30 + $0x41c] sm:$0xff] %v6786_v56  ;;  %5960 = vst [vmem:[%s9360_s30 + $0x1e4] sm:$0xff] %v6707_v62 }
 0x4a0   : > { %v4153_v3 = vpop.f32.mrb[108].mxu1  ;;  %v4266_v5 = vpop.f32.mrb[44].mxu0 }
 0x4a1   : > { %v4155_v57 = vpop.f32.mrb[109].mxu1  ;;  %v4268_v6 = vpop.f32.mrb[45].mxu0 }
 0x4a2   : > { %v6791_v58 = vpack.c.bf16 %v4155_v57, %v4153_v3  ;;  %v6712_v47 = vpack.c.bf16 %v4268_v6, %v4266_v5  ;;  %v4157_v54 = vpop.f32.mrb[110].mxu1  ;;  %v4270_v59 = vpop.f32.mrb[46].mxu0 }
 0x4a3   : > { %v4159_v49 = vpop.f32.mrb[111].mxu1  ;;  %v4272_v25 = vpop.f32.mrb[47].mxu0 }
 0x4a4   : > { %6044 = vst [vmem:[%s9360_s30 + $0x440] sm:$0xff] %v6791_v58  ;;  %5965 = vst [vmem:[%s9360_s30 + $0x208] sm:$0xff] %v6712_v47  ;;  %v6796_v32 = vpack.c.bf16 %v4159_v49, %v4157_v54  ;;  %v6717_v27 = vpack.c.bf16 %v4272_v25, %v4270_v59 }
 0x4a6   : > { %6049 = vst [vmem:[%s9360_s30 + $0x464] sm:$0xff] %v6796_v32  ;;  %5970 = vst [vmem:[%s9360_s30 + $0x22c] sm:$0xff] %v6717_v27 }
 0x4a8   : > { %v4276_v24 = vpop.f32.mrb[48].mxu0  ;;  %v4389_v31 = vpop.f32.mrb[112].mxu1 }
 0x4a9   : > { %v4278_v7 = vpop.f32.mrb[49].mxu0  ;;  %v4391_v14 = vpop.f32.mrb[113].mxu1 }
 0x4aa   : > { %v6722_v15 = vpack.c.bf16 %v4278_v7, %v4276_v24  ;;  %v6643_v17 = vpack.c.bf16 %v4391_v14, %v4389_v31  ;;  %v4280_v10 = vpop.f32.mrb[50].mxu0  ;;  %v4393_v18 = vpop.f32.mrb[114].mxu1 }
 0x4ab   : > { %v4282_v12 = vpop.f32.mrb[51].mxu0  ;;  %v4395_v28 = vpop.f32.mrb[115].mxu1 }
 0x4ac   : > { %5975 = vst [vmem:[%s9360_s30 + $0x250] sm:$0xff] %v6722_v15  ;;  %5896 = vst [vmem:[%s9360_s30 + $0x18] sm:$0xff] %v6643_v17  ;;  %v6727_v4 = vpack.c.bf16 %v4282_v12, %v4280_v10  ;;  %v6648_v61 = vpack.c.bf16 %v4395_v28, %v4393_v18 }
 0x4ae   : > { %5980 = vst [vmem:[%s9360_s30 + $0x274] sm:$0xff] %v6727_v4  ;;  %5901 = vst [vmem:[%s9360_s30 + $0x3c] sm:$0xff] %v6648_v61 }
 0x4b0   : > { %v4286_v13 = vpop.f32.mrb[52].mxu0  ;;  %v4399_v29 = vpop.f32.mrb[116].mxu1 }
 0x4b1   : > { %v4288_v35 = vpop.f32.mrb[53].mxu0  ;;  %v4401_v50 = vpop.f32.mrb[117].mxu1 }
 0x4b2   : > { %v6732_v9 = vpack.c.bf16 %v4288_v35, %v4286_v13  ;;  %v6653_v8 = vpack.c.bf16 %v4401_v50, %v4399_v29  ;;  %v4290_v38 = vpop.f32.mrb[54].mxu0  ;;  %v4403_v21 = vpop.f32.mrb[118].mxu1 }
 0x4b3   : > { %v4292_v22 = vpop.f32.mrb[55].mxu0  ;;  %v4405_v40 = vpop.f32.mrb[119].mxu1 }
 0x4b4   : > { %5985 = vst [vmem:[%s9360_s30 + $0x298] sm:$0xff] %v6732_v9  ;;  %5906 = vst [vmem:[%s9360_s30 + $0x60] sm:$0xff] %v6653_v8  ;;  %v6737_v36 = vpack.c.bf16 %v4292_v22, %v4290_v38  ;;  %v6658_v48 = vpack.c.bf16 %v4405_v40, %v4403_v21 }
 0x4b6   : > { %5990 = vst [vmem:[%s9360_s30 + $0x2bc] sm:$0xff] %v6737_v36  ;;  %5911 = vst [vmem:[%s9360_s30 + $0x84] sm:$0xff] %v6658_v48 }
 0x4b8   : > { %v4296_v37 = vpop.f32.mrb[56].mxu0  ;;  %v4409_v16 = vpop.f32.mrb[120].mxu1 }
 0x4b9   : > { %v4298_v20 = vpop.f32.mrb[57].mxu0  ;;  %v4411_v33 = vpop.f32.mrb[121].mxu1 }
 0x4ba   : > { %v6742_v30 = vpack.c.bf16 %v4298_v20, %v4296_v37  ;;  %v6663_v0 = vpack.c.bf16 %v4411_v33, %v4409_v16  ;;  %v4300_v42 = vpop.f32.mrb[58].mxu0  ;;  %v4413_v45 = vpop.f32.mrb[122].mxu1 }
 0x4bb   : > { %v4302_v63 = vpop.f32.mrb[59].mxu0  ;;  %v4415_v34 = vpop.f32.mrb[123].mxu1 }
 0x4bc   : > { %5995 = vst [vmem:[%s9360_s30 + $0x2e0] sm:$0xff] %v6742_v30  ;;  %5916 = vst [vmem:[%s9360_s30 + $0xa8] sm:$0xff] %v6663_v0  ;;  %v6747_v46 = vpack.c.bf16 %v4302_v63, %v4300_v42  ;;  %v6668_v52 = vpack.c.bf16 %v4415_v34, %v4413_v45 }
 0x4be   : > { %6000 = vst [vmem:[%s9360_s30 + $0x304] sm:$0xff] %v6747_v46  ;;  %5921 = vst [vmem:[%s9360_s30 + $0xcc] sm:$0xff] %v6668_v52 }
 0x4c0   : > { %v4306_v53 = vpop.f32.mrb[60].mxu0  ;;  %v4419_v39 = vpop.f32.mrb[124].mxu1 }
 0x4c1   : > { %v4308_v55 = vpop.f32.mrb[61].mxu0  ;;  %v4421_v44 = vpop.f32.mrb[125].mxu1 }
 0x4c2   : > { %v6752_v51 = vpack.c.bf16 %v4308_v55, %v4306_v53  ;;  %v6673_v43 = vpack.c.bf16 %v4421_v44, %v4419_v39  ;;  %v4310_v60 = vpop.f32.mrb[62].mxu0  ;;  %v4423_v2 = vpop.f32.mrb[126].mxu1 }
 0x4c3   : > { %v4312_v1 = vpop.f32.mrb[63].mxu0  ;;  %v4425_v26 = vpop.f32.mrb[127].mxu1 }
 0x4c4   : > { %6005 = vst [vmem:[%s9360_s30 + $0x328] sm:$0xff] %v6752_v51  ;;  %5926 = vst [vmem:[%s9360_s30 + $0xf0] sm:$0xff] %v6673_v43  ;;  %v6757_v11 = vpack.c.bf16 %v4312_v1, %v4310_v60  ;;  %v6678_v23 = vpack.c.bf16 %v4425_v26, %v4423_v2 }
 0x4c6   : > { %6010 = vst [vmem:[%s9360_s30 + $0x34c] sm:$0xff] %v6757_v11  ;;  %5931 = vst [vmem:[%s9360_s30 + $0x114] sm:$0xff] %v6678_v23 }
 0x4c8   : > { %v4316_v41 = vpop.f32.mrb[64].mxu0  ;;  %v4429_v19 = vpop.f32.mrb[128].mxu1 }
 0x4c9   : > { %v4318_v56 = vpop.f32.mrb[65].mxu0  ;;  %v4431_v62 = vpop.f32.mrb[129].mxu1 }
 0x4ca   : > { %v6762_v3 = vpack.c.bf16 %v4318_v56, %v4316_v41  ;;  %v6683_v5 = vpack.c.bf16 %v4431_v62, %v4429_v19  ;;  %v4320_v57 = vpop.f32.mrb[66].mxu0  ;;  %v4433_v6 = vpop.f32.mrb[130].mxu1 }
 0x4cb   : > { %v4322_v58 = vpop.f32.mrb[67].mxu0  ;;  %v4435_v47 = vpop.f32.mrb[131].mxu1 }
 0x4cc   : > { %6015 = vst [vmem:[%s9360_s30 + $0x370] sm:$0xff] %v6762_v3  ;;  %5936 = vst [vmem:[%s9360_s30 + $0x138] sm:$0xff] %v6683_v5  ;;  %v6767_v54 = vpack.c.bf16 %v4322_v58, %v4320_v57  ;;  %v6688_v59 = vpack.c.bf16 %v4435_v47, %v4433_v6 }
 0x4ce   : > { %6020 = vst [vmem:[%s9360_s30 + $0x394] sm:$0xff] %v6767_v54  ;;  %5941 = vst [vmem:[%s9360_s30 + $0x15c] sm:$0xff] %v6688_v59 }
 0x4d0   : > { %v4326_v49 = vpop.f32.mrb[68].mxu0  ;;  %v4439_v25 = vpop.f32.mrb[132].mxu1 }
 0x4d1   : > { %v4328_v32 = vpop.f32.mrb[69].mxu0  ;;  %v4441_v27 = vpop.f32.mrb[133].mxu1 }
 0x4d2   : > { %v6772_v24 = vpack.c.bf16 %v4328_v32, %v4326_v49  ;;  %v6693_v31 = vpack.c.bf16 %v4441_v27, %v4439_v25  ;;  %v4330_v7 = vpop.f32.mrb[70].mxu0  ;;  %v4443_v14 = vpop.f32.mrb[134].mxu1 }
 0x4d3   : > { %v4332_v15 = vpop.f32.mrb[71].mxu0  ;;  %v4445_v17 = vpop.f32.mrb[135].mxu1 }
 0x4d4   : > { %6025 = vst [vmem:[%s9360_s30 + $0x3b8] sm:$0xff] %v6772_v24  ;;  %5946 = vst [vmem:[%s9360_s30 + $0x180] sm:$0xff] %v6693_v31  ;;  %v6777_v10 = vpack.c.bf16 %v4332_v15, %v4330_v7  ;;  %v6698_v18 = vpack.c.bf16 %v4445_v17, %v4443_v14 }
 0x4d6   : > { %6030 = vst [vmem:[%s9360_s30 + $0x3dc] sm:$0xff] %v6777_v10  ;;  %5951 = vst [vmem:[%s9360_s30 + $0x1a4] sm:$0xff] %v6698_v18 }
 0x4d8   : > { %v4336_v12 = vpop.f32.mrb[72].mxu0  ;;  %v4449_v28 = vpop.f32.mrb[136].mxu1 }
 0x4d9   : > { %v4338_v4 = vpop.f32.mrb[73].mxu0  ;;  %v4451_v61 = vpop.f32.mrb[137].mxu1 }
 0x4da   : > { %v6782_v13 = vpack.c.bf16 %v4338_v4, %v4336_v12  ;;  %v6703_v29 = vpack.c.bf16 %v4451_v61, %v4449_v28  ;;  %v4340_v35 = vpop.f32.mrb[74].mxu0  ;;  %v4453_v50 = vpop.f32.mrb[138].mxu1 }
 0x4db   : > { %v4342_v9 = vpop.f32.mrb[75].mxu0  ;;  %v4455_v8 = vpop.f32.mrb[139].mxu1 }
 0x4dc   : > { %6035 = vst [vmem:[%s9360_s30 + $0x400] sm:$0xff] %v6782_v13  ;;  %5956 = vst [vmem:[%s9360_s30 + $0x1c8] sm:$0xff] %v6703_v29  ;;  %v6787_v38 = vpack.c.bf16 %v4342_v9, %v4340_v35  ;;  %v6708_v21 = vpack.c.bf16 %v4455_v8, %v4453_v50 }
 0x4de   : > { %6040 = vst [vmem:[%s9360_s30 + $0x424] sm:$0xff] %v6787_v38  ;;  %5961 = vst [vmem:[%s9360_s30 + $0x1ec] sm:$0xff] %v6708_v21 }
 0x4e0   : > { %v4346_v22 = vpop.f32.mrb[76].mxu0  ;;  %v4459_v40 = vpop.f32.mrb[140].mxu1 }
 0x4e1   : > { %v4348_v36 = vpop.f32.mrb[77].mxu0  ;;  %v4461_v48 = vpop.f32.mrb[141].mxu1 }
 0x4e2   : > { %v6792_v37 = vpack.c.bf16 %v4348_v36, %v4346_v22  ;;  %v6713_v16 = vpack.c.bf16 %v4461_v48, %v4459_v40  ;;  %v4350_v20 = vpop.f32.mrb[78].mxu0  ;;  %v4463_v33 = vpop.f32.mrb[142].mxu1 }
 0x4e3   : > { %v4352_v30 = vpop.f32.mrb[79].mxu0  ;;  %v4465_v0 = vpop.f32.mrb[143].mxu1 }
 0x4e4   : > { %6045 = vst [vmem:[%s9360_s30 + $0x448] sm:$0xff] %v6792_v37  ;;  %5966 = vst [vmem:[%s9360_s30 + $0x210] sm:$0xff] %v6713_v16  ;;  %v6797_v42 = vpack.c.bf16 %v4352_v30, %v4350_v20  ;;  %v6718_v45 = vpack.c.bf16 %v4465_v0, %v4463_v33 }
 0x4e6   : > { %6050 = vst [vmem:[%s9360_s30 + $0x46c] sm:$0xff] %v6797_v42  ;;  %5971 = vst [vmem:[%s9360_s30 + $0x234] sm:$0xff] %v6718_v45 }
 0x4e8   : > { %v4469_v63 = vpop.f32.mrb[144].mxu1  ;;  %v6986_v34 = vpop.f32.mrb[80].mxu0 }
 0x4e9   : > { %v6654_v46 = vpack.c.bf16 %v6986_v34, %v6986_v34  ;;  %v4471_v52 = vpop.f32.mrb[145].mxu1  ;;  %v4582_v53 = vpop.f32.mrb[81].mxu0 }
 0x4ea   : > { %v6723_v39 = vpack.c.bf16 %v4471_v52, %v4469_v63  ;;  %v6644_v55 = vpack.c.bf16 %v4582_v53, %v4582_v53  ;;  %v4473_v44 = vpop.f32.mrb[146].mxu1  ;;  %v6987_v51 = vpop.f32.mrb[82].mxu0 }
 0x4eb   : > { %5907 = vst [vmem:[%s9360_s30 + $0x68] sm:$0xf] %v6654_v46  ;;  %v6659_v43 = vpack.c.bf16 %v6987_v51, %v6987_v51  ;;  %v4475_v60 = vpop.f32.mrb[147].mxu1  ;;  %v4585_v2 = vpop.f32.mrb[83].mxu0 }
 0x4ec   : > { %5976 = vst [vmem:[%s9360_s30 + $0x258] sm:$0xff] %v6723_v39  ;;  %5897 = vst [vmem:[%s9360_s30 + $0x20] sm:$0xf] %v6644_v55  ;;  %v6728_v1 = vpack.c.bf16 %v4475_v60, %v4473_v44  ;;  %v6649_v26 = vpack.c.bf16 %v4585_v2, %v4585_v2 }
 0x4ed   : > { %5912 = vst [vmem:[%s9360_s30 + $0x8c] sm:$0xf] %v6659_v43 }
 0x4ee   : > { %5981 = vst [vmem:[%s9360_s30 + $0x27c] sm:$0xff] %v6728_v1  ;;  %5902 = vst [vmem:[%s9360_s30 + $0x44] sm:$0xf] %v6649_v26 }
 0x4f0   : > { %v4479_v11 = vpop.f32.mrb[148].mxu1  ;;  %v6990_v23 = vpop.f32.mrb[84].mxu0 }
 0x4f1   : > { %v6674_v41 = vpack.c.bf16 %v6990_v23, %v6990_v23  ;;  %v4481_v19 = vpop.f32.mrb[149].mxu1  ;;  %v4598_v56 = vpop.f32.mrb[85].mxu0 }
 0x4f2   : > { %v6733_v62 = vpack.c.bf16 %v4481_v19, %v4479_v11  ;;  %v6664_v3 = vpack.c.bf16 %v4598_v56, %v4598_v56  ;;  %v4483_v5 = vpop.f32.mrb[150].mxu1  ;;  %v6991_v57 = vpop.f32.mrb[86].mxu0 }
 0x4f3   : > { %5927 = vst [vmem:[%s9360_s30 + $0xf8] sm:$0xf] %v6674_v41  ;;  %v6679_v6 = vpack.c.bf16 %v6991_v57, %v6991_v57  ;;  %v4485_v58 = vpop.f32.mrb[151].mxu1  ;;  %v4601_v47 = vpop.f32.mrb[87].mxu0 }
 0x4f4   : > { %5986 = vst [vmem:[%s9360_s30 + $0x2a0] sm:$0xff] %v6733_v62  ;;  %5917 = vst [vmem:[%s9360_s30 + $0xb0] sm:$0xf] %v6664_v3  ;;  %v6738_v54 = vpack.c.bf16 %v4485_v58, %v4483_v5  ;;  %v6669_v59 = vpack.c.bf16 %v4601_v47, %v4601_v47 }
 0x4f5   : > { %5932 = vst [vmem:[%s9360_s30 + $0x11c] sm:$0xf] %v6679_v6 }
 0x4f6   : > { %5991 = vst [vmem:[%s9360_s30 + $0x2c4] sm:$0xff] %v6738_v54  ;;  %5922 = vst [vmem:[%s9360_s30 + $0xd4] sm:$0xf] %v6669_v59 }
 0x4f8   : > { %v4489_v49 = vpop.f32.mrb[152].mxu1  ;;  %v6994_v25 = vpop.f32.mrb[88].mxu0 }
 0x4f9   : > { %v6694_v32 = vpack.c.bf16 %v6994_v25, %v6994_v25  ;;  %v4491_v27 = vpop.f32.mrb[153].mxu1  ;;  %v4614_v24 = vpop.f32.mrb[89].mxu0 }
 0x4fa   : > { %v6743_v31 = vpack.c.bf16 %v4491_v27, %v4489_v49  ;;  %v6684_v7 = vpack.c.bf16 %v4614_v24, %v4614_v24  ;;  %v4493_v14 = vpop.f32.mrb[154].mxu1  ;;  %v6995_v15 = vpop.f32.mrb[90].mxu0 }
 0x4fb   : > { %5947 = vst [vmem:[%s9360_s30 + $0x188] sm:$0xf] %v6694_v32  ;;  %v6699_v17 = vpack.c.bf16 %v6995_v15, %v6995_v15  ;;  %v4495_v10 = vpop.f32.mrb[155].mxu1  ;;  %v4617_v18 = vpop.f32.mrb[91].mxu0 }
 0x4fc   : > { %5996 = vst [vmem:[%s9360_s30 + $0x2e8] sm:$0xff] %v6743_v31  ;;  %5937 = vst [vmem:[%s9360_s30 + $0x140] sm:$0xf] %v6684_v7  ;;  %v6748_v12 = vpack.c.bf16 %v4495_v10, %v4493_v14  ;;  %v6689_v28 = vpack.c.bf16 %v4617_v18, %v4617_v18 }
 0x4fd   : > { %5952 = vst [vmem:[%s9360_s30 + $0x1ac] sm:$0xf] %v6699_v17 }
 0x4fe   : > { %6001 = vst [vmem:[%s9360_s30 + $0x30c] sm:$0xff] %v6748_v12  ;;  %5942 = vst [vmem:[%s9360_s30 + $0x164] sm:$0xf] %v6689_v28 }
 0x500   : > { %v4499_v4 = vpop.f32.mrb[156].mxu1  ;;  %v6998_v61 = vpop.f32.mrb[92].mxu0 }
 0x501   : > { %v6714_v13 = vpack.c.bf16 %v6998_v61, %v6998_v61  ;;  %v4501_v29 = vpop.f32.mrb[157].mxu1  ;;  %v4630_v35 = vpop.f32.mrb[93].mxu0 }
 0x502   : > { %v6753_v50 = vpack.c.bf16 %v4501_v29, %v4499_v4  ;;  %v6704_v9 = vpack.c.bf16 %v4630_v35, %v4630_v35  ;;  %v4503_v8 = vpop.f32.mrb[158].mxu1  ;;  %v6999_v38 = vpop.f32.mrb[94].mxu0 }
 0x503   : > { %5967 = vst [vmem:[%s9360_s30 + $0x218] sm:$0xf] %v6714_v13  ;;  %v6719_v21 = vpack.c.bf16 %v6999_v38, %v6999_v38  ;;  %v4505_v22 = vpop.f32.mrb[159].mxu1  ;;  %v4633_v40 = vpop.f32.mrb[95].mxu0 }
 0x504   : > { %6006 = vst [vmem:[%s9360_s30 + $0x330] sm:$0xff] %v6753_v50  ;;  %5957 = vst [vmem:[%s9360_s30 + $0x1d0] sm:$0xf] %v6704_v9  ;;  %v6758_v36 = vpack.c.bf16 %v4505_v22, %v4503_v8  ;;  %v6709_v48 = vpack.c.bf16 %v4633_v40, %v4633_v40 }
 0x505   : > { %5972 = vst [vmem:[%s9360_s30 + $0x23c] sm:$0xf] %v6719_v21 }
 0x506   : > { %6011 = vst [vmem:[%s9360_s30 + $0x354] sm:$0xff] %v6758_v36  ;;  %5962 = vst [vmem:[%s9360_s30 + $0x1f4] sm:$0xf] %v6709_v48 }
 0x508   : > { %v4509_v37 = vpop.f32.mrb[160].mxu1  ;;  %v7002_v16 = vpop.f32.mrb[96].mxu0 }
 0x509   : > { %v6734_v20 = vpack.c.bf16 %v7002_v16, %v7002_v16  ;;  %v4511_v33 = vpop.f32.mrb[161].mxu1  ;;  %v4646_v30 = vpop.f32.mrb[97].mxu0 }
 0x50a   : > { %v6763_v0 = vpack.c.bf16 %v4511_v33, %v4509_v37  ;;  %v6724_v42 = vpack.c.bf16 %v4646_v30, %v4646_v30  ;;  %v4513_v45 = vpop.f32.mrb[162].mxu1  ;;  %v7003_v63 = vpop.f32.mrb[98].mxu0 }
 0x50b   : > { %5987 = vst [vmem:[%s9360_s30 + $0x2a8] sm:$0xf] %v6734_v20  ;;  %v6739_v34 = vpack.c.bf16 %v7003_v63, %v7003_v63  ;;  %v4515_v46 = vpop.f32.mrb[163].mxu1  ;;  %v4649_v52 = vpop.f32.mrb[99].mxu0 }
 0x50c   : > { %6016 = vst [vmem:[%s9360_s30 + $0x378] sm:$0xff] %v6763_v0  ;;  %5977 = vst [vmem:[%s9360_s30 + $0x260] sm:$0xf] %v6724_v42  ;;  %v6768_v53 = vpack.c.bf16 %v4515_v46, %v4513_v45  ;;  %v6729_v39 = vpack.c.bf16 %v4649_v52, %v4649_v52 }
 0x50d   : > { %5992 = vst [vmem:[%s9360_s30 + $0x2cc] sm:$0xf] %v6739_v34 }
 0x50e   : > { %6021 = vst [vmem:[%s9360_s30 + $0x39c] sm:$0xff] %v6768_v53  ;;  %5982 = vst [vmem:[%s9360_s30 + $0x284] sm:$0xf] %v6729_v39 }
 0x510   : > { %v4519_v55 = vpop.f32.mrb[164].mxu1  ;;  %v7006_v44 = vpop.f32.mrb[100].mxu0 }
 0x511   : > { %v6754_v51 = vpack.c.bf16 %v7006_v44, %v7006_v44  ;;  %v4521_v43 = vpop.f32.mrb[165].mxu1  ;;  %v4662_v60 = vpop.f32.mrb[101].mxu0 }
 0x512   : > { %v6773_v2 = vpack.c.bf16 %v4521_v43, %v4519_v55  ;;  %v6744_v1 = vpack.c.bf16 %v4662_v60, %v4662_v60  ;;  %v4523_v26 = vpop.f32.mrb[166].mxu1  ;;  %v7007_v11 = vpop.f32.mrb[102].mxu0 }
 0x513   : > { %6007 = vst [vmem:[%s9360_s30 + $0x338] sm:$0xf] %v6754_v51  ;;  %v6759_v23 = vpack.c.bf16 %v7007_v11, %v7007_v11  ;;  %v4525_v41 = vpop.f32.mrb[167].mxu1  ;;  %v4665_v19 = vpop.f32.mrb[103].mxu0 }
 0x514   : > { %6026 = vst [vmem:[%s9360_s30 + $0x3c0] sm:$0xff] %v6773_v2  ;;  %5997 = vst [vmem:[%s9360_s30 + $0x2f0] sm:$0xf] %v6744_v1  ;;  %v6778_v56 = vpack.c.bf16 %v4525_v41, %v4523_v26  ;;  %v6749_v62 = vpack.c.bf16 %v4665_v19, %v4665_v19 }
 0x515   : > { %6012 = vst [vmem:[%s9360_s30 + $0x35c] sm:$0xf] %v6759_v23 }
 0x516   : > { %6031 = vst [vmem:[%s9360_s30 + $0x3e4] sm:$0xff] %v6778_v56  ;;  %6002 = vst [vmem:[%s9360_s30 + $0x314] sm:$0xf] %v6749_v62 }
 0x518   : > { %v4529_v3 = vpop.f32.mrb[168].mxu1  ;;  %v7010_v5 = vpop.f32.mrb[104].mxu0 }
 0x519   : > { %v6774_v57 = vpack.c.bf16 %v7010_v5, %v7010_v5  ;;  %v4531_v6 = vpop.f32.mrb[169].mxu1  ;;  %v4678_v58 = vpop.f32.mrb[105].mxu0 }
 0x51a   : > { %v6783_v47 = vpack.c.bf16 %v4531_v6, %v4529_v3  ;;  %v6764_v54 = vpack.c.bf16 %v4678_v58, %v4678_v58  ;;  %v4533_v59 = vpop.f32.mrb[170].mxu1  ;;  %v7011_v49 = vpop.f32.mrb[106].mxu0 }
 0x51b   : > { %6027 = vst [vmem:[%s9360_s30 + $0x3c8] sm:$0xf] %v6774_v57  ;;  %v6779_v25 = vpack.c.bf16 %v7011_v49, %v7011_v49  ;;  %v4535_v32 = vpop.f32.mrb[171].mxu1  ;;  %v4681_v27 = vpop.f32.mrb[107].mxu0 }
 0x51c   : > { %6036 = vst [vmem:[%s9360_s30 + $0x408] sm:$0xff] %v6783_v47  ;;  %6017 = vst [vmem:[%s9360_s30 + $0x380] sm:$0xf] %v6764_v54  ;;  %v6788_v24 = vpack.c.bf16 %v4535_v32, %v4533_v59  ;;  %v6769_v31 = vpack.c.bf16 %v4681_v27, %v4681_v27 }
 0x51d   : > { %6032 = vst [vmem:[%s9360_s30 + $0x3ec] sm:$0xf] %v6779_v25 }
 0x51e   : > { %6041 = vst [vmem:[%s9360_s30 + $0x42c] sm:$0xff] %v6788_v24  ;;  %6022 = vst [vmem:[%s9360_s30 + $0x3a4] sm:$0xf] %v6769_v31 }
 0x520   : > { %v4539_v7 = vpop.f32.mrb[172].mxu1  ;;  %v7014_v14 = vpop.f32.mrb[108].mxu0 }
 0x521   : > { %v6794_v15 = vpack.c.bf16 %v7014_v14, %v7014_v14  ;;  %v4541_v17 = vpop.f32.mrb[173].mxu1  ;;  %v4694_v10 = vpop.f32.mrb[109].mxu0 }
 0x522   : > { %v6793_v18 = vpack.c.bf16 %v4541_v17, %v4539_v7  ;;  %v6784_v12 = vpack.c.bf16 %v4694_v10, %v4694_v10  ;;  %v4543_v28 = vpop.f32.mrb[174].mxu1  ;;  %v7015_v4 = vpop.f32.mrb[110].mxu0 }
 0x523   : > { %6047 = vst [vmem:[%s9360_s30 + $0x458] sm:$0xf] %v6794_v15  ;;  %v6799_v61 = vpack.c.bf16 %v7015_v4, %v7015_v4  ;;  %v4545_v13 = vpop.f32.mrb[175].mxu1  ;;  %v4697_v29 = vpop.f32.mrb[111].mxu0 }
 0x524   : > { %6046 = vst [vmem:[%s9360_s30 + $0x450] sm:$0xff] %v6793_v18  ;;  %6037 = vst [vmem:[%s9360_s30 + $0x410] sm:$0xf] %v6784_v12  ;;  %v6798_v35 = vpack.c.bf16 %v4545_v13, %v4543_v28  ;;  %v6789_v50 = vpack.c.bf16 %v4697_v29, %v4697_v29 }
 0x525   : > { %6052 = vst [vmem:[%s9360_s30 + $0x47c] sm:$0xf] %v6799_v61 }
 0x526   : > { %6051 = vst [vmem:[%s9360_s30 + $0x474] sm:$0xff] %v6798_v35  ;;  %6042 = vst [vmem:[%s9360_s30 + $0x434] sm:$0xf] %v6789_v50 }
 0x527   : > { %8219 = shalt.err (!%p8216_p6)
}
 0x528   : > { %s8220_s3 = scalar_lea.hbm %s9620_s15, 18432  ;;  %s8224_s28 = scalar_lea.hbm %s9776_s6, 36864 }
 0x529   : > { %p8221_p7 = scmp.ne.s32.totalorder %s9620_s15, %s8220_s3  ;;  %p8225_p4 = scmp.lt.u32.totalorder %s9620_s15, %s9776_s6 }
 0x52a   : > { %p8226_p12 = scmp.lt.u32.totalorder %s8224_s28, %s8220_s3  ;;  %p8228_p11 = scmp.lt.u32.totalorder %s8220_s3, %s9620_s15 }
 0x52b   : > { %p8222_p9 = pnand %p8221_p7, %p9777_p10 }
 0x52c   : > { %p8227_p2 = por %p8226_p12, %p8225_p4 }
 0x52d   : > { %p8223_p8 = pneg %p8222_p9 }
 0x52e   : > { %p8229_p1 = por %p8228_p11, %p8227_p2 }
 0x530   : > { %p8230_p0 = pnand %p8229_p1, %p8223_p8 }
 0x532   : > { %8233 = shalt.err (!%p8230_p0)
}
 0x533   : > { %s8314_s21 = smov 576   ;;  %s8315_s9 = smov 36  }
 0x534   : > { %7628 = dma.vmem_to_hbm [thread:$0]  (%p9777_p10), %s9622_s20, 18432, %s9620_s15, %s6054_s1, %s8314_s21, %s8314_s21, %s8315_s9  }
 0x535 PF: > { %s9778_s13 = sld [smem:[#allocation19_spill]]  ;;  %s9779_s11 = sld [smem:[#allocation23_spill]] }
 0x536   : > { %s9780_s27 = sld [smem:[#allocation21_spill]] }
 0x53b   : > { %s6085_s30 = sand.u32 1, %s9778_s13   ;;  %p9781_p13 = scmp.ne.s32.totalorder %s9779_s11, 0 }
 0x53c   : > { %p9782_p5 = scmp.ge.s32.totalorder %s9780_s27, 2  ;;  %s6086_s12 = scalar_lea.sflag [#allocation4], %s6085_s30 }
 0x53e   : > { %p7651_p3 = pnand %p9782_p5, %p9781_p13 }
 0x540   : > { %8275 = dma.done.wait (!%p7651_p3), %s6086_s12, 18432  }
 0x541   : > { %8277 = vsyncadd (!%p7651_p3), %s6086_s12, 4294948864  ;;  %s27_s26 = sadd.s32 1, %s9780_s27   ;;  %s9783_s24 = sld [smem:[#allocation25_spill]] }
 0x542   : > { %p24_p6 = scmp.ge.s32.totalorder %s27_s26, 4   ;;  %s9784_s10 = sld [smem:[#allocation20_spill]] }
 0x543   : > { %s9785_s25 = sld [smem:[#allocation24_spill]]  ;;  %s9786_s21 = smov %s8284_s22 }
 0x544   : > { %s9787_s22 = smov %s8288_s23  ;;  %26 = sbr.rel (!%p24_p6) target bundleno = 14 (0xe), region = 125 }
 0x547   : > { %s9788_s23 = smov %s9783_s24 }
 0x548   : > { %s9789_s24 = smov %s9784_s10 }
 0x54b   :  { %6091 = vsyncpa [#allocation3], 1 }
 0x54c   :  { %6093 = vsyncpa [#allocation3 + $0x1], 1 }
 0x54d   :  { %6094 = vsyncpa [#allocation6], 1 }
 0x54e   :  { %6096 = vsyncpa [#allocation6 + $0x1], 1 }
 0x54f   :  { %6097 = vsyncpa [#allocation9], 1 }
 0x550   :  { %6098 = vsyncpa [#allocation12], 1 }
 0x551   :  { %6099 = vsyncpa [#allocation4], 1 }
 0x552   :  { %6101 = vsyncpa [#allocation4 + $0x1], 1 }

</bundles_post_ra>
